<compile_context>
chip_gen: v7x
topology: tpu7x:2x2x1
jax: 0.10.0
libtpu: 0.0.40
codegen_flags: <defaults>
</compile_context>

<pallas_src>
import functools

import jax
import jax.numpy as jnp
from jax import lax
from jax.experimental import pallas as pl
from jax.experimental.pallas import tpu as pltpu

_NEG = -3.0e38  # f32 "minus infinity" sentinel for masked max


def _round_up(x, m):
    return ((x + m - 1) // m) * m


def _lane_inclusive_prefix(x, tri):
    """Inclusive prefix-sum along the lane (last) axis of 2-D f32 `x`.

    Chunked 128-wide: per-chunk triangular matmul on the MXU + a running
    per-row offset, using the resident `tri` constant (tri[j, i] = j <= i).
    """
    rows, length = x.shape
    offset = jnp.zeros((rows, 1), jnp.float32)
    outs = []
    for c0 in range(0, length, 128):
        w = min(128, length - c0)
        xc = x[:, c0:c0 + w]
        outs.append(jnp.dot(xc, tri[:w, :w], preferred_element_type=jnp.float32)
                    + offset)
        offset = offset + jnp.sum(xc, axis=1, keepdims=True)
    return outs[0] if len(outs) == 1 else jnp.concatenate(outs, axis=1)


def _sparse_roi_voxel_kernel(rois_ref, tri_ref, viota_ref, ptsT_ref, feat_ref,
                             out_feat_ref, out_vid_ref,
                             acc_ref, cnt_ref, *,
                             out_size, max_pts_per_voxel, max_voxels,
                             mode, rois_per_block, v_pad):
    ox, oy, oz = out_size
    Vp = v_pad
    MV = max_voxels
    R = rois_per_block
    p_tile = ptsT_ref.shape[1]
    n_chunks = p_tile // 128
    cap = float(max_pts_per_voxel)
    needs_cast = feat_ref.dtype not in (jnp.float32, jnp.bfloat16)

    nb = pl.program_id(0)          # ROI-block index     (parallel)
    t = pl.program_id(1)           # point-tile index    (arbitrary / reduction)
    nt = pl.num_programs(1)

    # ---- per-ROI-block running state, reset at the first point tile -----------
    @pl.when(t == 0)
    def _init():
        cnt_ref[...] = jnp.zeros_like(cnt_ref)
        if mode == 0:
            acc_ref[...] = jnp.full_like(acc_ref, _NEG)
        else:
            acc_ref[...] = jnp.zeros_like(acc_ref)

    # ---- shared per-step data (loaded once, reused by all R ROIs) -------------
    px = ptsT_ref[0:1, :]                                          # (1, p_tile)
    py = ptsT_ref[1:2, :]
    pz = ptsT_ref[2:3, :]
    tri = tri_ref[...]                                             # (128, 128) resident
    viota = viota_ref[...]                                         # (Vp, 128)  resident

    for r in range(R):
        roi = nb * R + r
        cx = rois_ref[0, roi]
        cy = rois_ref[1, roi]
        cz = rois_ref[2, roi]
        dx = rois_ref[3, roi]
        dy = rois_ref[4, roi]
        dz = rois_ref[5, roi]
        cosa = rois_ref[6, roi]
        sina = rois_ref[7, roi]
        cz = cz + dz * 0.5         # rois store the bottom-center z

        sx = px - cx
        sy = py - cy
        lz = pz - cz
        lx = sx * cosa + sy * sina                                 # rotate by -rz
        ly = -sx * sina + sy * cosa
        hx, hy, hz = dx * 0.5, dy * 0.5, dz * 0.5
        # Boundary handling matches the CUDA reference: |z| <= hz, strict on x/y.
        inside = ((jnp.abs(lz) <= hz)
                  & (lx > -hx) & (lx < hx)
                  & (ly > -hy) & (ly < hy))                        # (1, p_tile)

        # Cheap scalar predicate: skip all per-voxel work when no point of this
        # tile falls inside this ROI (typical for LiDAR ROIs vs. the full cloud).
        n_inside = jnp.sum(inside.astype(jnp.float32))

        @pl.when(n_inside > 0.0)
        def _process(r=r, inside=inside, lx=lx, ly=ly, lz=lz,
                     dx=dx, dy=dy, dz=dz, hx=hx, hy=hy, hz=hz):
            vxi = jnp.clip(jnp.floor((lx + hx) * (ox / dx)).astype(jnp.int32),
                           0, ox - 1)
            vyi = jnp.clip(jnp.floor((ly + hy) * (oy / dy)).astype(jnp.int32),
                           0, oy - 1)
            vzi = jnp.clip(jnp.floor((lz + hz) * (oz / dz)).astype(jnp.int32),
                           0, oz - 1)
            vid = vxi * (oy * oz) + vyi * oz + vzi                 # (1, p_tile)

            acc_r = acc_ref.at[r]
            run_cnt = cnt_ref[r, :, :]                             # (Vp, 1) carried counts

            include_chunks = []
            tile_sum = None
            # ---- fused chunked prefix-sum + rank + (avg) accumulation ---------
            for c in range(n_chunks):
                c0 = c * 128
                inside_c = inside[:, c0:c0 + 128]                  # (1, 128)
                vid_c = vid[:, c0:c0 + 128]                        # (1, 128)
                m_c = ((viota == vid_c) & inside_c).astype(jnp.float32)   # (Vp, 128)
                incl_c = jnp.dot(m_c, tri, preferred_element_type=jnp.float32)
                # rank of each point among same-voxel points seen so far
                rank_c = jnp.sum(m_c * (incl_c - m_c + run_cnt),
                                 axis=0, keepdims=True)            # (1, 128)
                include_c = inside_c & (rank_c < cap)              # (1, 128)
                run_cnt = run_cnt + jnp.sum(m_c, axis=1, keepdims=True)
                if mode == 1:
                    f_c = feat_ref[c0:c0 + 128, :]
                    if needs_cast:
                        f_c = f_c.astype(jnp.float32)
                    w_c = m_c * include_c.astype(jnp.float32)
                    part = jnp.dot(w_c, f_c,
                                   preferred_element_type=jnp.float32)    # (Vp, C)
                    tile_sum = part if tile_sum is None else tile_sum + part
                else:
                    include_chunks.append(include_c)

            cnt_ref[r, :, :] = run_cnt

            if mode == 1:
                acc_r[...] += tile_sum
            else:
                # max pool: 8 voxels per iteration, one (8, C) sublane-aligned
                # acc read-modify-write per block (no per-voxel (1, C) stores).
                featv = feat_ref[...]
                if needs_cast:
                    featv = featv.astype(jnp.float32)
                include_row = (include_chunks[0] if n_chunks == 1
                               else jnp.concatenate(include_chunks, axis=1))
                vid_f = jnp.where(include_row, vid, -1).astype(jnp.float32)
                vid_col = jnp.transpose(vid_f)                     # (p_tile, 1)

                def _vb_body(vb, carry):
                    base = pl.multiple_of(vb * 8, 8)
                    maxs = []
                    for j in range(8):
                        sel = vid_col == (base + j).astype(jnp.float32)
                        masked = jnp.where(sel, featv, _NEG)       # (p_tile, C)
                        maxs.append(jnp.max(masked, axis=0, keepdims=True))
                    blk = jnp.concatenate(maxs, axis=0).astype(jnp.float32)  # (8, C)
                    cur = acc_r[pl.ds(base, 8), :]
                    acc_r[pl.ds(base, 8), :] = jnp.maximum(cur, blk)
                    return carry

                lax.fori_loop(0, Vp // 8, _vb_body, 0)

    # ---- finalize: compact non-empty voxels into the first MV slots -----------
    @pl.when(t == nt - 1)
    def _finalize():
        for r in range(R):
            cnt = cnt_ref[r, :, :]                                 # (Vp, 1)
            nonempty = cnt > 0.0
            acc = acc_ref[r, :, :]                                 # (Vp, C) f32
            if mode == 0:
                pooled = jnp.where(nonempty, acc, 0.0)
            else:
                n_used = jnp.maximum(jnp.minimum(cnt, float(max_pts_per_voxel)), 1.0)
                pooled = jnp.where(nonempty, acc / n_used, 0.0)    # exact division

            ne_row = jnp.transpose(nonempty.astype(jnp.float32))   # (1, Vp)
            incl_ne = _lane_inclusive_prefix(
                jnp.broadcast_to(ne_row, (8, Vp)), tri)[0:1, :]
            slot_row = incl_ne.astype(jnp.int32) - 1               # (1, Vp)
            valid_row = (ne_row > 0.0) & (slot_row < MV)           # (1, Vp)

            s_iota = lax.broadcasted_iota(jnp.int32, (MV, Vp), 0)
            vids = lax.broadcasted_iota(jnp.int32, (MV, Vp), 1)
            onehot = (s_iota == slot_row) & valid_row              # (MV, Vp)
            onehot_f = onehot.astype(jnp.float32)

            out_feat = jnp.dot(onehot_f, pooled,
                               preferred_element_type=jnp.float32)  # (MV, C)
            out_feat_ref[r, :, :] = out_feat.astype(out_feat_ref.dtype)

            vid_slot = jnp.sum(jnp.where(onehot, vids, 0),
                               axis=1, keepdims=True)              # (MV, 1) int32
            filled = jnp.sum(onehot.astype(jnp.int32),
                             axis=1, keepdims=True) > 0
            vid_slot = jnp.where(filled, vid_slot, -1)
            # lane-dense packed voxel id per slot; decoded to (vx, vy, vz) outside.
            out_vid_ref[r, :, :] = jnp.transpose(vid_slot)         # (1, MV)


def sparse_roi_voxelization(rois, pts, pts_feature, *, out_size,
                            max_pts_per_voxel=128, max_voxels=128, mode='max',
                            point_block=None, roi_block=None):
    """Forward of SparseROIVoxelization.

    rois:        [N, 7] float (x, y, z_bottom, dx, dy, dz, rz)  (LiDAR coords)
    pts:         [P, 3] float
    pts_feature: [P, C] float
    returns: pooled_features [N, max_voxels, C], pooled_coors [N, max_voxels, 3] int32
    """
    assert mode in ('max', 'avg')
    mode_i = 0 if mode == 'max' else 1
    out_size = tuple(int(s) for s in out_size)
    ox, oy, oz = out_size
    V = ox * oy * oz
    Vp = _round_up(V, 8)
    N = int(rois.shape[0])
    P, C = (int(pts_feature.shape[0]), int(pts_feature.shape[1]))
    MV = int(max_voxels)
    feat_bytes = jnp.dtype(pts_feature.dtype).itemsize

    # ---- ROI batching: R ROIs share each streamed point/feature tile ----------
    R = 4 if roi_block is None else int(roi_block)
    # Keep the parallel (ROI-block) grid axis >= 2 when possible (v7x megacore).
    R = max(1, min(R, max(1, N // 2)))
    N_pad = _round_up(max(N, 1), R)
    NB = N_pad // R

    # ---- point-axis tile: as large as the VMEM budget allows ------------------
    if point_block is None:
        p_tile = min(1024, _round_up(max(P, 1), 128))
    else:
        p_tile = _round_up(int(point_block), 128)

    def _vmem_estimate(pt):
        tile_io = 2 * (3 * pt * 4 + pt * C * feat_bytes)           # double-buffered tiles
        const_in = 2 * (128 * 128 * 4 + Vp * 128 * 4)              # tri + voxel iota
        scratch = R * Vp * (C + 1) * 4                             # acc + cnt
        outs = 2 * R * MV * (C * feat_bytes + 4)
        temps = 4 * (6 * Vp * 128 + 3 * pt * C + 2 * Vp * C + 2 * MV * Vp + 8 * pt)
        return tile_io + const_in + scratch + outs + temps

    VMEM_BUDGET = 48 * 1024 * 1024     # stay well under v7x's 64 MiB physical VMEM
    while p_tile > 128 and _vmem_estimate(p_tile) > VMEM_BUDGET:
        p_tile = max(128, _round_up(p_tile // 2, 128))
    p_pad = _round_up(max(P, 1), p_tile)
    num_tiles = p_pad // p_tile

    # ---- ROI table: (8, N_pad) coord-major in SMEM (long axis last) -----------
    rz = rois[:, 6].astype(jnp.float32)
    tab = jnp.concatenate(
        [rois[:, :6].astype(jnp.float32),
         jnp.cos(rz)[:, None], jnp.sin(rz)[:, None]], axis=1)      # (N, 8)
    if N_pad != N:
        # Dummy ROIs far away from every point -> all-empty -> zeros / -1 coors.
        pad = jnp.concatenate(
            [jnp.full((N_pad - N, 3), 1.0e9, jnp.float32),
             jnp.ones((N_pad - N, 3), jnp.float32),
             jnp.ones((N_pad - N, 1), jnp.float32),
             jnp.zeros((N_pad - N, 1), jnp.float32)], axis=1)
        tab = jnp.concatenate([tab, pad], axis=0)
    rois_tab = jnp.transpose(tab)                                  # (8, N_pad)

    # ---- point / feature padding (padding points lie outside every ROI) -------
    pts_f = pts.astype(jnp.float32)
    feat = pts_feature
    if p_pad != P:
        pts_f = jnp.concatenate(
            [pts_f, jnp.full((p_pad - P, 3), 1.0e8, jnp.float32)], axis=0)
        feat = jnp.concatenate(
            [feat, jnp.zeros((p_pad - P, C), pts_feature.dtype)], axis=0)
    ptsT = jnp.transpose(pts_f)                                    # (3, p_pad)

    # ---- resident constants (hoisted out of the per-step kernel body) ---------
    j_idx = jnp.arange(128, dtype=jnp.int32)
    tri = (j_idx[:, None] <= j_idx[None, :]).astype(jnp.float32)   # (128, 128)
    viota = jnp.broadcast_to(jnp.arange(Vp, dtype=jnp.int32)[:, None], (Vp, 128))

    kernel = functools.partial(
        _sparse_roi_voxel_kernel,
        out_size=out_size,
        max_pts_per_voxel=int(max_pts_per_voxel),
        max_voxels=MV,
        mode=mode_i,
        rois_per_block=R,
        v_pad=Vp)

    out_shapes = (
        jax.ShapeDtypeStruct((N_pad, MV, C), pts_feature.dtype),
        jax.ShapeDtypeStruct((N_pad, 1, MV), jnp.int32),
    )

    cost = pl.CostEstimate(
        flops=int(NB * num_tiles * R * (2 * Vp * p_tile * 128 + 2 * Vp * p_tile * C)
                  + N_pad * 2 * MV * Vp * C),
        transcendentals=0,
        bytes_accessed=int(NB * num_tiles * p_tile * (3 * 4 + C * feat_bytes)
                           + N_pad * (MV * C * feat_bytes + MV * 4)
                           + N_pad * 8 * 4 + Vp * 128 * 4 + 128 * 128 * 4),
    )

    vmem_limit = int(min(VMEM_BUDGET,
                         max(32 * 1024 * 1024, 2 * _vmem_estimate(p_tile))))

    pooled_feat, vid_packed = pl.pallas_call(
        kernel,
        grid=(NB, num_tiles),
        in_specs=[
            pl.BlockSpec(memory_space=pltpu.MemorySpace.SMEM),       # rois table
            pl.BlockSpec((128, 128), lambda nb, t: (0, 0)),          # tri (resident)
            pl.BlockSpec((Vp, 128), lambda nb, t: (0, 0)),           # voxel iota (resident)
            pl.BlockSpec((3, p_tile), lambda nb, t: (0, t)),         # pts, coord-major
            pl.BlockSpec((p_tile, C), lambda nb, t: (t, 0)),         # pts_feature
        ],
        out_specs=[
            pl.BlockSpec((R, MV, C), lambda nb, t: (nb, 0, 0)),
            pl.BlockSpec((R, 1, MV), lambda nb, t: (nb, 0, 0)),
        ],
        out_shape=out_shapes,
        scratch_shapes=[
            pltpu.VMEM((R, Vp, C), jnp.float32),                     # per-voxel max / sum
            pltpu.VMEM((R, Vp, 1), jnp.float32),                     # per-voxel point counts
        ],
        compiler_params=pltpu.CompilerParams(
            dimension_semantics=("parallel", "arbitrary"),
            vmem_limit_bytes=vmem_limit),
        cost_estimate=cost,
    )(rois_tab, tri, viota, ptsT, feat)

    pooled_feat = pooled_feat[:N]
    # Decode the packed per-slot voxel id into (vx, vy, vz), -1 for empty slots.
    vid = vid_packed[:N, 0, :]                                     # (N, MV) int32
    oyz = oy * oz
    vx = vid // oyz
    rem = vid - vx * oyz
    vy = rem // oz
    vz = rem - vy * oz
    coors = jnp.stack([vx, vy, vz], axis=-1)
    pooled_coors = jnp.where(vid[..., None] >= 0, coors, -1).astype(jnp.int32)

    return pooled_feat, pooled_coors


class SparseROIVoxelization:
    """JAX/Pallas equivalent of the PyTorch SparseROIVoxelization module (forward)."""

    def __init__(self, out_size, max_pts_per_voxel=128, max_voxels=128, mode='max'):
        assert isinstance(out_size, list)
        assert mode in ('max', 'avg')
        self.out_size = out_size
        self.max_pts_per_voxel = max_pts_per_voxel
        self.max_voxels = max_voxels
        self.mode = mode

    def __call__(self, rois, pts, pts_feature):
        return sparse_roi_voxelization(
            rois, pts, pts_feature,
            out_size=self.out_size,
            max_pts_per_voxel=self.max_pts_per_voxel,
            max_voxels=self.max_voxels,
            mode=self.mode)


if __name__ == "__main__":
    key = jax.random.PRNGKey(0)
    k1, k2, k3, k4, k5 = jax.random.split(key, 5)

    N, P, C = 2, 128, 32
    out_size = [4, 4, 4]

    centers = jax.random.uniform(k1, (N, 3), minval=-1.0, maxval=1.0)
    sizes = jax.random.uniform(k2, (N, 3), minval=2.0, maxval=4.0)
    yaws = jax.random.uniform(k3, (N, 1), minval=-3.14, maxval=3.14)
    rois = jnp.concatenate([centers, sizes, yaws], axis=1)          # (N, 7)

    pts = jax.random.uniform(k4, (P, 3), minval=-3.0, maxval=3.0)    # (P, 3)
    pts_feature = jax.random.normal(k5, (P, C), dtype=jnp.float32)   # (P, C)

    # max-pool path
    module_max = SparseROIVoxelization(out_size, max_pts_per_voxel=8,
                                       max_voxels=16, mode='max')
    pooled_features, pooled_coors = module_max(rois, pts, pts_feature)
    jax.block_until_ready((pooled_features, pooled_coors))

    assert pooled_features.shape == (N, 16, C)
    assert pooled_features.dtype == pts_feature.dtype
    assert pooled_coors.shape == (N, 16, 3)
    assert pooled_coors.dtype == jnp.int32

    # avg-pool path
    module_avg = SparseROIVoxelization(out_size, max_pts_per_voxel=8,
                                       max_voxels=16, mode='avg')
    avg_features, avg_coors = module_avg(rois, pts, pts_feature)
    jax.block_until_ready((avg_features, avg_coors))

    assert avg_features.shape == (N, 16, C)
    assert avg_coors.shape == (N, 16, 3)

    print("KERNEL_OK")
</pallas_src>

<mosaic_0001>
module attributes {stable_mosaic.version = 11 : i64} {
  func.func @_sparse_roi_voxel_kernel(%arg0: i32, %arg1: i32, %arg2: memref<8x2xf32, #tpu.memory_space<smem>>, %arg3: memref<128x128xf32, #tpu.memory_space<vmem>>, %arg4: memref<64x128xi32, #tpu.memory_space<vmem>>, %arg5: memref<3x128xf32, #tpu.memory_space<vmem>>, %arg6: memref<128x32xf32, #tpu.memory_space<vmem>>, %arg7: memref<1x16x32xf32, #tpu.memory_space<vmem>>, %arg8: memref<1x1x16xi32, #tpu.memory_space<vmem>>, %arg9: memref<1x64x32xf32, #tpu.memory_space<vmem>>, %arg10: memref<1x64x1xf32, #tpu.memory_space<vmem>>) attributes {dimension_semantics = [#tpu.dimension_semantics<parallel>, #tpu.dimension_semantics<arbitrary>], iteration_bounds = array<i64: 2, 1>, scalar_prefetch = 0 : i64, scratch_operands = 2 : i64, tpu.core_type = #tpu.core_type<tc>, window_params = [{transform_indices = @transform_0, window_bounds = array<i64: 8, 2>}, {pipeline_mode = #tpu.pipeline_mode<synchronous>, transform_indices = @transform_1, window_bounds = array<i64: 128, 128>}, {pipeline_mode = #tpu.pipeline_mode<synchronous>, transform_indices = @transform_2, window_bounds = array<i64: 64, 128>}, {transform_indices = @transform_3, window_bounds = array<i64: 3, 128>}, {transform_indices = @transform_4, window_bounds = array<i64: 128, 32>}, {transform_indices = @transform_5, window_bounds = array<i64: 1, 16, 32>}, {transform_indices = @transform_6, window_bounds = array<i64: 1, 1, 16>}]} {
    %c0_i32 = arith.constant 0 : i32
    %0 = arith.cmpi eq, %arg1, %c0_i32 : i32
    %1 = arith.extui %0 : i1 to i32
    %c0_i32_0 = arith.constant 0 : i32
    %2 = arith.cmpi ne, %1, %c0_i32_0 : i32
    scf.if %2 {
      %cst_23 = arith.constant 0.000000e+00 : f32
      %78 = vector.broadcast %cst_23 : f32 to vector<1x64x1xf32>
      %c0_24 = arith.constant 0 : index
      %c0_25 = arith.constant 0 : index
      %c0_26 = arith.constant 0 : index
      %79 = vector.load %arg10[%c0_24, %c0_25, %c0_26] : memref<1x64x1xf32, #tpu.memory_space<vmem>>, vector<1x64x1xf32>
      tpu.vector_store %arg10[%c0_24, %c0_25, %c0_26], %78 {strides = array<i32>} : memref<1x64x1xf32, #tpu.memory_space<vmem>>, vector<1x64x1xf32>,
      %cst_27 = arith.constant -3.000000e+38 : f32
      %80 = vector.broadcast %cst_27 : f32 to vector<1x64x32xf32>
      %c0_28 = arith.constant 0 : index
      %c0_29 = arith.constant 0 : index
      %c0_30 = arith.constant 0 : index
      %81 = vector.load %arg9[%c0_28, %c0_29, %c0_30] : memref<1x64x32xf32, #tpu.memory_space<vmem>>, vector<1x64x32xf32>
      tpu.vector_store %arg9[%c0_28, %c0_29, %c0_30], %80 {strides = array<i32>} : memref<1x64x32xf32, #tpu.memory_space<vmem>>, vector<1x64x32xf32>,
    } else {
    }
    %c0 = arith.constant 0 : index
    %c0_1 = arith.constant 0 : index
    %3 = vector.load %arg5[%c0, %c0_1] : memref<3x128xf32, #tpu.memory_space<vmem>>, vector<1x128xf32>
    %c1 = arith.constant 1 : index
    %c0_2 = arith.constant 0 : index
    %4 = vector.load %arg5[%c1, %c0_2] : memref<3x128xf32, #tpu.memory_space<vmem>>, vector<1x128xf32>
    %c2 = arith.constant 2 : index
    %c0_3 = arith.constant 0 : index
    %5 = vector.load %arg5[%c2, %c0_3] : memref<3x128xf32, #tpu.memory_space<vmem>>, vector<1x128xf32>
    %c0_4 = arith.constant 0 : index
    %c0_5 = arith.constant 0 : index
    %6 = vector.load %arg3[%c0_4, %c0_5] : memref<128x128xf32, #tpu.memory_space<vmem>>, vector<128x128xf32>
    %c0_6 = arith.constant 0 : index
    %c0_7 = arith.constant 0 : index
    %7 = vector.load %arg4[%c0_6, %c0_7] : memref<64x128xi32, #tpu.memory_space<vmem>>, vector<64x128xi32>
    %c1_i32 = arith.constant 1 : i32
    %8 = arith.muli %arg0, %c1_i32 : i32
    %c0_i32_8 = arith.constant 0 : i32
    %9 = arith.addi %8, %c0_i32_8 : i32
    %c0_9 = arith.constant 0 : index
    %10 = arith.index_cast %9 : i32 to index
    %11 = memref.load %arg2[%c0_9, %10] : memref<8x2xf32, #tpu.memory_space<smem>>
    %c1_10 = arith.constant 1 : index
    %12 = arith.index_cast %9 : i32 to index
    %13 = memref.load %arg2[%c1_10, %12] : memref<8x2xf32, #tpu.memory_space<smem>>
    %c2_11 = arith.constant 2 : index
    %14 = arith.index_cast %9 : i32 to index
    %15 = memref.load %arg2[%c2_11, %14] : memref<8x2xf32, #tpu.memory_space<smem>>
    %c3 = arith.constant 3 : index
    %16 = arith.index_cast %9 : i32 to index
    %17 = memref.load %arg2[%c3, %16] : memref<8x2xf32, #tpu.memory_space<smem>>
    %c4 = arith.constant 4 : index
    %18 = arith.index_cast %9 : i32 to index
    %19 = memref.load %arg2[%c4, %18] : memref<8x2xf32, #tpu.memory_space<smem>>
    %c5 = arith.constant 5 : index
    %20 = arith.index_cast %9 : i32 to index
    %21 = memref.load %arg2[%c5, %20] : memref<8x2xf32, #tpu.memory_space<smem>>
    %c6 = arith.constant 6 : index
    %22 = arith.index_cast %9 : i32 to index
    %23 = memref.load %arg2[%c6, %22] : memref<8x2xf32, #tpu.memory_space<smem>>
    %c7 = arith.constant 7 : index
    %24 = arith.index_cast %9 : i32 to index
    %25 = memref.load %arg2[%c7, %24] : memref<8x2xf32, #tpu.memory_space<smem>>
    %cst = arith.constant 5.000000e-01 : f32
    %26 = arith.mulf %21, %cst : f32
    %27 = arith.addf %15, %26 : f32
    %28 = vector.broadcast %11 : f32 to vector<1x128xf32>
    %29 = arith.subf %3, %28 : vector<1x128xf32>
    %30 = vector.broadcast %13 : f32 to vector<1x128xf32>
    %31 = arith.subf %4, %30 : vector<1x128xf32>
    %32 = vector.broadcast %27 : f32 to vector<1x128xf32>
    %33 = arith.subf %5, %32 : vector<1x128xf32>
    %34 = vector.broadcast %23 : f32 to vector<1x128xf32>
    %35 = arith.mulf %29, %34 : vector<1x128xf32>
    %36 = vector.broadcast %25 : f32 to vector<1x128xf32>
    %37 = arith.mulf %31, %36 : vector<1x128xf32>
    %38 = arith.addf %35, %37 : vector<1x128xf32>
    %cst_12 = arith.constant 0.000000e+00 : f32
    %39 = vector.broadcast %cst_12 : f32 to vector<1x128xf32>
    %40 = arith.subf %39, %29 : vector<1x128xf32>
    %41 = vector.broadcast %25 : f32 to vector<1x128xf32>
    %42 = arith.mulf %40, %41 : vector<1x128xf32>
    %43 = vector.broadcast %23 : f32 to vector<1x128xf32>
    %44 = arith.mulf %31, %43 : vector<1x128xf32>
    %45 = arith.addf %42, %44 : vector<1x128xf32>
    %cst_13 = arith.constant 5.000000e-01 : f32
    %46 = arith.mulf %17, %cst_13 : f32
    %cst_14 = arith.constant 5.000000e-01 : f32
    %47 = arith.mulf %19, %cst_14 : f32
    %cst_15 = arith.constant 5.000000e-01 : f32
    %48 = arith.mulf %21, %cst_15 : f32
    %49 = math.absf %33 : vector<1x128xf32>
    %50 = vector.broadcast %48 : f32 to vector<1x128xf32>
    %51 = arith.cmpf ole, %49, %50 : vector<1x128xf32>
    %cst_16 = arith.constant 0.000000e+00 : f32
    %52 = arith.subf %cst_16, %46 : f32
    %53 = vector.broadcast %52 : f32 to vector<1x128xf32>
    %54 = arith.cmpf ogt, %38, %53 : vector<1x128xf32>
    %55 = arith.andi %51, %54 : vector<1x128xi1>
    %56 = vector.broadcast %46 : f32 to vector<1x128xf32>
    %57 = arith.cmpf olt, %38, %56 : vector<1x128xf32>
    %58 = arith.andi %55, %57 : vector<1x128xi1>
    %cst_17 = arith.constant 0.000000e+00 : f32
    %59 = arith.subf %cst_17, %47 : f32
    %60 = vector.broadcast %59 : f32 to vector<1x128xf32>
    %61 = arith.cmpf ogt, %45, %60 : vector<1x128xf32>
    %62 = arith.andi %58, %61 : vector<1x128xi1>
    %63 = vector.broadcast %47 : f32 to vector<1x128xf32>
    %64 = arith.cmpf olt, %45, %63 : vector<1x128xf32>
    %65 = arith.andi %62, %64 : vector<1x128xi1>
    %66 = arith.extui %65 : vector<1x128xi1> to vector<1x128xi32>
    %67 = arith.sitofp %66 : vector<1x128xi32> to vector<1x128xf32>
    %68 = vector.shape_cast %67 : vector<1x128xf32> to vector<1x1x128xf32>
    %cst_18 = arith.constant dense<0.000000e+00> : vector<1xf32>
    %69 = vector.multi_reduction <add>, %68, %cst_18 [1, 2] : vector<1x1x128xf32> to vector<1xf32>
    %70 = vector.shape_cast %69 : vector<1xf32> to vector<1x1x1xf32>
    %71 = vector.extract %70[0, 0, 0] : f32 from vector<1x1x1xf32>
    %cst_19 = arith.constant 0.000000e+00 : f32
    %72 = arith.cmpf ogt, %71, %cst_19 : f32
    %73 = arith.extui %72 : i1 to i32
    %c0_i32_20 = arith.constant 0 : i32
    %74 = arith.cmpi ne, %73, %c0_i32_20 : i32
    scf.if %74 {
      %78 = vector.broadcast %46 : f32 to vector<1x128xf32>
      %79 = arith.addf %38, %78 : vector<1x128xf32>
      %cst_23 = arith.constant 4.000000e+00 : f32
      %80 = arith.divf %cst_23, %17 : f32
      %81 = vector.broadcast %80 : f32 to vector<1x128xf32>
      %82 = arith.mulf %79, %81 : vector<1x128xf32>
      %83 = math.floor %82 : vector<1x128xf32>
      %84 = arith.fptosi %83 : vector<1x128xf32> to vector<1x128xi32>
      %c0_i32_24 = arith.constant 0 : i32
      %c3_i32 = arith.constant 3 : i32
      %85 = vector.broadcast %c0_i32_24 : i32 to vector<1x128xi32>
      %86 = arith.maxsi %85, %84 : vector<1x128xi32>
      %87 = vector.broadcast %c3_i32 : i32 to vector<1x128xi32>
      %88 = arith.minsi %87, %86 : vector<1x128xi32>
      %89 = vector.broadcast %47 : f32 to vector<1x128xf32>
      %90 = arith.addf %45, %89 : vector<1x128xf32>
      %cst_25 = arith.constant 4.000000e+00 : f32
      %91 = arith.divf %cst_25, %19 : f32
      %92 = vector.broadcast %91 : f32 to vector<1x128xf32>
      %93 = arith.mulf %90, %92 : vector<1x128xf32>
      %94 = math.floor %93 : vector<1x128xf32>
      %95 = arith.fptosi %94 : vector<1x128xf32> to vector<1x128xi32>
      %c0_i32_26 = arith.constant 0 : i32
      %c3_i32_27 = arith.constant 3 : i32
      %96 = vector.broadcast %c0_i32_26 : i32 to vector<1x128xi32>
      %97 = arith.maxsi %96, %95 : vector<1x128xi32>
      %98 = vector.broadcast %c3_i32_27 : i32 to vector<1x128xi32>
      %99 = arith.minsi %98, %97 : vector<1x128xi32>
      %100 = vector.broadcast %48 : f32 to vector<1x128xf32>
      %101 = arith.addf %33, %100 : vector<1x128xf32>
      %cst_28 = arith.constant 4.000000e+00 : f32
      %102 = arith.divf %cst_28, %21 : f32
      %103 = vector.broadcast %102 : f32 to vector<1x128xf32>
      %104 = arith.mulf %101, %103 : vector<1x128xf32>
      %105 = math.floor %104 : vector<1x128xf32>
      %106 = arith.fptosi %105 : vector<1x128xf32> to vector<1x128xi32>
      %c0_i32_29 = arith.constant 0 : i32
      %c3_i32_30 = arith.constant 3 : i32
      %107 = vector.broadcast %c0_i32_29 : i32 to vector<1x128xi32>
      %108 = arith.maxsi %107, %106 : vector<1x128xi32>
      %109 = vector.broadcast %c3_i32_30 : i32 to vector<1x128xi32>
      %110 = arith.minsi %109, %108 : vector<1x128xi32>
      %c16_i32 = arith.constant 16 : i32
      %111 = vector.broadcast %c16_i32 : i32 to vector<1x128xi32>
      %112 = arith.muli %88, %111 : vector<1x128xi32>
      %c4_i32 = arith.constant 4 : i32
      %113 = vector.broadcast %c4_i32 : i32 to vector<1x128xi32>
      %114 = arith.muli %99, %113 : vector<1x128xi32>
      %115 = arith.addi %112, %114 : vector<1x128xi32>
      %116 = arith.addi %115, %110 : vector<1x128xi32>
      %c0_31 = arith.constant 0 : index
      %c0_32 = arith.constant 0 : index
      %c0_33 = arith.constant 0 : index
      %117 = vector.load %arg10[%c0_31, %c0_32, %c0_33] : memref<1x64x1xf32, #tpu.memory_space<vmem>>, vector<1x64x1xf32>
      %118 = vector.shape_cast %117 : vector<1x64x1xf32> to vector<64x1xf32>
      %119 = vector.broadcast %116 : vector<1x128xi32> to vector<64x128xi32>
      %120 = arith.cmpi eq, %7, %119 : vector<64x128xi32>
      %121 = vector.broadcast %65 : vector<1x128xi1> to vector<64x128xi1>
      %122 = arith.andi %120, %121 : vector<64x128xi1>
      %123 = arith.extui %122 : vector<64x128xi1> to vector<64x128xi32>
      %124 = arith.sitofp %123 : vector<64x128xi32> to vector<64x128xf32>
      %cst_34 = arith.constant dense<0.000000e+00> : vector<64x128xf32>
      %125 = tpu.matmul %124, %6, %cst_34 {dimension_numbers = #tpu.dot_dimension_numbers<[1], [0], [0], [1], [0, 0, 1, 1], [], []>} : vector<64x128xf32>, vector<128x128xf32>, vector<64x128xf32> -> vector<64x128xf32>
      %126 = arith.subf %125, %124 : vector<64x128xf32>
      %127 = vector.broadcast %118 : vector<64x1xf32> to vector<64x128xf32>
      %128 = arith.addf %126, %127 : vector<64x128xf32>
      %129 = arith.mulf %124, %128 : vector<64x128xf32>
      %cst_35 = arith.constant dense<0.000000e+00> : vector<128xf32>
      %130 = vector.multi_reduction <add>, %129, %cst_35 [0] : vector<64x128xf32> to vector<128xf32>
      %131 = vector.shape_cast %130 : vector<128xf32> to vector<1x128xf32>
      %cst_36 = arith.constant 8.000000e+00 : f32
      %132 = vector.broadcast %cst_36 : f32 to vector<1x128xf32>
      %133 = arith.cmpf olt, %131, %132 : vector<1x128xf32>
      %134 = arith.andi %65, %133 : vector<1x128xi1>
      %cst_37 = arith.constant dense<0.000000e+00> : vector<64xf32>
      %135 = vector.multi_reduction <add>, %124, %cst_37 [1] : vector<64x128xf32> to vector<64xf32>
      %136 = vector.shape_cast %135 : vector<64xf32> to vector<64x1xf32>
      %137 = arith.addf %118, %136 : vector<64x1xf32>
      %c0_38 = arith.constant 0 : index
      %c0_39 = arith.constant 0 : index
      %c0_40 = arith.constant 0 : index
      %138 = vector.load %arg10[%c0_38, %c0_39, %c0_40] : memref<1x64x1xf32, #tpu.memory_space<vmem>>, vector<1x64x1xf32>
      %139 = vector.shape_cast %138 : vector<1x64x1xf32> to vector<64x1xf32>
      %140 = vector.shape_cast %137 : vector<64x1xf32> to vector<1x64x1xf32>
      tpu.vector_store %arg10[%c0_38, %c0_39, %c0_40], %140 {strides = array<i32>} : memref<1x64x1xf32, #tpu.memory_space<vmem>>, vector<1x64x1xf32>,
      %c0_41 = arith.constant 0 : index
      %c0_42 = arith.constant 0 : index
      %141 = vector.load %arg6[%c0_41, %c0_42] : memref<128x32xf32, #tpu.memory_space<vmem>>, vector<128x32xf32>
      %c-1_i32 = arith.constant -1 : i32
      %142 = vector.broadcast %c-1_i32 : i32 to vector<1x128xi32>
      %143 = arith.select %134, %116, %142 : vector<1x128xi1>, vector<1x128xi32>
      %144 = arith.sitofp %143 : vector<1x128xi32> to vector<1x128xf32>
      %145 = tpu.transpose %144, [1, 0] : vector<1x128xf32> -> vector<128x1xf32>
      %c0_i32_43 = arith.constant 0 : i32
      %c0_i32_44 = arith.constant 0 : i32
      %c8_i32 = arith.constant 8 : i32
      %146 = arith.addi %c0_i32_44, %c8_i32 : i32
      %c1_i32_45 = arith.constant 1 : i32
      scf.for %arg11 = %c0_i32_44 to %146 step %c1_i32_45  : i32 {
        %c8_i32_47 = arith.constant 8 : i32
        %147 = arith.muli %arg11, %c8_i32_47 : i32
        %148 = tpu.assume_multiple %147, 8 : i32
        %c0_i32_48 = arith.constant 0 : i32
        %149 = arith.addi %148, %c0_i32_48 : i32
        %150 = arith.sitofp %149 : i32 to f32
        %151 = vector.broadcast %150 : f32 to vector<128x1xf32>
        %152 = arith.cmpf oeq, %145, %151 : vector<128x1xf32>
        %cst_49 = arith.constant -3.000000e+38 : f32
        %153 = vector.shape_cast %152 : vector<128x1xi1> to vector<128x1xi1>
        %154 = vector.broadcast %153 : vector<128x1xi1> to vector<128x32xi1>
        %155 = vector.broadcast %cst_49 : f32 to vector<128x32xf32>
        %156 = arith.select %154, %141, %155 : vector<128x32xi1>, vector<128x32xf32>
        %cst_50 = arith.constant dense<0xFF800000> : vector<32xf32>
        %157 = vector.multi_reduction <maximumf>, %156, %cst_50 [0] : vector<128x32xf32> to vector<32xf32>
        %158 = vector.shape_cast %157 : vector<32xf32> to vector<1x32xf32>
        %c1_i32_51 = arith.constant 1 : i32
        %159 = arith.addi %148, %c1_i32_51 : i32
        %160 = arith.sitofp %159 : i32 to f32
        %161 = vector.broadcast %160 : f32 to vector<128x1xf32>
        %162 = arith.cmpf oeq, %145, %161 : vector<128x1xf32>
        %cst_52 = arith.constant -3.000000e+38 : f32
        %163 = vector.shape_cast %162 : vector<128x1xi1> to vector<128x1xi1>
        %164 = vector.broadcast %163 : vector<128x1xi1> to vector<128x32xi1>
        %165 = vector.broadcast %cst_52 : f32 to vector<128x32xf32>
        %166 = arith.select %164, %141, %165 : vector<128x32xi1>, vector<128x32xf32>
        %cst_53 = arith.constant dense<0xFF800000> : vector<32xf32>
        %167 = vector.multi_reduction <maximumf>, %166, %cst_53 [0] : vector<128x32xf32> to vector<32xf32>
        %168 = vector.shape_cast %167 : vector<32xf32> to vector<1x32xf32>
        %c2_i32 = arith.constant 2 : i32
        %169 = arith.addi %148, %c2_i32 : i32
        %170 = arith.sitofp %169 : i32 to f32
        %171 = vector.broadcast %170 : f32 to vector<128x1xf32>
        %172 = arith.cmpf oeq, %145, %171 : vector<128x1xf32>
        %cst_54 = arith.constant -3.000000e+38 : f32
        %173 = vector.shape_cast %172 : vector<128x1xi1> to vector<128x1xi1>
        %174 = vector.broadcast %173 : vector<128x1xi1> to vector<128x32xi1>
        %175 = vector.broadcast %cst_54 : f32 to vector<128x32xf32>
        %176 = arith.select %174, %141, %175 : vector<128x32xi1>, vector<128x32xf32>
        %cst_55 = arith.constant dense<0xFF800000> : vector<32xf32>
        %177 = vector.multi_reduction <maximumf>, %176, %cst_55 [0] : vector<128x32xf32> to vector<32xf32>
        %178 = vector.shape_cast %177 : vector<32xf32> to vector<1x32xf32>
        %c3_i32_56 = arith.constant 3 : i32
        %179 = arith.addi %148, %c3_i32_56 : i32
        %180 = arith.sitofp %179 : i32 to f32
        %181 = vector.broadcast %180 : f32 to vector<128x1xf32>
        %182 = arith.cmpf oeq, %145, %181 : vector<128x1xf32>
        %cst_57 = arith.constant -3.000000e+38 : f32
        %183 = vector.shape_cast %182 : vector<128x1xi1> to vector<128x1xi1>
        %184 = vector.broadcast %183 : vector<128x1xi1> to vector<128x32xi1>
        %185 = vector.broadcast %cst_57 : f32 to vector<128x32xf32>
        %186 = arith.select %184, %141, %185 : vector<128x32xi1>, vector<128x32xf32>
        %cst_58 = arith.constant dense<0xFF800000> : vector<32xf32>
        %187 = vector.multi_reduction <maximumf>, %186, %cst_58 [0] : vector<128x32xf32> to vector<32xf32>
        %188 = vector.shape_cast %187 : vector<32xf32> to vector<1x32xf32>
        %c4_i32_59 = arith.constant 4 : i32
        %189 = arith.addi %148, %c4_i32_59 : i32
        %190 = arith.sitofp %189 : i32 to f32
        %191 = vector.broadcast %190 : f32 to vector<128x1xf32>
        %192 = arith.cmpf oeq, %145, %191 : vector<128x1xf32>
        %cst_60 = arith.constant -3.000000e+38 : f32
        %193 = vector.shape_cast %192 : vector<128x1xi1> to vector<128x1xi1>
        %194 = vector.broadcast %193 : vector<128x1xi1> to vector<128x32xi1>
        %195 = vector.broadcast %cst_60 : f32 to vector<128x32xf32>
        %196 = arith.select %194, %141, %195 : vector<128x32xi1>, vector<128x32xf32>
        %cst_61 = arith.constant dense<0xFF800000> : vector<32xf32>
        %197 = vector.multi_reduction <maximumf>, %196, %cst_61 [0] : vector<128x32xf32> to vector<32xf32>
        %198 = vector.shape_cast %197 : vector<32xf32> to vector<1x32xf32>
        %c5_i32 = arith.constant 5 : i32
        %199 = arith.addi %148, %c5_i32 : i32
        %200 = arith.sitofp %199 : i32 to f32
        %201 = vector.broadcast %200 : f32 to vector<128x1xf32>
        %202 = arith.cmpf oeq, %145, %201 : vector<128x1xf32>
        %cst_62 = arith.constant -3.000000e+38 : f32
        %203 = vector.shape_cast %202 : vector<128x1xi1> to vector<128x1xi1>
        %204 = vector.broadcast %203 : vector<128x1xi1> to vector<128x32xi1>
        %205 = vector.broadcast %cst_62 : f32 to vector<128x32xf32>
        %206 = arith.select %204, %141, %205 : vector<128x32xi1>, vector<128x32xf32>
        %cst_63 = arith.constant dense<0xFF800000> : vector<32xf32>
        %207 = vector.multi_reduction <maximumf>, %206, %cst_63 [0] : vector<128x32xf32> to vector<32xf32>
        %208 = vector.shape_cast %207 : vector<32xf32> to vector<1x32xf32>
        %c6_i32 = arith.constant 6 : i32
        %209 = arith.addi %148, %c6_i32 : i32
        %210 = arith.sitofp %209 : i32 to f32
        %211 = vector.broadcast %210 : f32 to vector<128x1xf32>
        %212 = arith.cmpf oeq, %145, %211 : vector<128x1xf32>
        %cst_64 = arith.constant -3.000000e+38 : f32
        %213 = vector.shape_cast %212 : vector<128x1xi1> to vector<128x1xi1>
        %214 = vector.broadcast %213 : vector<128x1xi1> to vector<128x32xi1>
        %215 = vector.broadcast %cst_64 : f32 to vector<128x32xf32>
        %216 = arith.select %214, %141, %215 : vector<128x32xi1>, vector<128x32xf32>
        %cst_65 = arith.constant dense<0xFF800000> : vector<32xf32>
        %217 = vector.multi_reduction <maximumf>, %216, %cst_65 [0] : vector<128x32xf32> to vector<32xf32>
        %218 = vector.shape_cast %217 : vector<32xf32> to vector<1x32xf32>
        %c7_i32 = arith.constant 7 : i32
        %219 = arith.addi %148, %c7_i32 : i32
        %220 = arith.sitofp %219 : i32 to f32
        %221 = vector.broadcast %220 : f32 to vector<128x1xf32>
        %222 = arith.cmpf oeq, %145, %221 : vector<128x1xf32>
        %cst_66 = arith.constant -3.000000e+38 : f32
        %223 = vector.shape_cast %222 : vector<128x1xi1> to vector<128x1xi1>
        %224 = vector.broadcast %223 : vector<128x1xi1> to vector<128x32xi1>
        %225 = vector.broadcast %cst_66 : f32 to vector<128x32xf32>
        %226 = arith.select %224, %141, %225 : vector<128x32xi1>, vector<128x32xf32>
        %cst_67 = arith.constant dense<0xFF800000> : vector<32xf32>
        %227 = vector.multi_reduction <maximumf>, %226, %cst_67 [0] : vector<128x32xf32> to vector<32xf32>
        %228 = vector.shape_cast %227 : vector<32xf32> to vector<1x32xf32>
        %229 = tpu.concatenate %158, %168, %178, %188, %198, %208, %218, %228 in 0 : vector<1x32xf32>, vector<1x32xf32>, vector<1x32xf32>, vector<1x32xf32>, vector<1x32xf32>, vector<1x32xf32>, vector<1x32xf32>, vector<1x32xf32> -> vector<8x32xf32>
        %c0_i32_68 = arith.constant 0 : i32
        %c0_i32_69 = arith.constant 0 : i32
        %230 = tpu.memref_slice %arg9[%c0_i32_43, %c0_i32_68, %c0_i32_69] : memref<1x64x32xf32, #tpu.memory_space<vmem>> -> memref<1x64x32xf32, #tpu.memory_space<vmem>>
        %231 = tpu.memref_squeeze %230 : memref<1x64x32xf32, #tpu.memory_space<vmem>> -> memref<64x32xf32, #tpu.memory_space<vmem>>
        %232 = arith.index_cast %148 : i32 to index
        %c0_70 = arith.constant 0 : index
        %233 = vector.load %231[%232, %c0_70] : memref<64x32xf32, #tpu.memory_space<vmem>>, vector<8x32xf32>
        %234 = arith.maximumf %233, %229 : vector<8x32xf32>
        %c0_i32_71 = arith.constant 0 : i32
        %c0_i32_72 = arith.constant 0 : i32
        %235 = tpu.memref_slice %arg9[%c0_i32_43, %c0_i32_71, %c0_i32_72] : memref<1x64x32xf32, #tpu.memory_space<vmem>> -> memref<1x64x32xf32, #tpu.memory_space<vmem>>
        %236 = tpu.memref_squeeze %235 : memref<1x64x32xf32, #tpu.memory_space<vmem>> -> memref<64x32xf32, #tpu.memory_space<vmem>>
        %237 = arith.index_cast %148 : i32 to index
        %c0_73 = arith.constant 0 : index
        %238 = vector.load %236[%237, %c0_73] : memref<64x32xf32, #tpu.memory_space<vmem>>, vector<8x32xf32>
        tpu.vector_store %236[%237, %c0_73], %234 {strides = array<i32>} : memref<64x32xf32, #tpu.memory_space<vmem>>, vector<8x32xf32>,
      }
      %c8_i32_46 = arith.constant 8 : i32
    } else {
    }
    %c0_i32_21 = arith.constant 0 : i32
    %75 = arith.cmpi eq, %arg1, %c0_i32_21 : i32
    %76 = arith.extui %75 : i1 to i32
    %c0_i32_22 = arith.constant 0 : i32
    %77 = arith.cmpi ne, %76, %c0_i32_22 : i32
    scf.if %77 {
      %c0_23 = arith.constant 0 : index
      %c0_24 = arith.constant 0 : index
      %c0_25 = arith.constant 0 : index
      %78 = vector.load %arg10[%c0_23, %c0_24, %c0_25] : memref<1x64x1xf32, #tpu.memory_space<vmem>>, vector<1x64x1xf32>
      %79 = vector.shape_cast %78 : vector<1x64x1xf32> to vector<64x1xf32>
      %cst_26 = arith.constant 0.000000e+00 : f32
      %80 = vector.broadcast %cst_26 : f32 to vector<64x1xf32>
      %81 = arith.cmpf ogt, %79, %80 : vector<64x1xf32>
      %c0_27 = arith.constant 0 : index
      %c0_28 = arith.constant 0 : index
      %c0_29 = arith.constant 0 : index
      %82 = vector.load %arg9[%c0_27, %c0_28, %c0_29] : memref<1x64x32xf32, #tpu.memory_space<vmem>>, vector<1x64x32xf32>
      %83 = vector.shape_cast %82 : vector<1x64x32xf32> to vector<64x32xf32>
      %cst_30 = arith.constant 0.000000e+00 : f32
      %84 = vector.shape_cast %81 : vector<64x1xi1> to vector<64x1xi1>
      %85 = vector.broadcast %84 : vector<64x1xi1> to vector<64x32xi1>
      %86 = vector.broadcast %cst_30 : f32 to vector<64x32xf32>
      %87 = arith.select %85, %83, %86 : vector<64x32xi1>, vector<64x32xf32>
      %88 = arith.extui %81 : vector<64x1xi1> to vector<64x1xi32>
      %89 = arith.sitofp %88 : vector<64x1xi32> to vector<64x1xf32>
      %90 = tpu.transpose %89, [1, 0] : vector<64x1xf32> -> vector<1x64xf32>
      %91 = vector.shape_cast %90 : vector<1x64xf32> to vector<1x64xf32>
      %92 = vector.broadcast %91 : vector<1x64xf32> to vector<8x64xf32>
      %cst_31 = arith.constant 0.000000e+00 : f32
      %93 = vector.broadcast %cst_31 : f32 to vector<8x1xf32>
      %94 = vector.extract_strided_slice %6 {offsets = [0, 0], sizes = [64, 64], strides = [1, 1]} : vector<128x128xf32> to vector<64x64xf32>
      %cst_32 = arith.constant dense<0.000000e+00> : vector<8x64xf32>
      %95 = tpu.matmul %92, %94, %cst_32 {dimension_numbers = #tpu.dot_dimension_numbers<[1], [0], [0], [1], [0, 0, 1, 1], [], []>} : vector<8x64xf32>, vector<64x64xf32>, vector<8x64xf32> -> vector<8x64xf32>
      %96 = vector.broadcast %93 : vector<8x1xf32> to vector<8x64xf32>
      %97 = arith.addf %95, %96 : vector<8x64xf32>
      %98 = vector.extract_strided_slice %97 {offsets = [0, 0], sizes = [1, 64], strides = [1, 1]} : vector<8x64xf32> to vector<1x64xf32>
      %99 = arith.fptosi %98 : vector<1x64xf32> to vector<1x64xi32>
      %c1_i32_33 = arith.constant 1 : i32
      %100 = vector.broadcast %c1_i32_33 : i32 to vector<1x64xi32>
      %101 = arith.subi %99, %100 : vector<1x64xi32>
      %cst_34 = arith.constant 0.000000e+00 : f32
      %102 = vector.broadcast %cst_34 : f32 to vector<1x64xf32>
      %103 = arith.cmpf ogt, %90, %102 : vector<1x64xf32>
      %c16_i32 = arith.constant 16 : i32
      %104 = vector.broadcast %c16_i32 : i32 to vector<1x64xi32>
      %105 = arith.cmpi slt, %101, %104 : vector<1x64xi32>
      %106 = arith.andi %103, %105 : vector<1x64xi1>
      %107 = tpu.iota {dimensions = array<i32: 0>} : vector<16x64xi32>
      %108 = tpu.iota {dimensions = array<i32: 1>} : vector<16x64xi32>
      %109 = vector.broadcast %101 : vector<1x64xi32> to vector<16x64xi32>
      %110 = arith.cmpi eq, %107, %109 : vector<16x64xi32>
      %111 = vector.broadcast %106 : vector<1x64xi1> to vector<16x64xi1>
      %112 = arith.andi %110, %111 : vector<16x64xi1>
      %113 = arith.extui %112 : vector<16x64xi1> to vector<16x64xi32>
      %114 = arith.sitofp %113 : vector<16x64xi32> to vector<16x64xf32>
      %cst_35 = arith.constant dense<0.000000e+00> : vector<16x32xf32>
      %115 = tpu.matmul %114, %87, %cst_35 {dimension_numbers = #tpu.dot_dimension_numbers<[1], [0], [0], [1], [0, 0, 1, 1], [], []>} : vector<16x64xf32>, vector<64x32xf32>, vector<16x32xf32> -> vector<16x32xf32>
      %c0_36 = arith.constant 0 : index
      %c0_37 = arith.constant 0 : index
      %c0_38 = arith.constant 0 : index
      %116 = vector.load %arg7[%c0_36, %c0_37, %c0_38] : memref<1x16x32xf32, #tpu.memory_space<vmem>>, vector<1x16x32xf32>
      %117 = vector.shape_cast %116 : vector<1x16x32xf32> to vector<16x32xf32>
      %118 = vector.shape_cast %115 : vector<16x32xf32> to vector<1x16x32xf32>
      tpu.vector_store %arg7[%c0_36, %c0_37, %c0_38], %118 {strides = array<i32>} : memref<1x16x32xf32, #tpu.memory_space<vmem>>, vector<1x16x32xf32>,
      %c0_i32_39 = arith.constant 0 : i32
      %119 = vector.broadcast %c0_i32_39 : i32 to vector<16x64xi32>
      %120 = arith.select %112, %108, %119 : vector<16x64xi1>, vector<16x64xi32>
      %cst_40 = arith.constant dense<0> : vector<16xi32>
      %121 = vector.multi_reduction <add>, %120, %cst_40 [1] : vector<16x64xi32> to vector<16xi32>
      %122 = vector.shape_cast %121 : vector<16xi32> to vector<16x1xi32>
      %123 = arith.extui %112 : vector<16x64xi1> to vector<16x64xi32>
      %cst_41 = arith.constant dense<0> : vector<16xi32>
      %124 = vector.multi_reduction <add>, %123, %cst_41 [1] : vector<16x64xi32> to vector<16xi32>
      %125 = vector.shape_cast %124 : vector<16xi32> to vector<16x1xi32>
      %c0_i32_42 = arith.constant 0 : i32
      %126 = vector.broadcast %c0_i32_42 : i32 to vector<16x1xi32>
      %127 = arith.cmpi sgt, %125, %126 : vector<16x1xi32>
      %c-1_i32 = arith.constant -1 : i32
      %128 = vector.broadcast %c-1_i32 : i32 to vector<16x1xi32>
      %129 = arith.select %127, %122, %128 : vector<16x1xi1>, vector<16x1xi32>
      %130 = tpu.transpose %129, [1, 0] : vector<16x1xi32> -> vector<1x16xi32>
      %c0_43 = arith.constant 0 : index
      %c0_44 = arith.constant 0 : index
      %c0_45 = arith.constant 0 : index
      %131 = vector.load %arg8[%c0_43, %c0_44, %c0_45] : memref<1x1x16xi32, #tpu.memory_space<vmem>>, vector<1x1x16xi32>
      %132 = vector.shape_cast %131 : vector<1x1x16xi32> to vector<1x16xi32>
      %133 = vector.shape_cast %130 : vector<1x16xi32> to vector<1x1x16xi32>
      tpu.vector_store %arg8[%c0_43, %c0_44, %c0_45], %133 {strides = array<i32>} : memref<1x1x16xi32, #tpu.memory_space<vmem>>, vector<1x1x16xi32>,
    } else {
    }
    return
  }
  func.func @transform_0(%arg0: i32, %arg1: i32) -> (i32, i32) {
    %c0_i32 = arith.constant 0 : i32
    %c0_i32_0 = arith.constant 0 : i32
    %c0_i32_1 = arith.constant 0 : i32
    return %c0_i32, %c0_i32_0 : i32, i32
  }
  func.func @transform_1(%arg0: i32, %arg1: i32) -> (i32, i32) {
    %c0_i32 = arith.constant 0 : i32
    %c0_i32_0 = arith.constant 0 : i32
    %c0_i32_1 = arith.constant 0 : i32
    return %c0_i32, %c0_i32_0 : i32, i32
  }
  func.func @transform_2(%arg0: i32, %arg1: i32) -> (i32, i32) {
    %c0_i32 = arith.constant 0 : i32
    %c0_i32_0 = arith.constant 0 : i32
    %c0_i32_1 = arith.constant 0 : i32
    return %c0_i32, %c0_i32_0 : i32, i32
  }
  func.func @transform_3(%arg0: i32, %arg1: i32) -> (i32, i32) {
    %c0_i32 = arith.constant 0 : i32
    %c0_i32_0 = arith.constant 0 : i32
    return %c0_i32, %arg1 : i32, i32
  }
  func.func @transform_4(%arg0: i32, %arg1: i32) -> (i32, i32) {
    %c0_i32 = arith.constant 0 : i32
    %c0_i32_0 = arith.constant 0 : i32
    return %arg1, %c0_i32 : i32, i32
  }
  func.func @transform_5(%arg0: i32, %arg1: i32) -> (i32, i32, i32) {
    %c0_i32 = arith.constant 0 : i32
    %c0_i32_0 = arith.constant 0 : i32
    %c0_i32_1 = arith.constant 0 : i32
    return %arg0, %c0_i32, %c0_i32_0 : i32, i32, i32
  }
  func.func @transform_6(%arg0: i32, %arg1: i32) -> (i32, i32, i32) {
    %c0_i32 = arith.constant 0 : i32
    %c0_i32_0 = arith.constant 0 : i32
    %c0_i32_1 = arith.constant 0 : i32
    return %arg0, %c0_i32, %c0_i32_0 : i32, i32, i32
  }
}

</mosaic_0001>

<bundles_post_ra>
// kernel: tpu_custom_call.1
= control target key start
LH: loop header
LB: loop body
LE: loop exit
PB: predicated region body
PF: predicated region fallthrough
CT: control target
= control target key end

     0   :  { %s4844_s0 = inlined_call_operand.vmem [shape: f32[8,2], index: 0, kind: input, shape index: {}]   ;;  %s4845_s1 = inlined_call_operand.vmem [shape: f32[128,128], index: 1, kind: input, shape index: {}]   ;;  %s4846_s2 = inlined_call_operand.hbm [shape: s32[64,128], index: 2, kind: input, shape index: {}]   ;;  %s4847_s3 = inlined_call_operand.vmem [shape: f32[3,128], index: 3, kind: input, shape index: {}]   ;;  %s4848_s4 = inlined_call_operand.vmem [shape: f32[128,32], index: 4, kind: input, shape index: {}]   ;;  %s4849_s5 = inlined_call_operand.hbm [shape: f32[2,16,32], index: 5, kind: output, shape index: {0}]   ;;  %s4850_s6 = inlined_call_operand.hbm [shape: s32[2,1,16], index: 6, kind: output, shape index: {1}]  }
   0x1   :  { %4896 = sst [smem:[#allocation49_spill]] %s4844_s0 }
   0x2   :  { %4897 = sst [smem:[#allocation50_spill]] %s4845_s1 }
   0x3   :  { %4898 = sst [smem:[#allocation51_spill]] %s4846_s2 }
   0x4   :  { %12 = vsyncpa [#allocation7], 0 }
   0x5   :  { %13 = vsyncpa [#allocation5], 0 }
   0x6   :  { %14 = vsyncpa [#allocation6], 0 }
   0x7   :  { %16 = vsyncpa [#allocation6 + $0x1], 0 }
   0x8   :  { %17 = vsyncpa [#allocation11], 0 }
   0x9   :  { %19 = vsyncpa [#allocation11 + $0x1], 0  ;;  %s3270_s21 = smov 0   ;;  %s3272_s22 = smov 0  }
   0xa   :  { %s3274_s23 = smov 0   ;;  %s3276_s24 = smov 0  }
   0xb   :  { %s3278_s25 = smov 0   ;;  %s3280_s26 = smov 0  }
   0xc LB: > { %4899 = sst [smem:[#allocation16_spill]] %s3196_s22  ;;  %s2629_s27 = sadd.s32 4294967295, %s3212_s26   ;;  %s3212_s26 = sphi %s3280_s26, %s25_s26   ;;  %s3208_s25 = sphi %s3278_s25, %s4998_s25   ;;  %s3204_s24 = sphi %s3276_s24, %s4997_s24   ;;  %s3200_s23 = sphi %s3274_s23, %s4996_s23   ;;  %s3196_s22 = sphi %s3272_s22, %s4995_s22   ;;  %s3192_s21 = sphi %s3270_s21, %s4994_s21  }
   0xd   : > { %4900 = sst [smem:[#allocation17_spill]] %s3200_s23  ;;  %s2630_s28 = sadd.s32 4294967294, %s3212_s26  }
   0xe   : > { %4901 = sst [smem:[#allocation18_spill]] %s3208_s25  ;;  %s37_s29 = sadd.s32 1, %s3208_s25 }
   0xf   : > { %s159_s30 = sadd.s32 1, %s3200_s23  ;;  %p39_p0 = scmp.ge.s32.totalorder %s37_s29, 2 }
  0x10   : > { %p169_p1 = scmp.ne.s32.totalorder %s3200_s23, %s3196_s22  ;;  %p170_p2 = scmp.eq.s32.totalorder %s2629_s27, 1 }
  0x11   : > { %p175_p3 = scmp.ne.s32.totalorder %s3196_s22, %s3192_s21  ;;  %s5000_s29 = smov (%p39_p0, %s37_s29), 0 }
  0x12   : > { %4902 = sst [smem:[#allocation19_spill]] %s5000_s29  ;;  %p3310_p4 = por %p170_p2, %p169_p1 }
  0x13   : > { %p176_p5 = scmp.eq.s32.totalorder %s2630_s28, 1  ;;  %s156_s8 = ssub.s32 %s3208_s25, %s5000_s29 }
  0x14   : > { %s4903_s7 = scalar_select %p3310_p4, 1, 0 }
  0x15   : > { %p2631_p6 = scmp.ge.s32.totalorder %s3212_s26, 1  ;;  %p157_p7 = scmp.eq.s32.totalorder %s156_s8, 0 }
  0x16   : > { %p3317_p8 = por %p176_p5, %p175_p3  ;;  %p209_p9 = scmp.lt.s32.totalorder %s3212_s26, 3 }
  0x17   : > { %s3323_s10 = scalar_select %p157_p7, %s3200_s23, %s159_s30  }
  0x18   : > { %s4904_s9 = scalar_select %p3317_p8, 1, 0 }
  0x19   : > { %4905 = sst [smem:[#allocation20_spill]] %s3323_s10  ;;  %p3325_p10 = pnand %p2631_p6, %p209_p9 }
  0x1a   : > { %p3329_p11 = scmp.eq.s32.totalorder %s2629_s27, 0  ;;  %s4908_s0 = sld [smem:[#allocation49_spill]] }
  0x1b   : > { %p2945_p12 = pneg %p3325_p10  ;;  %s3218_s17 = smov [#allocation8]  }
  0x1c   : > { %s235_s18 = sshll.u32 %s3218_s17, 4  ;;  %s3344_s18 = int_to_ptr.vmem [resolvable:$true] %s235_s18 }
  0x1d   : > { %p3340_p13 = pnand %p3329_p11, %p2945_p12 }
  0x1f   : > { %p3049_p1 = pneg %p3340_p13 }
  0x20   : > { %s222_s15 = sshll.u32 %s4908_s0, 4  ;;  %s223_s15 = int_to_ptr.vmem [resolvable:$true] %s222_s15 }
  0x21   : > { %s3047_s19 = scalar_lea.vmem %s223_s15, 128  ;;  %p3055_p5 = scmp.lt.s32.totalorder %s223_s15, %s223_s15 }
  0x22   : > { %p3048_p0 = scmp.ne.s32.totalorder %s223_s15, %s3047_s19  ;;  %p3056_p6 = scmp.lt.s32.totalorder %s3047_s19, %s3047_s19 }
  0x24   : > { %p3050_p2 = pnand %p3049_p1, %p3048_p0  ;;  %p3057_p7 = por %p3056_p6, %p3055_p5 }
  0x26   : > { %p3051_p3 = pneg %p3050_p2 }
  0x28   : > { %p3058_p9 = pnand %p3057_p7, %p3051_p3 }
  0x2a   : > { %3061 = shalt.err (!%p3058_p9)
}
  0x2b   : > { %s3219_s20 = smov [#allocation4]   ;;  %s4910_s2 = sld [smem:[#allocation51_spill]] }
  0x2c   : > { %2948 = dma.vmem_to_smem (!%p3340_p13), %s223_s15, 128, %s3219_s20, [#allocation7]  }
  0x31   : > { %s3062_s30 = scalar_lea.hbm %s4910_s2, 1024 }
  0x32   : > { %p3063_p12 = scmp.ne.s32.totalorder %s4910_s2, %s3062_s30  ;;  %p3069_p3 = scmp.lt.u32.totalorder %s3062_s30, %s4910_s2 }
  0x34   : > { %p3065_p0 = pnand %p3063_p12, %p3049_p1 }
  0x36   : > { %p3066_p2 = pneg %p3065_p0 }
  0x38   : > { %p3071_p5 = pnand %p3069_p3, %p3066_p2 }
  0x3a   : > { %3074 = shalt.err (!%p3071_p5)
}
  0x3b   : > { %s3075_s15 = scalar_lea.vmem %s3344_s18, 1024  ;;  %p3083_p8 = scmp.lt.s32.totalorder %s3344_s18, %s3344_s18 }
  0x3c   : > { %p3076_p6 = scmp.ne.s32.totalorder %s3344_s18, %s3075_s15  ;;  %p3084_p12 = scmp.lt.s32.totalorder %s3075_s15, %s3075_s15 }
  0x3e   : > { %p3078_p7 = pnand %p3076_p6, %p3049_p1  ;;  %p3085_p0 = por %p3084_p12, %p3083_p8 }
  0x40   : > { %p3079_p9 = pneg %p3078_p7 }
  0x42   : > { %p3086_p4 = pnand %p3085_p0, %p3079_p9 }
  0x44   : > { %3089 = shalt.err (!%p3086_p4)
}
  0x45   : > { %s3220_s19 = smov 128   ;;  %s3221_s20 = smov 8  }
  0x46   : > { %2951 = dma.hbm_to_vmem [thread:$0]  (!%p3340_p13), %s4910_s2, 1024, %s3344_s18, [#allocation5], %s3220_s19, %s3220_s19, %s3221_s20  }
  0x47   : > { %267 = sbr.rel (%p3325_p10) target bundleno = 1937 (0x791), region = 40 }
  0x4e   : > { %3175 = dma.done.wait (%p3329_p11), [#allocation7], 128  }
  0x4f   : > { %3177 = vsyncadd (%p3329_p11), [#allocation7], 4294967168 }
  0x50   : > { %3179 = dma.done.wait (%p3329_p11), [#allocation5], 1024  }
  0x51   : > { %3181 = vsyncadd (%p3329_p11), [#allocation5], 4294966272 }
  0x52   : > { %277 = sfence }
  0x53   : > { %s3389_s16 = sand.u32 1, %s3196_s22   ;;  %vm324_vm0 = vcmask 7168   ;;  %vm333_vm1 = vcmask 261120   ;;  %v4856_v0 = vmov 0.0   ;;  %v3223_v1 = vmov -3e+38  }
  0x54   : > { %325 = vst.msk [vmem:[#allocation3] sm:$0xff] %vm324_vm0, %v4856_v0  ;;  %326 = vst.msk [vmem:[#allocation3 + $0x8] sm:$0xff] %vm324_vm0, %v4856_v0  ;;  %s4911_s1 = sld [smem:[#allocation50_spill]]  ;;  %s370_s28 = sshra.s32 %s3204_s24, 7  ;;  %v3509_v18 = vld [vmem:[#allocation8] sm:$0xff]  ;;  %v3515_v19 = vld [vmem:[#allocation8 + $0x8] sm:$0xff] }
  0x55   : > { %327 = vst.msk [vmem:[#allocation3 + $0x10] sm:$0xff] %vm324_vm0, %v4856_v0  ;;  %328 = vst.msk [vmem:[#allocation3 + $0x18] sm:$0xff] %vm324_vm0, %v4856_v0  ;;  %s3442_s27 = sld [smem:[#allocation4 + %s3204_s24]]  ;;  %s3460_s17 = sshll.u32 %s370_s28, 7  ;;  %v3517_v20 = vld [vmem:[#allocation8 + $0x10] sm:$0xff]  ;;  %v3519_v21 = vld [vmem:[#allocation8 + $0x18] sm:$0xff] }
  0x56   : > { %329 = vst.msk [vmem:[#allocation3 + $0x20] sm:$0xff] %vm324_vm0, %v4856_v0  ;;  %330 = vst.msk [vmem:[#allocation3 + $0x28] sm:$0xff] %vm324_vm0, %v4856_v0  ;;  %s3463_s15 = sand.u32 127, %s3204_s24  ;;  %s2694_s28 = sadd.s32 128, %s3460_s17  ;;  %v3523_v22 = vld [vmem:[#allocation8 + $0x20] sm:$0xff]  ;;  %v3525_v23 = vld [vmem:[#allocation8 + $0x28] sm:$0xff] }
  0x57   : > { %331 = vst.msk [vmem:[#allocation3 + $0x30] sm:$0xff] %vm324_vm0, %v4856_v0  ;;  %332 = vst.msk [vmem:[#allocation3 + $0x38] sm:$0xff] %vm324_vm0, %v4856_v0  ;;  %s2696_s13 = sadd.s32 256, %s3460_s17  ;;  %s376_s30 = sadd.s32 %s2694_s28, %s3463_s15  ;;  %v3527_v24 = vld [vmem:[#allocation8 + $0x30] sm:$0xff]  ;;  %v3531_v25 = vld [vmem:[#allocation8 + $0x38] sm:$0xff]  ;;  %vm440_vm10 = vcmask 1040384  }
  0x58   : > { %334 = vst.msk [vmem:[#allocation2] sm:$0xff] %vm333_vm1, %v3223_v1  ;;  %335 = vst.msk [vmem:[#allocation2 + $0x8] sm:$0xff] %vm333_vm1, %v3223_v1  ;;  %s380_s8 = sadd.s32 %s2696_s13, %s3463_s15  ;;  %s3511_s11 = sld [smem:[#allocation4 + %s376_s30]]  ;;  %v342_v26 = vld [vmem:[%s4847_s3] sm:$0x1]  ;;  %v4858_v51 = vmov 0  }
  0x59   : > { %336 = vst.msk [vmem:[#allocation2 + $0x10] sm:$0xff] %vm333_vm1, %v3223_v1  ;;  %337 = vst.msk [vmem:[#allocation2 + $0x18] sm:$0xff] %vm333_vm1, %v3223_v1  ;;  %s3513_s20 = sld [smem:[#allocation4 + %s380_s8]]  ;;  %s2698_s0 = sadd.s32 384, %s3460_s17  ;;  %v343_v29 = vld [vmem:[%s4847_s3 + $0x1] sm:$0x1] }
  0x5a   : > { %338 = vst.msk [vmem:[#allocation2 + $0x20] sm:$0xff] %vm333_vm1, %v3223_v1  ;;  %339 = vst.msk [vmem:[#allocation2 + $0x28] sm:$0xff] %vm333_vm1, %v3223_v1  ;;  %v3419_v2 = vld [vmem:[%s4911_s1] sm:$0xff]  ;;  %v3424_v3 = vld [vmem:[%s4911_s1 + $0x8] sm:$0xff]  ;;  %s2700_s2 = sadd.s32 512, %s3460_s17  ;;  %s384_s28 = sadd.s32 %s2698_s0, %s3463_s15 }
  0x5b   : > { %340 = vst.msk [vmem:[#allocation2 + $0x30] sm:$0xff] %vm333_vm1, %v3223_v1  ;;  %341 = vst.msk [vmem:[#allocation2 + $0x38] sm:$0xff] %vm333_vm1, %v3223_v1  ;;  %v3429_v4 = vld [vmem:[%s4911_s1 + $0x10] sm:$0xff]  ;;  %v3434_v5 = vld [vmem:[%s4911_s1 + $0x18] sm:$0xff]  ;;  %s388_s13 = sadd.s32 %s2700_s2, %s3463_s15  ;;  %s3533_s12 = sld [smem:[#allocation4 + %s384_s28]]  ;;  %v404_v27 = vstv %s3442_s27 }
  0x5c   : > { %4912 = vst [vmem:[#allocation21_spill] sm:$0xff] %v3419_v2  ;;  %4913 = vst [vmem:[#allocation22_spill] sm:$0xff] %v3424_v3  ;;  %v3439_v6 = vld [vmem:[%s4911_s1 + $0x20] sm:$0xff]  ;;  %v3448_v7 = vld [vmem:[%s4911_s1 + $0x28] sm:$0xff]  ;;  %s3535_s18 = sld [smem:[#allocation4 + %s388_s13]]  ;;  %s2702_s30 = sadd.s32 640, %s3460_s17  ;;  %v405_v28 = vsub.f32 %v342_v26, %v404_v27 }
  0x5d   : > { %4914 = vst [vmem:[#allocation23_spill] sm:$0xff] %v3429_v4  ;;  %4915 = vst [vmem:[#allocation24_spill] sm:$0xff] %v3434_v5  ;;  %v3453_v8 = vld [vmem:[%s4911_s1 + $0x30] sm:$0xff]  ;;  %v3458_v9 = vld [vmem:[%s4911_s1 + $0x38] sm:$0xff]  ;;  %s2704_s8 = sadd.s32 768, %s3460_s17  ;;  %s2706_s28 = sadd.s32 896, %s3460_s17 }
  0x5e   : > { %4916 = vst [vmem:[#allocation25_spill] sm:$0xff] %v3439_v6  ;;  %4917 = vst [vmem:[#allocation26_spill] sm:$0xff] %v3448_v7  ;;  %v3468_v10 = vld [vmem:[%s4911_s1 + $0x40] sm:$0xff]  ;;  %v3473_v11 = vld [vmem:[%s4911_s1 + $0x48] sm:$0xff]  ;;  %s396_s29 = sadd.s32 %s2704_s8, %s3463_s15  ;;  %s400_s25 = sadd.s32 %s2706_s28, %s3463_s15  ;;  %v406_v30 = vstv %s3511_s11  ;;  %v415_v33 = vsub.f32 0.0, %v405_v28 }
  0x5f   : > { %4918 = vst [vmem:[#allocation27_spill] sm:$0xff] %v3453_v8  ;;  %4919 = vst [vmem:[#allocation28_spill] sm:$0xff] %v3458_v9  ;;  %v3478_v12 = vld [vmem:[%s4911_s1 + $0x50] sm:$0xff]  ;;  %v3485_v13 = vld [vmem:[%s4911_s1 + $0x58] sm:$0xff]  ;;  %s397_s2 = sld [smem:[#allocation4 + %s396_s29]]  ;;  %v407_v31 = vsub.f32 %v343_v29, %v406_v30  ;;  %s309_s10 = scalar_lea.vmem [#allocation10], %s3389_s16 }
  0x60   : > { %v3490_v14 = vld [vmem:[%s4911_s1 + $0x60] sm:$0xff]  ;;  %v3495_v15 = vld [vmem:[%s4911_s1 + $0x68] sm:$0xff]  ;;  %v3502_v16 = vld [vmem:[%s4911_s1 + $0x70] sm:$0xff]  ;;  %s401_s23 = sld [smem:[#allocation4 + %s400_s25]] }
  0x61   : > { %v3507_v17 = vld [vmem:[%s4911_s1 + $0x78] sm:$0xff]  ;;  %s392_s1 = sadd.s32 %s2702_s30, %s3463_s15  ;;  %s419_s22 = smul.f32 0.5, %s3533_s12  ;;  %v344_v34 = vld [vmem:[%s4847_s3 + $0x2] sm:$0x1] }
  0x62   : > { %s3545_s0 = sld [smem:[#allocation4 + %s392_s1]]  ;;  %s420_s14 = smul.f32 0.5, %s3535_s18 }
  0x63   : > { %s424_s1 = ssub.f32 0.0, %s419_s22  ;;  %v3562_v43 = vstv %s419_s22 }
  0x64   : > { %s431_s27 = ssub.f32 0.0, %s420_s14  ;;  %v3571_v49 = vstv %s420_s14 }
  0x65   : > { %v410_v32 = vstv %s397_s2  ;;  %v425_v42 = vstv %s424_s1 }
  0x66   : > { %v411_v35 = vmul.f32 %v410_v32, %v405_v28  ;;  %v417_v36 = vmul.f32 %v410_v32, %v407_v31  ;;  %v412_v37 = vstv %s401_s23  ;;  %v432_v47 = vstv %s431_s27  ;;  %s4922_s23 = sshll.u32 %s3389_s16, 4 }
  0x67   : > { %v413_v39 = vmul.f32 %v412_v37, %v407_v31  ;;  %v416_v40 = vmul.f32 %v415_v33, %v412_v37  ;;  %s3595_s25 = scalar_lea.vmem [#allocation9], %s4922_s23 }
  0x68   : > { %s402_s19 = smul.f32 0.5, %s3545_s0 }
  0x69   : > { %v3564_v44 = vadd.f32 %v413_v39, %v411_v35  ;;  %v3566_v45 = vadd.f32 %v417_v36, %v416_v40 }
  0x6a   : > { %s403_s17 = sadd.f32 %s402_s19, %s3513_s20  ;;  %v3568_v46 = vstv %s402_s19 }
  0x6b   : > { %vm426_vm2 = vcmp.gt.f32.partialorder %v3564_v44, %v425_v42  ;;  %vm429_vm3 = vcmp.lt.f32.partialorder %v3564_v44, %v3562_v43  ;;  %vm433_vm5 = vcmp.gt.f32.partialorder %v3566_v45, %v432_v47  ;;  %vm436_vm7 = vcmp.lt.f32.partialorder %v3566_v45, %v3571_v49 }
  0x6c   : > { %v408_v38 = vstv %s403_s17 }
  0x6d   : > { %v3560_v41 = vsub.f32 %v344_v34, %v408_v38 }
  0x6f   : > { %v421_v48 = vand.u32 2147483647, %v3560_v41 }
  0x71   : > { %vm423_vm4 = vcmp.le.f32.partialorder %v421_v48, %v3568_v46 }
  0x72   : > { %vm427_vm6 = vmand %vm423_vm4, %vm426_vm2 }
  0x73   : > { %vm430_vm8 = vmand %vm427_vm6, %vm429_vm3 }
  0x74   : > { %vm434_vm9 = vmand %vm430_vm8, %vm433_vm5 }
  0x75   : > { %vm3580_vm11 = vmand %vm434_vm9, %vm436_vm7 }
  0x76   : > { %v3587_v52 = vsel %vm3580_vm11, 1, %v4858_v51  ;;  %v2647_v53 = vsel %vm3580_vm11, 1.0, %v4856_v0 }
  0x77   : > { %v441_v54 = vsel %vm440_vm10, %v2647_v53, 0.0 }
  0x78   : > { %442 = vadd.xlane.f32.xlu0 %v441_v54 }
 0x105   : > { %v443_v55 = vpop.xlane.xlu0 %442 }
 0x106   : > { %v444_v56 = vrot.slane %v443_v55, 4 }
 0x108   : > { %v445_v57 = vadd.f32 %v444_v56, %v443_v55 }
 0x10a   : > { %v446_v58 = vrot.slane %v445_v57, 2 }
 0x10c   : > { %v447_v59 = vadd.f32 %v446_v58, %v445_v57 }
 0x10e   : > { %v448_v60 = vrot.slane %v447_v59, 1 }
 0x110   : > { %v449_v61 = vadd.f32 %v448_v60, %v447_v59 }
 0x112   : > { %2917 = vpush %v449_v61 }
 0x143   : > { %s2918_s22 = spop %2917 }
 0x144   : > { %p451_p4 = scmp.gt.f32.partialorder %s2918_s22, 0.0 }
 0x145   : > { %v456_v62 = vstv (%p451_p4), %s3533_s12  ;;  %v469_v63 = vstv (%p451_p4), %s3535_s18  ;;  %v482_v1 = vstv (%p451_p4), %s3545_s0  ;;  %v3601_v26 = vld [vmem:[#allocation3 + $0x10] sm:$0xff] (%p451_p4)  ;;  %v3603_v27 = vld [vmem:[#allocation3] sm:$0xff] (%p451_p4)  ;;  %v3225_v28 = vmov (%p451_p4), 0   ;;  %v3611_v31 = vld [vmem:[#allocation3 + $0x18] sm:$0xff] (%p451_p4) }
 0x146   : > { %454 = sbr.rel (!%p451_p4) target bundleno = 1269 (0x4f5), region = 56  ;;  %3037 = vrcp.f32 (%p451_p4), %v456_v62  ;;  %3036 = vset.pattern.permute.xlu1 (%p451_p4), %v3225_v28  ;;  %3035 = vset.pattern.permute.xlu0 (%p451_p4), %v3225_v28  ;;  %v2833_v29 = vpack.c.bf16 (%p451_p4), %v3424_v3, %v3419_v2  ;;  %v2837_v30 = vpack.c.bf16 (%p451_p4), %v3434_v5, %v3429_v4  ;;  %v3613_v32 = vld [vmem:[#allocation3 + $0x8] sm:$0xff] (%p451_p4)  ;;  %v2841_v33 = vpack.c.bf16 (%p451_p4), %v3448_v7, %v3439_v6  ;;  %v3621_v35 = vld [vmem:[#allocation3 + $0x20] sm:$0xff] (%p451_p4)  ;;  %v3627_v38 = vld [vmem:[#allocation3 + $0x38] sm:$0xff] (%p451_p4) }
 0x147   : > { %3039 = vrcp.f32 (%p451_p4), %v469_v63  ;;  %672 = vperm.xlu1 (%p451_p4), %3036, %v3601_v26   ;;  %662 = vperm.xlu0 (%p451_p4), %3035, %v3603_v27   ;;  %v3619_v34 = vld [vmem:[#allocation3 + $0x28] sm:$0xff] (%p451_p4)  ;;  %v2845_v36 = vpack.c.bf16 (%p451_p4), %v3458_v9, %v3453_v8  ;;  %v3629_v39 = vld [vmem:[#allocation3 + $0x30] sm:$0xff] (%p451_p4)  ;;  %v2849_v47 = vpack.c.bf16 (%p451_p4), %v3473_v11, %v3468_v10  ;;  %v2853_v48 = vpack.c.bf16 (%p451_p4), %v3485_v13, %v3478_v12 }
 0x148   : > { %3041 = vrcp.f32 (%p451_p4), %v482_v1  ;;  %2834 = vmatprep.subr.bf16.mxu0 (%p451_p4), %v2833_v29  ;;  %2901 = vmatprep.subr.bf16.mxu1 (%p451_p4), %v2833_v29  ;;  %v2857_v53 = vpack.c.bf16 (%p451_p4), %v3495_v15, %v3490_v14  ;;  %v2861_v10 = vpack.c.bf16 (%p451_p4), %v3507_v17, %v3502_v16  ;;  %v455_v11 = vadd.f32 (%p451_p4), %v3562_v43, %v3564_v44  ;;  %v3760_v50 = vld [vmem:[%s4848_s4 + $0x18] sm:$0xff] (%p451_p4) }
 0x149   : > { %2836 = vmatpush3.bf16.msra.mxu0 (%p451_p4), %v2833_v29  ;;  %2909 = vmatpush3.bf16.msra.mxu1 (%p451_p4), %v2833_v29  ;;  %v468_v12 = vadd.f32 (%p451_p4), %v3571_v49, %v3566_v45  ;;  %v481_v13 = vadd.f32 (%p451_p4), %v3568_v46, %v3560_v41  ;;  %v506_v44 = vlaneseq (%p451_p4) }
 0x14a   : > { %2838 = vmatprep.subr.bf16.mxu0 (%p451_p4), %v2837_v30  ;;  %2902 = vmatprep.subr.bf16.mxu1 (%p451_p4), %v2837_v30 }
 0x14b   : > { %677 = vperm.xlu1 (%p451_p4), %3036, %v3611_v31   ;;  %667 = vperm.xlu0 (%p451_p4), %3035, %v3613_v32   ;;  %v507_v61 = vshrl.u32 (%p451_p4), %v506_v44, 7 }
 0x14d   : > { %2840 = vmatpush3.bf16.msra.mxu0 %v2837_v30  ;;  %2910 = vmatpush3.bf16.msra.mxu1 %v2837_v30  ;;  %v508_v28 = vsub.s32 0, %v507_v61 }
 0x14e   : > { %2842 = vmatprep.subr.bf16.mxu0 %v2841_v33  ;;  %2903 = vmatprep.subr.bf16.mxu1 %v2841_v33 }
 0x14f   : > { %687 = vperm.xlu1 %3036, %v3619_v34   ;;  %682 = vperm.xlu0 %3035, %v3621_v35  }
 0x150   : > { %v3038_v37 = vpop.eup %3037 }
 0x151   : > { %v3040_v40 = vpop.eup %3039  ;;  %2919 = vpush %v3038_v37  ;;  %2844 = vmatpush3.bf16.msra.mxu0 %v2841_v33  ;;  %2911 = vmatpush3.bf16.msra.mxu1 %v2841_v33  ;;  %v521_v37 = vrot.slane %v3587_v52, %v508_v28  ;;  %v3227_v52 = vmov 1.0  }
 0x152   : > { %v3042_v42 = vpop.eup %3041  ;;  %2923 = vpush %v3040_v40  ;;  %2846 = vmatprep.subr.bf16.mxu0 %v2845_v36  ;;  %2904 = vmatprep.subr.bf16.mxu1 %v2845_v36 }
 0x153   : > { %2927 = vpush %v3042_v42  ;;  %697 = vperm.xlu1 %3036, %v3627_v38   ;;  %692 = vperm.xlu0 %3035, %v3629_v39   ;;  %vm522_vm4 = vcmp.eq.s32.totalorder %v521_v37, 1 }
 0x155   : > { %2848 = vmatpush3.bf16.msra.mxu0 %v2845_v36  ;;  %2912 = vmatpush3.bf16.msra.mxu1 %v2845_v36 }
 0x156   : > { %2850 = vmatprep.subr.bf16.mxu0 %v2849_v47  ;;  %2905 = vmatprep.subr.bf16.mxu1 %v2849_v47 }
 0x159   : > { %2852 = vmatpush3.bf16.msra.mxu0 %v2849_v47  ;;  %2913 = vmatpush3.bf16.msra.mxu1 %v2849_v47 }
 0x15a   : > { %2854 = vmatprep.subr.bf16.mxu0 %v2853_v48  ;;  %2906 = vmatprep.subr.bf16.mxu1 %v2853_v48 }
 0x15d   : > { %2856 = vmatpush3.bf16.msra.mxu0 %v2853_v48  ;;  %2914 = vmatpush3.bf16.msra.mxu1 %v2853_v48  ;;  %v3226_v48 = vmov 0.0  }
 0x15e   : > { %2858 = vmatprep.subr.bf16.mxu0 %v2857_v53  ;;  %2907 = vmatprep.subr.bf16.mxu1 %v2857_v53 }
 0x161   : > { %2860 = vmatpush3.bf16.msra.mxu0 %v2857_v53  ;;  %2915 = vmatpush3.bf16.msra.mxu1 %v2857_v53 }
 0x162   : > { %2862 = vmatprep.subr.bf16.mxu0 %v2861_v10  ;;  %2908 = vmatprep.subr.bf16.mxu1 %v2861_v10 }
 0x165   : > { %2864 = vmatpush3.bf16.msra.mxu0 %v2861_v10  ;;  %2916 = vmatpush3.bf16.msra.mxu1 %v2861_v10 }
 0x182   : > { %s2920_s15 = spop %2919 }
 0x183   : > { %s459_s11 = smul.f32 4.0, %s2920_s15  ;;  %s2924_s20 = spop %2923 }
 0x184   : > { %s472_s12 = smul.f32 4.0, %s2924_s20  ;;  %s2928_s18 = spop %2927 }
 0x185   : > { %v460_v14 = vstv %s459_s11  ;;  %s485_s8 = smul.f32 4.0, %s2928_s18  ;;  %s3854_s15 = smov 0  }
 0x186   : > { %v461_v15 = vmul.f32 %v460_v14, %v455_v11  ;;  %v473_v16 = vstv %s472_s12 }
 0x187   : > { %v474_v17 = vmul.f32 %v473_v16, %v468_v12  ;;  %v486_v54 = vstv %s485_s8 }
 0x188   : > { %v462_v55 = vfloor.f32 %v461_v15  ;;  %v487_v56 = vmul.f32 %v486_v54, %v481_v13 }
 0x189   : > { %v475_v43 = vfloor.f32 %v474_v17 }
 0x18a   : > { %v2921_v57 = vtrunc.f32 %v462_v55  ;;  %v488_v58 = vfloor.f32 %v487_v56 }
 0x18b   : > { %v2925_v59 = vtrunc.f32 %v475_v43 }
 0x18c   : > { %v2922_v45 = vcvt.f32.s32 %v2921_v57  ;;  %v2929_v49 = vtrunc.f32 %v488_v58 }
 0x18d   : > { %v2926_v60 = vcvt.f32.s32 %v2925_v59 }
 0x18e   : > { %vm464_vm12 = vcmp.gt.s32.totalorder %v2922_v45, 0  ;;  %v2930_v41 = vcvt.f32.s32 %v2929_v49 }
 0x18f   : > { %v465_v46 = vsel %vm464_vm12, %v2922_v45, 0  ;;  %vm477_vm13 = vcmp.gt.s32.totalorder %v2926_v60, 0 }
 0x190   : > { %vm466_vm14 = vcmp.lt.s32.totalorder %v465_v46, 3  ;;  %v478_v62 = vsel %vm477_vm13, %v2926_v60, 0  ;;  %vm490_vm15 = vcmp.gt.s32.totalorder %v2930_v41, 0 }
 0x191   : > { %v467_v63 = vsel %vm466_vm14, %v465_v46, 3  ;;  %vm479_vm2 = vcmp.lt.s32.totalorder %v478_v62, 3  ;;  %v491_v1 = vsel %vm490_vm15, %v2930_v41, 0 }
 0x192   : > { %v494_v29 = vmul.u32 16, %v467_v63  ;;  %v480_v30 = vsel %vm479_vm2, %v478_v62, 3  ;;  %vm492_vm3 = vcmp.lt.s32.totalorder %v491_v1, 3 }
 0x193   : > { %v495_v33 = vmul.u32 4, %v480_v30  ;;  %v493_v40 = vsel %vm492_vm3, %v491_v1, 3 }
 0x195   : > { %v496_v36 = vadd.s32 %v495_v33, %v494_v29 }
 0x197   : > { %v3648_v42 = vadd.s32 %v496_v36, %v493_v40 }
 0x199   : > { %v509_v47 = vrot.slane %v3648_v42, %v508_v28 }
 0x19b   : > { %vm510_vm5 = vcmp.eq.s32.totalorder %v3509_v18, %v509_v47  ;;  %vm514_vm6 = vcmp.eq.s32.totalorder %v3523_v22, %v509_v47  ;;  %vm515_vm7 = vcmp.eq.s32.totalorder %v3525_v23, %v509_v47  ;;  %vm511_vm9 = vcmp.eq.s32.totalorder %v3515_v19, %v509_v47 }
 0x19c   : > { %vm523_vm8 = vmand %vm510_vm5, %vm522_vm4  ;;  %vm512_vm13 = vcmp.eq.s32.totalorder %v3517_v20, %v509_v47  ;;  %vm516_vm15 = vcmp.eq.s32.totalorder %v3527_v24, %v509_v47  ;;  %vm517_vm3 = vcmp.eq.s32.totalorder %v3531_v25, %v509_v47 }
 0x19d   : > { %v3656_v53 = vsel %vm523_vm8, 1.0, %v3226_v48  ;;  %2783 = vmatprep.mubr.msk.f32.mxu0 %vm523_vm8, %v3227_v52  ;;  %vm3659_vm12 = vmand %vm514_vm6, %vm522_vm4  ;;  %vm513_vm6 = vcmp.eq.s32.totalorder %v3519_v21, %v509_v47 }
 0x19e   : > { %2789 = vmatprep.mubr.msk.f32.mxu1 %vm3659_vm12, %v3227_v52  ;;  %vm3667_vm14 = vmand %vm515_vm7, %vm522_vm4  ;;  %731 = vadd.xlane.f32.xlu0 %v3656_v53  ;;  %v3690_v22 = vsel %vm3659_vm12, 1.0, %v3226_v48 }
 0x19f   : > { %2790 = vmatmul.mubr.msk.f32.vlgmr.msra.gmra.mrb[0].mxu1 %vm3667_vm14, %v3227_v52  ;;  %vm524_vm2 = vmand %vm511_vm9, %vm522_vm4  ;;  %v3701_v24 = vsel %vm3667_vm14, 1.0, %v3226_v48 }
 0x1a0   : > { %v3677_v19 = vsel %vm524_vm2, 1.0, %v3226_v48  ;;  %2784 = vmatmul.mubr.msk.f32.vlgmr.msra.gmra.mrb[0].mxu0 %vm524_vm2, %v3227_v52  ;;  %vm525_vm5 = vmand %vm512_vm13, %vm522_vm4 }
 0x1a1   : > { %733 = vadd.xlane.f32.xlu1 %v3677_v19  ;;  %2786 = vmatprep.mubr.msk.f32.mxu0 %vm525_vm5, %v3227_v52  ;;  %vm529_vm7 = vmand %vm516_vm15, %vm522_vm4  ;;  %v3683_v20 = vsel %vm525_vm5, 1.0, %v3226_v48 }
 0x1a2   : > { %2792 = vmatprep.mubr.msk.f32.mxu1 %vm529_vm7, %v3227_v52  ;;  %vm530_vm8 = vmand %vm517_vm3, %vm522_vm4  ;;  %735 = vadd.xlane.f32.xlu0 %v3683_v20  ;;  %v3696_v23 = vsel %vm529_vm7, 1.0, %v3226_v48 }
 0x1a3   : > { %2793 = vmatmul.mubr.msk.f32.gmra.mrb[2].mxu1 %vm530_vm8, %v3227_v52  ;;  %vm526_vm9 = vmand %vm513_vm6, %vm522_vm4  ;;  %v3704_v25 = vsel %vm530_vm8, 1.0, %v3226_v48 }
 0x1a4   : > { %2787 = vmatmul.mubr.msk.f32.gmra.mrb[2].mxu0 %vm526_vm9, %v3227_v52  ;;  %v3693_v21 = vsel %vm526_vm9, 1.0, %v3226_v48 }
 0x1a5   : > { %739 = vadd.xlane.f32.xlu1 %v3690_v22 }
 0x1a6   : > { %737 = vadd.xlane.f32.xlu0 %v3693_v21 }
 0x1a9   : > { %743 = vadd.xlane.f32.xlu1 %v3696_v23 }
 0x1aa   : > { %741 = vadd.xlane.f32.xlu0 %v3701_v24 }
 0x1ae   : > { %745 = vadd.xlane.f32.xlu0 %v3704_v25 }
 0x1c6   : > { %v663_v11 = vpop.permute.xlu0 %662  ;;  %v673_v12 = vpop.permute.xlu1 %672 }
 0x1ca   : > { %v668_v13 = vpop.permute.xlu0 %667  ;;  %v678_v14 = vpop.permute.xlu1 %677 }
 0x1ce   : > { %v683_v15 = vpop.permute.xlu0 %682  ;;  %v688_v16 = vpop.permute.xlu1 %687 }
 0x1d2   : > { %v693_v17 = vpop.permute.xlu0 %692  ;;  %v698_v54 = vpop.permute.xlu1 %697 }
 0x22b   : > { %v732_v55 = vpop.xlane.xlu0 %731 }
 0x22c   : > { %v747_v56 = vadd.f32 %v732_v55, %v3603_v27 }
 0x22e   : > { %v734_v43 = vpop.xlane.xlu1 %733  ;;  %756 = vst.msk [vmem:[#allocation3] sm:$0xff] %vm324_vm0, %v747_v56 }
 0x22f   : > { %v748_v44 = vadd.f32 %v734_v43, %v3613_v32  ;;  %v736_v57 = vpop.xlane.xlu0 %735 }
 0x230   : > { %v749_v58 = vadd.f32 %v736_v57, %v3601_v26 }
 0x231   : > { %757 = vst.msk [vmem:[#allocation3 + $0x8] sm:$0xff] %vm324_vm0, %v748_v44 }
 0x232   : > { %v740_v59 = vpop.xlane.xlu1 %739  ;;  %758 = vst.msk [vmem:[#allocation3 + $0x10] sm:$0xff] %vm324_vm0, %v749_v58 }
 0x233   : > { %v751_v45 = vadd.f32 %v740_v59, %v3621_v35  ;;  %v738_v49 = vpop.xlane.xlu0 %737 }
 0x234   : > { %v750_v60 = vadd.f32 %v738_v49, %v3611_v31 }
 0x235   : > { %760 = vst.msk [vmem:[#allocation3 + $0x20] sm:$0xff] %vm324_vm0, %v751_v45 }
 0x236   : > { %v744_v27 = vpop.xlane.xlu1 %743  ;;  %759 = vst.msk [vmem:[#allocation3 + $0x18] sm:$0xff] %vm324_vm0, %v750_v60 }
 0x237   : > { %v753_v32 = vadd.f32 %v744_v27, %v3629_v39  ;;  %v742_v61 = vpop.xlane.xlu0 %741 }
 0x238   : > { %v752_v26 = vadd.f32 %v742_v61, %v3619_v34 }
 0x239   : > { %762 = vst.msk [vmem:[#allocation3 + $0x30] sm:$0xff] %vm324_vm0, %v753_v32 }
 0x23a   : > { %761 = vst.msk [vmem:[#allocation3 + $0x28] sm:$0xff] %vm324_vm0, %v752_v26 }
 0x23b   : > { %v746_v41 = vpop.xlane.xlu0 %745 }
 0x23c   : > { %v754_v35 = vadd.f32 %v746_v41, %v3627_v38 }
 0x23e   : > { %763 = vst.msk [vmem:[#allocation3 + $0x38] sm:$0xff] %vm324_vm0, %v754_v35  ;;  %v3775_v35 = vld [vmem:[%s4848_s4 + $0x30] sm:$0xff] }
 0x272   : > { %v2791_v31 = vpop.f32.mrb[0].mxu1 }
 0x273   : > { %v2785_v46 = vpop.f32.mrb[0].mxu0  ;;  %v633_v62 = vpop.f32.mrb[1].mxu1  ;;  %v657_v52 = vsub.f32 %v2791_v31, %v3701_v24  ;;  %v3780_v31 = vld [vmem:[%s4848_s4 + $0x38] sm:$0xff] }
 0x274   : > { %v653_v63 = vsub.f32 %v2785_v46, %v3677_v19  ;;  %v613_v1 = vpop.f32.mrb[1].mxu0  ;;  %v656_v47 = vsub.f32 %v633_v62, %v3690_v22  ;;  %v3785_v46 = vld [vmem:[%s4848_s4 + $0x40] sm:$0xff]  ;;  %v3790_v62 = vld [vmem:[%s4848_s4 + $0x48] sm:$0xff] }
 0x275   : > { %v652_v39 = vsub.f32 %v613_v1, %v3656_v53  ;;  %v3800_v1 = vld [vmem:[%s4848_s4 + $0x58] sm:$0xff] }
 0x276   : > { %v701_v28 = vadd.f32 %v668_v13, %v653_v63  ;;  %v2794_v29 = vpop.f32.mrb[2].mxu1  ;;  %v704_v55 = vadd.f32 %v683_v15, %v656_v47  ;;  %v3795_v63 = vld [vmem:[%s4848_s4 + $0x50] sm:$0xff] }
 0x277   : > { %v700_v34 = vadd.f32 %v663_v11, %v652_v39  ;;  %v2788_v30 = vpop.f32.mrb[2].mxu0  ;;  %v643_v33 = vpop.f32.mrb[3].mxu1  ;;  %v659_v44 = vsub.f32 %v2794_v29, %v3704_v25  ;;  %v3805_v39 = vld [vmem:[%s4848_s4 + $0x60] sm:$0xff]  ;;  %v3815_v29 = vld [vmem:[%s4848_s4 + $0x70] sm:$0xff] }
 0x278   : > { %v709_v36 = vmul.f32 %v3677_v19, %v701_v28  ;;  %v655_v37 = vsub.f32 %v2788_v30, %v3693_v21  ;;  %v623_v38 = vpop.f32.mrb[3].mxu0  ;;  %v658_v56 = vsub.f32 %v643_v33, %v3696_v23  ;;  %v705_v19 = vadd.f32 %v688_v16, %v657_v52  ;;  %v3810_v28 = vld [vmem:[%s4848_s4 + $0x68] sm:$0xff] }
 0x279   : > { %v708_v40 = vmul.f32 %v3656_v53, %v700_v34  ;;  %v654_v48 = vsub.f32 %v623_v38, %v3683_v20  ;;  %v712_v57 = vmul.f32 %v3690_v22, %v704_v55  ;;  %v707_v49 = vadd.f32 %v698_v54, %v659_v44  ;;  %v3770_v54 = vld [vmem:[%s4848_s4 + $0x28] sm:$0xff]  ;;  %v3820_v34 = vld [vmem:[%s4848_s4 + $0x78] sm:$0xff] }
 0x27a   : > { %v703_v18 = vadd.f32 %v678_v14, %v655_v37  ;;  %v706_v59 = vadd.f32 %v693_v17, %v658_v56  ;;  %v713_v45 = vmul.f32 %v3701_v24, %v705_v19  ;;  %v3755_v17 = vld [vmem:[%s4848_s4 + $0x10] sm:$0xff] }
 0x27b   : > { %v716_v10 = vadd.f32 %v709_v36, %v708_v40  ;;  %v702_v13 = vadd.f32 %v673_v12, %v654_v48 }
 0x27c   : > { %v711_v43 = vmul.f32 %v3693_v21, %v703_v18  ;;  %v714_v12 = vmul.f32 %v3696_v23, %v706_v59  ;;  %v3745_v23 = vld [vmem:[%s4848_s4] sm:$0xff] }
 0x27d   : > { %v710_v11 = vmul.f32 %v3683_v20, %v702_v13  ;;  %v715_v20 = vmul.f32 %v3704_v25, %v707_v49  ;;  %v3750_v25 = vld [vmem:[%s4848_s4 + $0x8] sm:$0xff] }
 0x27f   : > { %v717_v53 = vadd.f32 %v716_v10, %v710_v11 }
 0x281   : > { %v718_v58 = vadd.f32 %v717_v53, %v711_v43 }
 0x283   : > { %v719_v14 = vadd.f32 %v718_v58, %v712_v57 }
 0x285   : > { %v720_v15 = vadd.f32 %v719_v14, %v713_v45 }
 0x287   : > { %v721_v60 = vadd.f32 %v720_v15, %v714_v12 }
 0x289   : > { %v722_v16 = vadd.f32 %v721_v60, %v715_v20 }
 0x28b   : > { %v723_v27 = vrot.slane %v722_v16, 4 }
 0x28d   : > { %v724_v21 = vadd.f32 %v723_v27, %v722_v16 }
 0x28f   : > { %v725_v32 = vrot.slane %v724_v21, 2 }
 0x291   : > { %v726_v61 = vadd.f32 %v725_v32, %v724_v21 }
 0x293   : > { %v727_v26 = vrot.slane %v726_v61, 1 }
 0x295   : > { %v728_v41 = vadd.f32 %v727_v26, %v726_v61 }
 0x297   : > { %vm729_vm0 = vcmp.lt.f32.partialorder %v728_v41, 8.0 }
 0x298   : > { %vm730_vm4 = vmand %vm3580_vm11, %vm729_vm0 }
 0x299   : > { %v780_v22 = vsel %vm730_vm4, %v3648_v42, 4294967295  ;;  %v3765_v42 = vld [vmem:[%s4848_s4 + $0x20] sm:$0xff] }
 0x29a   : > { %v781_v24 = vcvt.s32.f32 %v780_v22 }
 0x29c   : > { %782 = vxpose.xlu1.b32.start.end [1/1] (short) %v781_v24, 128 }
 0x31c   : > { %v3822_v30 = vpop.trf.xlu1 }
 0x31d   : > { %4927 = vst [vmem:[#allocation29_spill] sm:$0xff] %v3822_v30 }
 0x320   : > { %v3824_v33 = vpop.trf.xlu1 }
 0x321   : > { %4928 = vst [vmem:[#allocation30_spill] sm:$0xff] %v3824_v33 }
 0x324   : > { %v3826_v36 = vpop.trf.xlu1 }
 0x328   : > { %v3828_v37 = vpop.trf.xlu1 }
 0x329   : > { %4929 = vst [vmem:[#allocation31_spill] sm:$0xff] %v3828_v37 }
 0x32c   : > { %v3830_v38 = vpop.trf.xlu1 }
 0x32d   : > { %4930 = vst [vmem:[#allocation32_spill] sm:$0xff] %v3830_v38 }
 0x330   : > { %v3832_v40 = vpop.trf.xlu1 }
 0x331   : > { %4931 = vst [vmem:[#allocation33_spill] sm:$0xff] %v3832_v40 }
 0x334   : > { %v3834_v47 = vpop.trf.xlu1 }
 0x335   : > { %4932 = vst [vmem:[#allocation34_spill] sm:$0xff] %v3834_v47 }
 0x338   : > { %v3836_v48 = vpop.trf.xlu1 }
 0x339   : > { %4933 = vst [vmem:[#allocation35_spill] sm:$0xff] %v3836_v48 }
 0x33c   : > { %v3838_v52 = vpop.trf.xlu1 }
 0x33d   : > { %4934 = vst [vmem:[#allocation36_spill] sm:$0xff] %v3838_v52 }
 0x340   : > { %v3840_v10 = vpop.trf.xlu1 }
 0x341   : > { %4935 = vst [vmem:[#allocation37_spill] sm:$0xff] %v3840_v10 }
 0x344   : > { %v3842_v18 = vpop.trf.xlu1 }
 0x345   : > { %4936 = vst [vmem:[#allocation38_spill] sm:$0xff] %v3842_v18 }
 0x348   : > { %v3844_v13 = vpop.trf.xlu1 }
 0x349   : > { %4937 = vst [vmem:[#allocation39_spill] sm:$0xff] %v3844_v13 }
 0x34c   : > { %v3846_v55 = vpop.trf.xlu1 }
 0x34d   : > { %4938 = vst [vmem:[#allocation40_spill] sm:$0xff] %v3846_v55 }
 0x350   : > { %v3848_v11 = vpop.trf.xlu1 }
 0x351   : > { %4939 = vst [vmem:[#allocation41_spill] sm:$0xff] %v3848_v11 }
 0x354   : > { %v3850_v56 = vpop.trf.xlu1 }
 0x355   : > { %4940 = vst [vmem:[#allocation42_spill] sm:$0xff] %v3850_v56 }
 0x358   : > { %v3852_v19 = vpop.trf.xlu1 }
 0x359   : > { %4941 = vst [vmem:[#allocation43_spill] sm:$0xff] %v3852_v19 }
 0x35a LB: >> { %v4942_v30 = vld [vmem:[#allocation29_spill] sm:$0xff]  ;;  %v4943_v52 = vld [vmem:[#allocation36_spill] sm:$0xff]  ;;  %v4945_v47 = vld [vmem:[#allocation34_spill] sm:$0xff]  ;;  %v4892_v43 = vmov 0   ;;  %s3862_s11 = sshll.u32 %s3216_s15, 3  ;;  %s819_s15 = sadd.s32 1, %s3216_s15   ;;  %s3216_s15 = sphi %s3854_s15, %s819_s15  }
 0x35b   : >> { %v4944_v38 = vld [vmem:[#allocation32_spill] sm:$0xff]  ;;  %v4946_v40 = vld [vmem:[#allocation33_spill] sm:$0xff]  ;;  %v4947_v48 = vld [vmem:[#allocation35_spill] sm:$0xff]  ;;  %3044 = vset.pattern.permute.xlu1 %v4892_v43  ;;  %3043 = vset.pattern.permute.xlu0 %v4892_v43  ;;  %s821_s20 = scvt.s32.f32 %s3862_s11  ;;  %s973_s12 = sadd.s32 1, %s3862_s11 }
 0x35c   : >> { %v4948_v33 = vld [vmem:[#allocation30_spill] sm:$0xff]  ;;  %v4949_v37 = vld [vmem:[#allocation31_spill] sm:$0xff]  ;;  %v4950_v10 = vld [vmem:[#allocation37_spill] sm:$0xff]  ;;  %s974_s18 = scvt.s32.f32 %s973_s12  ;;  %s1125_s8 = sadd.s32 2, %s3862_s11 }
 0x35d   : >> { %v4951_v13 = vld [vmem:[#allocation39_spill] sm:$0xff]  ;;  %v4952_v18 = vld [vmem:[#allocation38_spill] sm:$0xff]  ;;  %v4954_v11 = vld [vmem:[#allocation41_spill] sm:$0xff]  ;;  %v822_v44 = vstv %s821_s20  ;;  %s1126_s0 = scvt.s32.f32 %s1125_s8  ;;  %s1277_s2 = sadd.s32 3, %s3862_s11 }
 0x35e   : >> { %v4953_v56 = vld [vmem:[#allocation42_spill] sm:$0xff]  ;;  %v4955_v55 = vld [vmem:[#allocation40_spill] sm:$0xff]  ;;  %vm825_vm11 = vcmp.eq.f32.partialorder %v3826_v36, %v822_v44  ;;  %vm823_vm12 = vcmp.eq.f32.partialorder %v4942_v30, %v822_v44  ;;  %vm826_vm13 = vcmp.eq.f32.partialorder %v4949_v37, %v822_v44  ;;  %vm824_vm14 = vcmp.eq.f32.partialorder %v4948_v33, %v822_v44  ;;  %s1278_s28 = scvt.s32.f32 %s1277_s2  ;;  %s1429_s13 = sadd.s32 4, %s3862_s11 }
 0x35f   : >> { %v841_v53 = vsel %vm825_vm11, 1, %v4892_v43  ;;  %v839_v57 = vsel %vm823_vm12, 1, %v4892_v43  ;;  %v842_v58 = vsel %vm826_vm13, 1, %v4892_v43  ;;  %v840_v59 = vsel %vm824_vm14, 1, %v4892_v43  ;;  %s1430_s14 = scvt.s32.f32 %s1429_s13  ;;  %s1581_s19 = sadd.s32 5, %s3862_s11 }
 0x360   : >> { %v4956_v19 = vld [vmem:[#allocation43_spill] sm:$0xff]  ;;  %862 = vperm.xlu1 %3044, %v841_v53   ;;  %856 = vperm.xlu0 %3043, %v839_v57   ;;  %vm828_vm15 = vcmp.eq.f32.partialorder %v4946_v40, %v822_v44  ;;  %vm827_vm2 = vcmp.eq.f32.partialorder %v4944_v38, %v822_v44  ;;  %vm830_vm3 = vcmp.eq.f32.partialorder %v4947_v48, %v822_v44  ;;  %v975_v32 = vstv %s974_s18  ;;  %s1582_s1 = scvt.s32.f32 %s1581_s19  ;;  %s1733_s27 = sadd.s32 6, %s3862_s11 }
 0x361   : >> { %v844_v45 = vsel %vm828_vm15, 1, %v4892_v43  ;;  %v843_v49 = vsel %vm827_vm2, 1, %v4892_v43  ;;  %vm829_vm5 = vcmp.eq.f32.partialorder %v4945_v47, %v822_v44  ;;  %v846_v14 = vsel %vm830_vm3, 1, %v4892_v43  ;;  %s1734_s30 = scvt.s32.f32 %s1733_s27  ;;  %s1885_s29 = sadd.s32 7, %s3862_s11 }
 0x362   : >> { %v845_v12 = vsel %vm829_vm5, 1, %v4892_v43  ;;  %vm832_vm6 = vcmp.eq.f32.partialorder %v4950_v10, %v822_v44  ;;  %vm831_vm7 = vcmp.eq.f32.partialorder %v4943_v52, %v822_v44  ;;  %vm834_vm8 = vcmp.eq.f32.partialorder %v4951_v13, %v822_v44  ;;  %s1886_s17 = scvt.s32.f32 %s1885_s29  ;;  %s2050_s22 = scalar_lea.vmem [#allocation2], %s3862_s11 }
 0x363   : >> { %v848_v15 = vsel %vm832_vm6, 1, %v4892_v43  ;;  %v847_v20 = vsel %vm831_vm7, 1, %v4892_v43  ;;  %vm833_vm9 = vcmp.eq.f32.partialorder %v4952_v18, %v822_v44  ;;  %v850_v60 = vsel %vm834_vm8, 1, %v4892_v43  ;;  %p816_p8 = scmp.ge.s32.totalorder %s819_s15, 8  }
 0x364   : >> { %865 = vperm.xlu1 %3044, %v842_v58   ;;  %859 = vperm.xlu0 %3043, %v840_v59   ;;  %v849_v16 = vsel %vm833_vm9, 1, %v4892_v43  ;;  %vm836_vm0 = vcmp.eq.f32.partialorder %v4954_v11, %v822_v44  ;;  %vm835_vm4 = vcmp.eq.f32.partialorder %v4955_v55, %v822_v44  ;;  %vm838_vm11 = vcmp.eq.f32.partialorder %v4956_v19, %v822_v44 }
 0x365   : >> { %v852_v27 = vsel %vm836_vm0, 1, %v4892_v43  ;;  %v851_v21 = vsel %vm835_vm4, 1, %v4892_v43  ;;  %vm837_vm12 = vcmp.eq.f32.partialorder %v4953_v56, %v822_v44  ;;  %v854_v61 = vsel %vm838_vm11, 1, %v4892_v43 }
 0x366   : >> { %v853_v26 = vsel %vm837_vm12, 1, %v4892_v43  ;;  %vm977_vm13 = vcmp.eq.f32.partialorder %v4948_v33, %v975_v32  ;;  %vm976_vm14 = vcmp.eq.f32.partialorder %v4942_v30, %v975_v32  ;;  %vm979_vm15 = vcmp.eq.f32.partialorder %v4949_v37, %v975_v32 }
 0x367   : >> { %v993_v41 = vsel %vm977_vm13, 1, %v4892_v43  ;;  %v992_v22 = vsel %vm976_vm14, 1, %v4892_v43  ;;  %vm978_vm2 = vcmp.eq.f32.partialorder %v3826_v36, %v975_v32  ;;  %v995_v24 = vsel %vm979_vm15, 1, %v4892_v43 }
 0x368   : >> { %871 = vperm.xlu1 %3044, %v844_v45   ;;  %868 = vperm.xlu0 %3043, %v843_v49   ;;  %v994_v44 = vsel %vm978_vm2, 1, %v4892_v43  ;;  %vm981_vm3 = vcmp.eq.f32.partialorder %v4946_v40, %v975_v32  ;;  %vm980_vm5 = vcmp.eq.f32.partialorder %v4944_v38, %v975_v32  ;;  %vm983_vm6 = vcmp.eq.f32.partialorder %v4947_v48, %v975_v32 }
 0x369   : >> { %v997_v53 = vsel %vm981_vm3, 1, %v4892_v43  ;;  %v996_v57 = vsel %vm980_vm5, 1, %v4892_v43  ;;  %vm982_vm7 = vcmp.eq.f32.partialorder %v4945_v47, %v975_v32  ;;  %v999_v58 = vsel %vm983_vm6, 1, %v4892_v43 }
 0x36a   : >> { %v998_v59 = vsel %vm982_vm7, 1, %v4892_v43  ;;  %vm985_vm8 = vcmp.eq.f32.partialorder %v4950_v10, %v975_v32  ;;  %vm984_vm9 = vcmp.eq.f32.partialorder %v4943_v52, %v975_v32  ;;  %vm987_vm0 = vcmp.eq.f32.partialorder %v4951_v13, %v975_v32 }
 0x36b   : >> { %v1001_v45 = vsel %vm985_vm8, 1, %v4892_v43  ;;  %v1000_v49 = vsel %vm984_vm9, 1, %v4892_v43  ;;  %vm986_vm4 = vcmp.eq.f32.partialorder %v4952_v18, %v975_v32  ;;  %vm989_vm11 = vcmp.eq.f32.partialorder %v4954_v11, %v975_v32 }
 0x36c   : >> { %877 = vperm.xlu1 %3044, %v846_v14   ;;  %874 = vperm.xlu0 %3043, %v845_v12   ;;  %v1003_v14 = vsel %vm987_vm0, 1, %v4892_v43  ;;  %v1002_v12 = vsel %vm986_vm4, 1, %v4892_v43  ;;  %vm988_vm12 = vcmp.eq.f32.partialorder %v4955_v55, %v975_v32  ;;  %vm991_vm13 = vcmp.eq.f32.partialorder %v4956_v19, %v975_v32 }
 0x36d   : >> { %vm990_vm14 = vcmp.eq.f32.partialorder %v4953_v56, %v975_v32  ;;  %v4102_v8 = vstv %s1734_s30 }
 0x36e   : >> { %4957 = vst [vmem:[#allocation44_spill] sm:$0xff] %v4102_v8 }
 0x370   : >> { %883 = vperm.xlu1 %3044, %v848_v15   ;;  %880 = vperm.xlu0 %3043, %v847_v20   ;;  %v1005_v15 = vsel %vm989_vm11, 1, %v4892_v43  ;;  %v1004_v20 = vsel %vm988_vm12, 1, %v4892_v43 }
 0x374   : >> { %889 = vperm.xlu1 %3044, %v850_v60   ;;  %886 = vperm.xlu0 %3043, %v849_v16   ;;  %v1127_v60 = vstv %s1126_s0  ;;  %v1007_v16 = vsel %vm991_vm13, 1, %v4892_v43 }
 0x375   : >> { %vm1129_vm15 = vcmp.eq.f32.partialorder %v4948_v33, %v1127_v60  ;;  %vm1128_vm2 = vcmp.eq.f32.partialorder %v4942_v30, %v1127_v60  ;;  %vm1131_vm3 = vcmp.eq.f32.partialorder %v4949_v37, %v1127_v60  ;;  %vm1130_vm5 = vcmp.eq.f32.partialorder %v3826_v36, %v1127_v60 }
 0x376   : >> { %v1147_v32 = vsel %vm1131_vm3, 1, %v4892_v43  ;;  %vm1133_vm6 = vcmp.eq.f32.partialorder %v4946_v40, %v1127_v60  ;;  %vm1132_vm7 = vcmp.eq.f32.partialorder %v4944_v38, %v1127_v60  ;;  %vm1135_vm8 = vcmp.eq.f32.partialorder %v4947_v48, %v1127_v60 }
 0x377   : >> { %vm1134_vm9 = vcmp.eq.f32.partialorder %v4945_v47, %v1127_v60  ;;  %vm1137_vm0 = vcmp.eq.f32.partialorder %v4950_v10, %v1127_v60  ;;  %vm1136_vm4 = vcmp.eq.f32.partialorder %v4943_v52, %v1127_v60  ;;  %vm1139_vm11 = vcmp.eq.f32.partialorder %v4951_v13, %v1127_v60 }
 0x378   : >> { %895 = vperm.xlu1 %3044, %v852_v27   ;;  %892 = vperm.xlu0 %3043, %v851_v21   ;;  %v1006_v27 = vsel %vm990_vm14, 1, %v4892_v43  ;;  %v1145_v21 = vsel %vm1129_vm15, 1, %v4892_v43  ;;  %vm1138_vm12 = vcmp.eq.f32.partialorder %v4952_v18, %v1127_v60  ;;  %vm1141_vm13 = vcmp.eq.f32.partialorder %v4954_v11, %v1127_v60 }
 0x379   : >> { %vm1140_vm14 = vcmp.eq.f32.partialorder %v4955_v55, %v1127_v60  ;;  %vm1143_vm15 = vcmp.eq.f32.partialorder %v4956_v19, %v1127_v60 }
 0x37c   : >> { %901 = vperm.xlu1 %3044, %v854_v61   ;;  %898 = vperm.xlu0 %3043, %v853_v26   ;;  %v1144_v61 = vsel %vm1128_vm2, 1, %v4892_v43  ;;  %v1146_v26 = vsel %vm1130_vm5, 1, %v4892_v43  ;;  %vm1142_vm2 = vcmp.eq.f32.partialorder %v4953_v56, %v1127_v60 }
 0x380   : >> { %1012 = vperm.xlu1 %3044, %v993_v41   ;;  %1009 = vperm.xlu0 %3043, %v992_v22   ;;  %v1149_v41 = vsel %vm1133_vm6, 1, %v4892_v43  ;;  %v1148_v22 = vsel %vm1132_vm7, 1, %v4892_v43 }
 0x384   : >> { %1018 = vperm.xlu1 %3044, %v995_v24   ;;  %1015 = vperm.xlu0 %3043, %v994_v44   ;;  %v1151_v24 = vsel %vm1135_vm8, 1, %v4892_v43  ;;  %v1150_v44 = vsel %vm1134_vm9, 1, %v4892_v43 }
 0x388   : >> { %1024 = vperm.xlu1 %3044, %v997_v53   ;;  %1021 = vperm.xlu0 %3043, %v996_v57   ;;  %v1153_v53 = vsel %vm1137_vm0, 1, %v4892_v43  ;;  %v1152_v57 = vsel %vm1136_vm4, 1, %v4892_v43 }
 0x38c   : >> { %1030 = vperm.xlu1 %3044, %v999_v58   ;;  %1027 = vperm.xlu0 %3043, %v998_v59   ;;  %v1155_v58 = vsel %vm1139_vm11, 1, %v4892_v43  ;;  %v1154_v59 = vsel %vm1138_vm12, 1, %v4892_v43 }
 0x390   : >> { %1036 = vperm.xlu1 %3044, %v1001_v45   ;;  %1033 = vperm.xlu0 %3043, %v1000_v49   ;;  %v1157_v45 = vsel %vm1141_vm13, 1, %v4892_v43  ;;  %v1156_v49 = vsel %vm1140_vm14, 1, %v4892_v43 }
 0x394   : >> { %1042 = vperm.xlu1 %3044, %v1003_v14   ;;  %1039 = vperm.xlu0 %3043, %v1002_v12   ;;  %v1279_v14 = vstv %s1278_s28  ;;  %v1159_v12 = vsel %vm1143_vm15, 1, %v4892_v43 }
 0x395   : >> { %vm1281_vm3 = vcmp.eq.f32.partialorder %v4948_v33, %v1279_v14  ;;  %vm1280_vm5 = vcmp.eq.f32.partialorder %v4942_v30, %v1279_v14  ;;  %vm1283_vm6 = vcmp.eq.f32.partialorder %v4949_v37, %v1279_v14  ;;  %vm1282_vm7 = vcmp.eq.f32.partialorder %v3826_v36, %v1279_v14 }
 0x396   : >> { %v1299_v60 = vsel %vm1283_vm6, 1, %v4892_v43  ;;  %vm1285_vm8 = vcmp.eq.f32.partialorder %v4946_v40, %v1279_v14  ;;  %vm1284_vm9 = vcmp.eq.f32.partialorder %v4944_v38, %v1279_v14  ;;  %vm1287_vm0 = vcmp.eq.f32.partialorder %v4947_v48, %v1279_v14 }
 0x397   : >> { %vm1286_vm4 = vcmp.eq.f32.partialorder %v4945_v47, %v1279_v14  ;;  %vm1289_vm11 = vcmp.eq.f32.partialorder %v4950_v10, %v1279_v14  ;;  %vm1288_vm12 = vcmp.eq.f32.partialorder %v4943_v52, %v1279_v14  ;;  %vm1291_vm13 = vcmp.eq.f32.partialorder %v4951_v13, %v1279_v14 }
 0x398   : >> { %1048 = vperm.xlu1 %3044, %v1005_v15   ;;  %1045 = vperm.xlu0 %3043, %v1004_v20   ;;  %v1158_v15 = vsel %vm1142_vm2, 1, %v4892_v43  ;;  %v1297_v20 = vsel %vm1281_vm3, 1, %v4892_v43  ;;  %vm1290_vm14 = vcmp.eq.f32.partialorder %v4952_v18, %v1279_v14  ;;  %vm1293_vm15 = vcmp.eq.f32.partialorder %v4954_v11, %v1279_v14 }
 0x399   : >> { %vm1292_vm2 = vcmp.eq.f32.partialorder %v4955_v55, %v1279_v14  ;;  %vm1295_vm3 = vcmp.eq.f32.partialorder %v4956_v19, %v1279_v14 }
 0x39c   : >> { %1054 = vperm.xlu1 %3044, %v1007_v16   ;;  %1051 = vperm.xlu0 %3043, %v1006_v27   ;;  %v1296_v16 = vsel %vm1280_vm5, 1, %v4892_v43  ;;  %v1298_v27 = vsel %vm1282_vm7, 1, %v4892_v43  ;;  %vm1294_vm5 = vcmp.eq.f32.partialorder %v4953_v56, %v1279_v14 }
 0x3a0   : >> { %1164 = vperm.xlu1 %3044, %v1145_v21   ;;  %1161 = vperm.xlu0 %3043, %v1144_v61   ;;  %v1301_v21 = vsel %vm1285_vm8, 1, %v4892_v43  ;;  %v1300_v61 = vsel %vm1284_vm9, 1, %v4892_v43 }
 0x3a4   : >> { %1170 = vperm.xlu1 %3044, %v1147_v32   ;;  %1167 = vperm.xlu0 %3043, %v1146_v26   ;;  %v1303_v32 = vsel %vm1287_vm0, 1, %v4892_v43  ;;  %v1302_v26 = vsel %vm1286_vm4, 1, %v4892_v43 }
 0x3a8   : >> { %1176 = vperm.xlu1 %3044, %v1149_v41   ;;  %1173 = vperm.xlu0 %3043, %v1148_v22   ;;  %v1305_v41 = vsel %vm1289_vm11, 1, %v4892_v43  ;;  %v1304_v22 = vsel %vm1288_vm12, 1, %v4892_v43 }
 0x3ac   : >> { %1182 = vperm.xlu1 %3044, %v1151_v24   ;;  %1179 = vperm.xlu0 %3043, %v1150_v44   ;;  %v1307_v24 = vsel %vm1291_vm13, 1, %v4892_v43  ;;  %v1306_v44 = vsel %vm1290_vm14, 1, %v4892_v43 }
 0x3b0   : >> { %1188 = vperm.xlu1 %3044, %v1153_v53   ;;  %1185 = vperm.xlu0 %3043, %v1152_v57   ;;  %v1309_v53 = vsel %vm1293_vm15, 1, %v4892_v43  ;;  %v1308_v57 = vsel %vm1292_vm2, 1, %v4892_v43 }
 0x3b4   : >> { %1194 = vperm.xlu1 %3044, %v1155_v58   ;;  %1191 = vperm.xlu0 %3043, %v1154_v59   ;;  %v3995_v58 = vstv %s1430_s14  ;;  %v1311_v59 = vsel %vm1295_vm3, 1, %v4892_v43 }
 0x3b5   : >> { %vm1433_vm6 = vcmp.eq.f32.partialorder %v4948_v33, %v3995_v58  ;;  %vm1432_vm7 = vcmp.eq.f32.partialorder %v4942_v30, %v3995_v58  ;;  %vm1435_vm8 = vcmp.eq.f32.partialorder %v4949_v37, %v3995_v58  ;;  %vm1434_vm9 = vcmp.eq.f32.partialorder %v3826_v36, %v3995_v58 }
 0x3b6   : >> { %v1448_v14 = vsel %vm1432_vm7, 1, %v4892_v43  ;;  %vm1437_vm0 = vcmp.eq.f32.partialorder %v4946_v40, %v3995_v58  ;;  %vm1436_vm4 = vcmp.eq.f32.partialorder %v4944_v38, %v3995_v58  ;;  %vm1439_vm11 = vcmp.eq.f32.partialorder %v4947_v48, %v3995_v58 }
 0x3b7   : >> { %vm1438_vm12 = vcmp.eq.f32.partialorder %v4945_v47, %v3995_v58  ;;  %vm1441_vm13 = vcmp.eq.f32.partialorder %v4950_v10, %v3995_v58  ;;  %vm1440_vm14 = vcmp.eq.f32.partialorder %v4943_v52, %v3995_v58  ;;  %vm1443_vm15 = vcmp.eq.f32.partialorder %v4951_v13, %v3995_v58 }
 0x3b8   : >> { %1200 = vperm.xlu1 %3044, %v1157_v45   ;;  %1197 = vperm.xlu0 %3043, %v1156_v49   ;;  %v1310_v45 = vsel %vm1294_vm5, 1, %v4892_v43  ;;  %v1449_v49 = vsel %vm1433_vm6, 1, %v4892_v43  ;;  %vm1442_vm2 = vcmp.eq.f32.partialorder %v4952_v18, %v3995_v58  ;;  %vm1445_vm3 = vcmp.eq.f32.partialorder %v4954_v11, %v3995_v58 }
 0x3b9   : >> { %vm1444_vm5 = vcmp.eq.f32.partialorder %v4955_v55, %v3995_v58  ;;  %vm1447_vm6 = vcmp.eq.f32.partialorder %v4956_v19, %v3995_v58  ;;  %vm1446_vm7 = vcmp.eq.f32.partialorder %v4953_v56, %v3995_v58 }
 0x3bc   : >> { %1206 = vperm.xlu1 %3044, %v1159_v12   ;;  %1203 = vperm.xlu0 %3043, %v1158_v15  }
 0x3c0   : >> { %1316 = vperm.xlu1 %3044, %v1297_v20   ;;  %1313 = vperm.xlu0 %3043, %v1296_v16   ;;  %v1451_v20 = vsel %vm1435_vm8, 1, %v4892_v43  ;;  %v1450_v16 = vsel %vm1434_vm9, 1, %v4892_v43 }
 0x3c4   : >> { %1322 = vperm.xlu1 %3044, %v1299_v60   ;;  %1319 = vperm.xlu0 %3043, %v1298_v27  }
 0x3c8   : >> { %1328 = vperm.xlu1 %3044, %v1301_v21   ;;  %1325 = vperm.xlu0 %3043, %v1300_v61   ;;  %v1453_v21 = vsel %vm1437_vm0, 1, %v4892_v43  ;;  %v1452_v61 = vsel %vm1436_vm4, 1, %v4892_v43 }
 0x3cc   : >> { %1334 = vperm.xlu1 %3044, %v1303_v32   ;;  %1331 = vperm.xlu0 %3043, %v1302_v26  }
 0x3d0   : >> { %1340 = vperm.xlu1 %3044, %v1305_v41   ;;  %1337 = vperm.xlu0 %3043, %v1304_v22   ;;  %v1455_v41 = vsel %vm1439_vm11, 1, %v4892_v43  ;;  %v1454_v22 = vsel %vm1438_vm12, 1, %v4892_v43 }
 0x3d4   : >> { %1346 = vperm.xlu1 %3044, %v1307_v24   ;;  %1343 = vperm.xlu0 %3043, %v1306_v44  }
 0x3d8   : >> { %1352 = vperm.xlu1 %3044, %v1309_v53   ;;  %1349 = vperm.xlu0 %3043, %v1308_v57   ;;  %v1457_v53 = vsel %vm1441_vm13, 1, %v4892_v43  ;;  %v1456_v57 = vsel %vm1440_vm14, 1, %v4892_v43 }
 0x3dc   : >> { %1358 = vperm.xlu1 %3044, %v1311_v59   ;;  %1355 = vperm.xlu0 %3043, %v1310_v45  }
 0x3df   : >> { %v4009_v12 = vpop.permute.xlu1 %862  ;;  %v4011_v15 = vpop.permute.xlu0 %856 }
 0x3e0   : >> { %1468 = vperm.xlu1 %3044, %v1449_v49   ;;  %1465 = vperm.xlu0 %3043, %v1448_v14   ;;  %v1459_v49 = vsel %vm1443_vm15, 1, %v4892_v43  ;;  %v1458_v14 = vsel %vm1442_vm2, 1, %v4892_v43 }
 0x3e3   : >> { %v4019_v60 = vpop.permute.xlu1 %865  ;;  %v4021_v27 = vpop.permute.xlu0 %859 }
 0x3e4   : >> { %1474 = vperm.xlu1 %3044, %v1451_v20   ;;  %1471 = vperm.xlu0 %3043, %v1450_v16  }
 0x3e7   : >> { %v4029_v32 = vpop.permute.xlu1 %871  ;;  %v4031_v26 = vpop.permute.xlu0 %868 }
 0x3e8   : >> { %1480 = vperm.xlu1 %3044, %v1453_v21   ;;  %1477 = vperm.xlu0 %3043, %v1452_v61   ;;  %v1461_v21 = vsel %vm1445_vm3, 1, %v4892_v43  ;;  %v1460_v61 = vsel %vm1444_vm5, 1, %v4892_v43 }
 0x3eb   : >> { %v4039_v24 = vpop.permute.xlu1 %877  ;;  %v4041_v44 = vpop.permute.xlu0 %874 }
 0x3ec   : >> { %1486 = vperm.xlu1 %3044, %v1455_v41   ;;  %1483 = vperm.xlu0 %3043, %v1454_v22  }
 0x3ef   : >> { %v4049_v59 = vpop.permute.xlu1 %883  ;;  %v4051_v45 = vpop.permute.xlu0 %880 }
 0x3f0   : >> { %1492 = vperm.xlu1 %3044, %v1457_v53   ;;  %1489 = vperm.xlu0 %3043, %v1456_v57   ;;  %v1583_v53 = vstv %s1582_s1  ;;  %v1463_v57 = vsel %vm1447_vm6, 1, %v4892_v43 }
 0x3f1   : >> { %vm1585_vm8 = vcmp.eq.f32.partialorder %v4948_v33, %v1583_v53  ;;  %vm1584_vm9 = vcmp.eq.f32.partialorder %v4942_v30, %v1583_v53  ;;  %vm1587_vm0 = vcmp.eq.f32.partialorder %v4949_v37, %v1583_v53  ;;  %vm1586_vm4 = vcmp.eq.f32.partialorder %v3826_v36, %v1583_v53 }
 0x3f2   : >> { %v1601_v58 = vsel %vm1585_vm8, 1, %v4892_v43  ;;  %vm1589_vm11 = vcmp.eq.f32.partialorder %v4946_v40, %v1583_v53  ;;  %vm1588_vm12 = vcmp.eq.f32.partialorder %v4944_v38, %v1583_v53  ;;  %vm1591_vm13 = vcmp.eq.f32.partialorder %v4947_v48, %v1583_v53 }
 0x3f3   : >> { %v4060_v20 = vpop.permute.xlu1 %889  ;;  %v4062_v16 = vpop.permute.xlu0 %886  ;;  %v1602_v51 = vsel %vm1586_vm4, 1, %v4892_v43  ;;  %vm1590_vm14 = vcmp.eq.f32.partialorder %v4945_v47, %v1583_v53  ;;  %vm1593_vm15 = vcmp.eq.f32.partialorder %v4950_v10, %v1583_v53  ;;  %v1605_v9 = vsel %vm1589_vm11, 1, %v4892_v43 }
 0x3f4   : >> { %1498 = vperm.xlu1 %3044, %v1459_v49   ;;  %1495 = vperm.xlu0 %3043, %v1458_v14   ;;  %v1462_v49 = vsel %vm1446_vm7, 1, %v4892_v43  ;;  %vm1592_vm2 = vcmp.eq.f32.partialorder %v4943_v52, %v1583_v53  ;;  %vm1595_vm3 = vcmp.eq.f32.partialorder %v4951_v13, %v1583_v53  ;;  %v1604_v7 = vsel %vm1588_vm12, 1, %v4892_v43 }
 0x3f5   : >> { %v1607_v6 = vsel %vm1591_vm13, 1, %v4892_v43  ;;  %vm1594_vm5 = vcmp.eq.f32.partialorder %v4952_v18, %v1583_v53  ;;  %vm1597_vm6 = vcmp.eq.f32.partialorder %v4954_v11, %v1583_v53  ;;  %v1606_v5 = vsel %vm1590_vm14, 1, %v4892_v43 }
 0x3f6   : >> { %vm1596_vm7 = vcmp.eq.f32.partialorder %v4955_v55, %v1583_v53  ;;  %vm1599_vm8 = vcmp.eq.f32.partialorder %v4956_v19, %v1583_v53  ;;  %v4119_v3 = vsel %vm1592_vm2, 1, %v4892_v43  ;;  %v4122_v2 = vsel %vm1595_vm3, 1, %v4892_v43 }
 0x3f7   : >> { %v4070_v41 = vpop.permute.xlu1 %895  ;;  %v4072_v22 = vpop.permute.xlu0 %892  ;;  %v4128_v19 = vsel %vm1594_vm5, 1, %v4892_v43  ;;  %v4131_v55 = vsel %vm1597_vm6, 1, %v4892_v43  ;;  %vm1736_vm4 = vcmp.eq.f32.partialorder %v4942_v30, %v4102_v8  ;;  %vm1739_vm11 = vcmp.eq.f32.partialorder %v4949_v37, %v4102_v8 }
 0x3f8   : >> { %1504 = vperm.xlu1 %3044, %v1461_v21   ;;  %1501 = vperm.xlu0 %3043, %v1460_v61   ;;  %v1600_v21 = vsel %vm1584_vm9, 1, %v4892_v43  ;;  %vm1598_vm9 = vcmp.eq.f32.partialorder %v4953_v56, %v1583_v53  ;;  %v4138_v11 = vsel %vm1596_vm7, 1, %v4892_v43  ;;  %v4141_v53 = vsel %vm1599_vm8, 1, %v4892_v43 }
 0x3f9   : >> { %vm1738_vm12 = vcmp.eq.f32.partialorder %v3826_v36, %v4102_v8  ;;  %vm1741_vm13 = vcmp.eq.f32.partialorder %v4946_v40, %v4102_v8  ;;  %vm1740_vm14 = vcmp.eq.f32.partialorder %v4944_v38, %v4102_v8  ;;  %v4155_v56 = vstv %s1886_s17 }
 0x3fa   : >> { %v4162_v10 = vsel %vm1736_vm4, 1, %v4892_v43  ;;  %v4165_v37 = vsel %vm1739_vm11, 1, %v4892_v43  ;;  %vm1742_vm2 = vcmp.eq.f32.partialorder %v4945_v47, %v4102_v8  ;;  %vm908_vm3 = vcmp.eq.s32.totalorder %v4029_v32, 1 }
 0x3fb   : >> { %v4079_v14 = vpop.permute.xlu1 %901  ;;  %v4081_v0 = vpop.permute.xlu0 %898  ;;  %vm907_vm5 = vcmp.eq.s32.totalorder %v4031_v26, 1  ;;  %vm905_vm6 = vcmp.eq.s32.totalorder %v4009_v12, 1  ;;  %vm903_vm7 = vcmp.eq.s32.totalorder %v4011_v15, 1  ;;  %vm1888_vm8 = vcmp.eq.f32.partialorder %v4942_v30, %v4155_v56 }
 0x3fc   : >> { %1510 = vperm.xlu1 %3044, %v1463_v57   ;;  %1507 = vperm.xlu0 %3043, %v1462_v49   ;;  %v1603_v49 = vsel %vm1587_vm0, 1, %v4892_v43  ;;  %vm1737_vm0 = vcmp.eq.f32.partialorder %v4948_v33, %v4102_v8  ;;  %v4177_v33 = vsel %vm1738_vm12, 1, %v4892_v43  ;;  %v4201_v12 = vsel %vm1742_vm2, 1, %v4892_v43 }
 0x3fd   : >> { %4959 = vst [vmem:[#allocation46_spill] sm:$0xff] %v4201_v12  ;;  %vm906_vm4 = vcmp.eq.s32.totalorder %v4019_v60, 1  ;;  %v924_v15 = vsel %vm908_vm3, %v3770_v54, -3e+38  ;;  %v923_v32 = vsel %vm907_vm5, %v3765_v42, -3e+38  ;;  %vm1744_vm11 = vcmp.eq.f32.partialorder %v4943_v52, %v4102_v8 }
 0x3fe   : >> { %v921_v47 = vsel %vm905_vm6, %v3755_v17, -3e+38  ;;  %v919_v38 = vsel %vm903_vm7, %v3745_v23, -3e+38  ;;  %vm909_vm12 = vcmp.eq.s32.totalorder %v4041_v44, 1  ;;  %v4215_v12 = vsel %vm1888_vm8, 1, %v4892_v43 }
 0x3ff   : >> { %v4090_v61 = vpop.permute.xlu1 %1012  ;;  %v4092_v57 = vpop.permute.xlu0 %1009  ;;  %4960 = vst [vmem:[#allocation47_spill] sm:$0xff] %v4215_v12  ;;  %v940_v44 = vsel %vm333_vm1, %v923_v32, -inf  ;;  %v4231_v30 = vsel %vm1744_vm11, 1, %v4892_v43  ;;  %vm913_vm2 = vcmp.eq.s32.totalorder %v4062_v16, 1  ;;  %vm916_vm11 = vcmp.eq.s32.totalorder %v4070_v41, 1 }
 0x400   : >> { %1620 = vperm.xlu1 %3044, %v1601_v58   ;;  %1617 = vperm.xlu0 %3043, %v1600_v21   ;;  %v4110_v58 = vsel %vm1593_vm15, 1, %v4892_v43  ;;  %vm1743_vm15 = vcmp.eq.f32.partialorder %v4947_v48, %v4102_v8  ;;  %v4183_v48 = vsel %vm1741_vm13, 1, %v4892_v43  ;;  %vm912_vm13 = vcmp.eq.s32.totalorder %v4049_v59, 1  ;;  %4961 = vst [vmem:[#allocation48_spill] sm:$0xff] %v4231_v30 }
 0x401   : >> { %v925_v59 = vsel %vm909_vm12, %v3775_v35, -3e+38  ;;  %vm915_vm12 = vcmp.eq.s32.totalorder %v4072_v22, 1 }
 0x402   : >> { %v4252_v30 = vsel %vm333_vm1, %v925_v59, -inf }
 0x403   : >> { %v4114_v21 = vpop.permute.xlu1 %1018  ;;  %v4116_v4 = vpop.permute.xlu0 %1015 }
 0x404   : >> { %1626 = vperm.xlu1 %3044, %v1603_v49   ;;  %1623 = vperm.xlu0 %3043, %v1602_v51   ;;  %v4148_v51 = vsel %vm1598_vm9, 1, %v4892_v43  ;;  %v4151_v49 = vsel %vm1737_vm0, 1, %v4892_v43  ;;  %vm904_vm9 = vcmp.eq.s32.totalorder %v4021_v27, 1  ;;  %vm910_vm0 = vcmp.eq.s32.totalorder %v4039_v24, 1 }
 0x405   : >> { %v926_v52 = vsel %vm910_vm0, %v3780_v31, -3e+38  ;;  %v4234_v27 = vsel %vm333_vm1, %v921_v47, -inf  ;;  %v936_v24 = vsel %vm333_vm1, %v919_v38, -inf  ;;  %vm1059_vm6 = vcmp.eq.s32.totalorder %v4114_v21, 1 }
 0x406   : >> { %v946_v32 = vsel %vm333_vm1, %v926_v52, -inf  ;;  %vm1058_vm7 = vcmp.eq.s32.totalorder %v4116_v4, 1  ;;  %v945_v16 = vmax.f32 %v4234_v27, %v4252_v30  ;;  %vm918_vm0 = vcmp.eq.s32.totalorder %v4079_v14, 1 }
 0x407   : >> { %v4157_v18 = vpop.permute.xlu1 %1024  ;;  %v4159_v13 = vpop.permute.xlu0 %1021  ;;  %v1074_v30 = vsel %vm1058_vm7, %v3755_v17, -3e+38 }
 0x408   : >> { %1632 = vperm.xlu1 %3044, %v1605_v9   ;;  %1629 = vperm.xlu0 %3043, %v1604_v7   ;;  %v4191_v7 = vsel %vm1740_vm14, 1, %v4892_v43  ;;  %v4198_v9 = vsel %vm1743_vm15, 1, %v4892_v43  ;;  %vm911_vm14 = vcmp.eq.s32.totalorder %v4051_v45, 1  ;;  %vm914_vm15 = vcmp.eq.s32.totalorder %v4060_v20, 1 }
 0x409   : >> { %4958 = vst [vmem:[#allocation45_spill] sm:$0xff] %v4198_v9  ;;  %v920_v9 = vsel %vm904_vm9, %v3750_v25, -3e+38  ;;  %v928_v43 = vsel %vm912_vm13, %v3790_v62, -3e+38  ;;  %v941_v20 = vmax.f32 %v936_v24, %v940_v44  ;;  %vm1057_vm13 = vcmp.eq.s32.totalorder %v4090_v61, 1 }
 0x40a   : >> { %v927_v8 = vsel %vm911_vm14, %v3785_v46, -3e+38  ;;  %v950_v12 = vsel %vm333_vm1, %v928_v43, -inf  ;;  %vm1056_vm14 = vcmp.eq.s32.totalorder %v4092_v57, 1 }
 0x40b   : >> { %v1031_v26 = vpop.permute.xlu1 %1030  ;;  %v1028_v40 = vpop.permute.xlu0 %1027 }
 0x40c   : >> { %1638 = vperm.xlu1 %3044, %v1607_v6   ;;  %1635 = vperm.xlu0 %3043, %v1606_v5   ;;  %v922_v5 = vsel %vm906_vm4, %v3760_v50, -3e+38  ;;  %v942_v6 = vsel %vm333_vm1, %v924_v15, -inf  ;;  %v937_v15 = vsel %vm333_vm1, %v920_v9, -inf  ;;  %v930_v9 = vsel %vm914_vm15, %v3800_v1, -3e+38 }
 0x40d   : >> { %v939_v38 = vsel %vm333_vm1, %v922_v5, -inf  ;;  %v943_v47 = vmax.f32 %v937_v15, %v942_v6  ;;  %vm1063_vm3 = vcmp.eq.s32.totalorder %v1031_v26, 1  ;;  %vm1062_vm5 = vcmp.eq.s32.totalorder %v1028_v40, 1 }
 0x40e   : >> { %v947_v52 = vmax.f32 %v939_v38, %v946_v32  ;;  %v929_v6 = vsel %vm913_vm2, %v3795_v63, -3e+38  ;;  %v954_v43 = vsel %vm333_vm1, %v930_v9, -inf  ;;  %v1078_v44 = vsel %vm1062_vm5, %v3775_v35, -3e+38 }
 0x40f   : >> { %v4239_v45 = vpop.permute.xlu1 %1036  ;;  %v4241_v60 = vpop.permute.xlu0 %1033  ;;  %v4269_v24 = vmax.f32 %v943_v47, %v950_v12  ;;  %vm917_vm4 = vcmp.eq.s32.totalorder %v4081_v0, 1  ;;  %v952_v59 = vsel %vm333_vm1, %v929_v6, -inf  ;;  %v1096_v21 = vsel %vm333_vm1, %v1078_v44, -inf }
 0x410   : >> { %1644 = vperm.xlu1 %3044, %v4110_v58   ;;  %1641 = vperm.xlu0 %3043, %v4119_v3   ;;  %v948_v58 = vsel %vm333_vm1, %v927_v8, -inf  ;;  %v1079_v8 = vsel %vm1063_vm3, %v3780_v31, -3e+38  ;;  %v4285_v27 = vmax.f32 %v947_v52, %v954_v43  ;;  %v934_v32 = vsel %vm918_vm0, %v3820_v34, -3e+38 }
 0x411   : >> { %v4276_v4 = vmax.f32 %v941_v20, %v948_v58  ;;  %v1098_v15 = vsel %vm333_vm1, %v1079_v8, -inf  ;;  %v933_v38 = vsel %vm917_vm4, %v3815_v29, -3e+38  ;;  %v1090_v20 = vsel %vm333_vm1, %v1074_v30, -inf }
 0x412   : >> { %v1097_v52 = vmax.f32 %v1090_v20, %v1096_v21  ;;  %vm1061_vm15 = vcmp.eq.s32.totalorder %v4157_v18, 1  ;;  %vm1060_vm2 = vcmp.eq.s32.totalorder %v4159_v13, 1  ;;  %vm1064_vm7 = vcmp.eq.s32.totalorder %v4241_v60, 1 }
 0x413   : >> { %v1043_v3 = vpop.permute.xlu1 %1042  ;;  %v1040_v5 = vpop.permute.xlu0 %1039  ;;  %v1077_v43 = vsel %vm1061_vm15, %v3770_v54, -3e+38  ;;  %v4318_v30 = vmax.f32 %v945_v16, %v952_v59  ;;  %v931_v16 = vsel %vm915_vm12, %v3805_v39, -3e+38  ;;  %v1080_v61 = vsel %vm1064_vm7, %v3785_v46, -3e+38 }
 0x414   : >> { %vm1067_vm8 = vcmp.eq.s32.totalorder %v1043_v3, 1  ;;  %vm1066_vm9 = vcmp.eq.s32.totalorder %v1040_v5, 1  ;;  %1650 = vperm.xlu1 %3044, %v4122_v2   ;;  %1647 = vperm.xlu0 %3043, %v4128_v19   ;;  %v1075_v2 = vsel %vm1059_vm6, %v3760_v50, -3e+38  ;;  %vm1065_vm6 = vcmp.eq.s32.totalorder %v4239_v45, 1 }
 0x415   : >> { %v1083_v19 = vsel %vm1067_vm8, %v3800_v1, -3e+38  ;;  %v1082_v26 = vsel %vm1066_vm9, %v3795_v63, -3e+38  ;;  %v1091_v47 = vsel %vm333_vm1, %v1075_v2, -inf  ;;  %v4343_v57 = vsel %vm333_vm1, %v934_v32, -inf }
 0x416   : >> { %v1099_v9 = vmax.f32 %v1091_v47, %v1098_v15  ;;  %v1072_v15 = vsel %vm1056_vm14, %v3745_v23, -3e+38  ;;  %v1081_v41 = vsel %vm1065_vm6, %v3790_v62, -3e+38  ;;  %v1100_v20 = vsel %vm333_vm1, %v1080_v61, -inf  ;;  %v4964_v61 = vld [vmem:[#allocation46_spill] sm:$0xff] }
 0x417   : >> { %v4281_v40 = vpop.permute.xlu1 %1048  ;;  %v4283_v12 = vpop.permute.xlu0 %1045  ;;  %v1088_v45 = vsel %vm333_vm1, %v1072_v15, -inf  ;;  %v1102_v32 = vsel %vm333_vm1, %v1081_v41, -inf  ;;  %v4963_v41 = vld [vmem:[#allocation45_spill] sm:$0xff] }
 0x418   : >> { %1656 = vperm.xlu1 %3044, %v4131_v55   ;;  %1653 = vperm.xlu0 %3043, %v4138_v11   ;;  %v1106_v55 = vsel %vm333_vm1, %v1083_v19, -inf  ;;  %v1104_v11 = vsel %vm333_vm1, %v1082_v26, -inf  ;;  %v932_v19 = vsel %vm916_vm11, %v3810_v28, -3e+38  ;;  %v1073_v26 = vsel %vm1057_vm13, %v3750_v25, -3e+38 }
 0x419   : >> { %v1107_v0 = vmax.f32 %v1099_v9, %v1106_v55  ;;  %v1105_v3 = vmax.f32 %v1097_v52, %v1104_v11  ;;  %v1089_v21 = vsel %vm333_vm1, %v1073_v26, -inf  ;;  %vm1069_vm8 = vcmp.eq.s32.totalorder %v4281_v40, 1  ;;  %v4962_v52 = vld [vmem:[#allocation30_spill] sm:$0xff] }
 0x41a   : >> { %vm1068_vm9 = vcmp.eq.s32.totalorder %v4283_v12, 1  ;;  %v956_v55 = vsel %vm333_vm1, %v931_v16, -inf  ;;  %vm1890_vm11 = vcmp.eq.f32.partialorder %v3826_v36, %v4155_v56  ;;  %vm1889_vm12 = vcmp.eq.f32.partialorder %v4962_v52, %v4155_v56 }
 0x41b   : >> { %v1055_v14 = vpop.permute.xlu1 %1054  ;;  %v1052_v58 = vpop.permute.xlu0 %1051  ;;  %v957_v16 = vmax.f32 %v4276_v4, %v956_v55  ;;  %v4965_v55 = vld [vmem:[#allocation47_spill] sm:$0xff] }
 0x41c   : >> { %vm1071_vm3 = vcmp.eq.s32.totalorder %v1055_v14, 1  ;;  %vm1070_vm5 = vcmp.eq.s32.totalorder %v1052_v58, 1  ;;  %1662 = vperm.xlu1 %3044, %v4141_v53   ;;  %1659 = vperm.xlu0 %3043, %v4148_v51   ;;  %v1076_v53 = vsel %vm1060_vm2, %v3765_v42, -3e+38  ;;  %v963_v14 = vmax.f32 %v4285_v27, %v4343_v57 }
 0x41d   : >> { %v1087_v5 = vsel %vm1071_vm3, %v3820_v34, -3e+38  ;;  %v1086_v6 = vsel %vm1070_vm5, %v3815_v29, -3e+38  ;;  %v1092_v22 = vsel %vm333_vm1, %v1076_v53, -inf }
 0x41e   : >> { %v1114_v18 = vsel %vm333_vm1, %v1087_v5, -inf  ;;  %v1112_v13 = vsel %vm333_vm1, %v1086_v6, -inf  ;;  %v1093_v9 = vmax.f32 %v1088_v45, %v1092_v22  ;;  %v1084_v58 = vsel %vm1068_vm9, %v3805_v39, -3e+38 }
 0x41f   : >> { %v1115_v8 = vmax.f32 %v1107_v0, %v1114_v18  ;;  %v1113_v51 = vmax.f32 %v1105_v3, %v1112_v13  ;;  %v1165_v44 = vpop.permute.xlu1 %1164  ;;  %v1162_v2 = vpop.permute.xlu0 %1161  ;;  %v1108_v12 = vsel %vm333_vm1, %v1084_v58, -inf }
 0x420   : >> { %1772 = vperm.xlu1 %3044, %v4151_v49   ;;  %1769 = vperm.xlu0 %3043, %v4162_v10   ;;  %v4346_v49 = vsel %vm333_vm1, %v933_v38, -inf  ;;  %v1094_v10 = vsel %vm333_vm1, %v1077_v43, -inf  ;;  %vm1209_vm0 = vcmp.eq.s32.totalorder %v1165_v44, 1  ;;  %vm1208_vm4 = vcmp.eq.s32.totalorder %v1162_v2, 1 }
 0x421   : >> { %v4340_v59 = vmax.f32 %v1113_v51, %v1115_v8  ;;  %v958_v38 = vsel %vm333_vm1, %v932_v19, -inf  ;;  %v1095_v11 = vmax.f32 %v1089_v21, %v1094_v10  ;;  %v1101_v3 = vmax.f32 %v1093_v9, %v1100_v20 }
 0x422   : >> { %v1225_v5 = vsel %vm1209_vm0, %v3750_v25, -3e+38  ;;  %v1224_v6 = vsel %vm1208_vm4, %v3745_v23, -3e+38  ;;  %v959_v15 = vmax.f32 %v4269_v24, %v958_v38  ;;  %v4967_v9 = vmov 0  }
 0x423   : >> { %v1171_v60 = vpop.permute.xlu1 %1170  ;;  %v1168_v47 = vpop.permute.xlu0 %1167  ;;  %v1103_v0 = vmax.f32 %v1095_v11, %v1102_v32  ;;  %v1241_v53 = vsel %vm333_vm1, %v1225_v5, -inf  ;;  %v1240_v8 = vsel %vm333_vm1, %v1224_v6, -inf  ;;  %v4966_v11 = vld [vmem:[#allocation48_spill] sm:$0xff] }
 0x424   : >> { %1778 = vperm.xlu1 %3044, %v4165_v37   ;;  %1775 = vperm.xlu0 %3043, %v4177_v33   ;;  %v961_v37 = vmax.f32 %v4318_v30, %v4346_v49  ;;  %v1085_v33 = vsel %vm1069_vm8, %v3810_v28, -3e+38  ;;  %vm1211_vm13 = vcmp.eq.s32.totalorder %v1171_v60, 1  ;;  %vm1210_vm14 = vcmp.eq.s32.totalorder %v1168_v47, 1 }
 0x425   : >> { %v1110_v40 = vsel %vm333_vm1, %v1085_v33, -inf  ;;  %v1109_v49 = vmax.f32 %v1101_v3, %v1108_v12  ;;  %v1906_v33 = vsel %vm1890_vm11, 1, %v4967_v9  ;;  %v4968_v3 = vld [vmem:[#allocation32_spill] sm:$0xff] }
 0x426   : >> { %v1111_v57 = vmax.f32 %v1103_v0, %v1110_v40  ;;  %v965_v60 = vmax.f32 %v961_v37, %v963_v14  ;;  %v1905_v14 = vsel %vm1889_vm12, 1, %v4967_v9  ;;  %v964_v37 = vmax.f32 %v957_v16, %v959_v15 }
 0x427   : >> { %v1177_v27 = vpop.permute.xlu1 %1176  ;;  %v1174_v18 = vpop.permute.xlu0 %1173  ;;  %vm1892_vm8 = vcmp.eq.f32.partialorder %v4968_v3, %v4155_v56 }
 0x428   : >> { %vm1213_vm15 = vcmp.eq.s32.totalorder %v1177_v27, 1  ;;  %vm1212_vm2 = vcmp.eq.s32.totalorder %v1174_v18, 1  ;;  %1784 = vperm.xlu1 %3044, %v4183_v48   ;;  %1781 = vperm.xlu0 %3043, %v4191_v7   ;;  %v1227_v48 = vsel %vm1211_vm13, %v3760_v50, -3e+38  ;;  %v1226_v7 = vsel %vm1210_vm14, %v3755_v17, -3e+38 }
 0x429   : >> { %v1229_v13 = vsel %vm1213_vm15, %v3770_v54, -3e+38  ;;  %v1228_v43 = vsel %vm1212_vm2, %v3765_v42, -3e+38  ;;  %v1243_v21 = vsel %vm333_vm1, %v1227_v48, -inf  ;;  %v1242_v45 = vsel %vm333_vm1, %v1226_v7, -inf }
 0x42a   : >> { %v1246_v51 = vsel %vm333_vm1, %v1229_v13, -inf  ;;  %v1244_v44 = vsel %vm333_vm1, %v1228_v43, -inf  ;;  %v1116_v5 = vmax.f32 %v1109_v49, %v1111_v57  ;;  %v4969_v18 = vld [vmem:[#allocation31_spill] sm:$0xff]  ;;  %v966_v40 = vmax.f32 %v964_v37, %v965_v60  ;;  %v4970_v7 = vld [vmem:[#allocation34_spill] sm:$0xff] }
 0x42b   : >> { %v1247_v2 = vmax.f32 %v1241_v53, %v1246_v51  ;;  %v1245_v30 = vmax.f32 %v1240_v8, %v1244_v44  ;;  %v1183_v19 = vpop.permute.xlu1 %1182  ;;  %v1180_v26 = vpop.permute.xlu0 %1179  ;;  %vm1891_vm9 = vcmp.eq.f32.partialorder %v4969_v18, %v4155_v56  ;;  %v1908_v8 = vsel %vm1892_vm8, 1, %v4967_v9  ;;  %v4974_v60 = vld [vmem:[#allocation35_spill] sm:$0xff] }
 0x42c   : >> { %vm1215_vm3 = vcmp.eq.s32.totalorder %v1183_v19, 1  ;;  %vm1214_vm5 = vcmp.eq.s32.totalorder %v1180_v26, 1  ;;  %1790 = vperm.xlu1 %3044, %v4963_v41   ;;  %1787 = vperm.xlu0 %3043, %v4964_v61   ;;  %v1118_v53 = vmax.f32 %v1116_v5, %v4340_v59  ;;  %v1907_v48 = vsel %vm1891_vm9, 1, %v4967_v9  ;;  %v4971_v59 = vld [vmem:[#allocation33_spill] sm:$0xff] }
 0x42d   : >> { %v1231_v10 = vsel %vm1215_vm3, %v3780_v31, -3e+38  ;;  %v1230_v22 = vsel %vm1214_vm5, %v3775_v35, -3e+38  ;;  %vm1894_vm11 = vcmp.eq.f32.partialorder %v4970_v7, %v4155_v56  ;;  %vm1893_vm12 = vcmp.eq.f32.partialorder %v4971_v59, %v4155_v56 }
 0x42e   : >> { %v1250_v24 = vsel %vm333_vm1, %v1231_v10, -inf  ;;  %v1248_v4 = vsel %vm333_vm1, %v1230_v22, -inf  ;;  %v967_v19 = vrot.slane %v966_v40, 4  ;;  %v1119_v61 = vrot.slane %v1118_v53, 4 }
 0x42f   : >> { %v1251_v47 = vmax.f32 %v1243_v21, %v1250_v24  ;;  %v1249_v32 = vmax.f32 %v1242_v45, %v1248_v4  ;;  %v1189_v20 = vpop.permute.xlu1 %1188  ;;  %v1186_v38 = vpop.permute.xlu0 %1185  ;;  %v1910_v57 = vsel %vm1894_vm11, 1, %v4967_v9  ;;  %v1909_v22 = vsel %vm1893_vm12, 1, %v4967_v9  ;;  %v4972_v21 = vld [vmem:[#allocation44_spill] sm:$0xff]  ;;  %v4973_v45 = vld [vmem:[#allocation37_spill] sm:$0xff] }
 0x430   : >> { %vm1217_vm6 = vcmp.eq.s32.totalorder %v1189_v20, 1  ;;  %vm1216_vm7 = vcmp.eq.s32.totalorder %v1186_v38, 1  ;;  %1921 = vperm.xlu1 %3044, %v4965_v55   ;;  %1793 = vperm.xlu0 %3043, %v4966_v11   ;;  %vm1745_vm15 = vcmp.eq.f32.partialorder %v4973_v45, %v4972_v21  ;;  %vm1895_vm2 = vcmp.eq.f32.partialorder %v4974_v60, %v4155_v56 }
 0x431   : >> { %v1233_v58 = vsel %vm1217_vm6, %v3790_v62, -3e+38  ;;  %v1232_v0 = vsel %vm1216_vm7, %v3785_v46, -3e+38  ;;  %v1120_v11 = vmax.f32 %v1118_v53, %v1119_v61  ;;  %vm1897_vm8 = vcmp.eq.f32.partialorder %v4973_v45, %v4155_v56  ;;  %v4980_v45 = vld [vmem:[#allocation43_spill] sm:$0xff] }
 0x432   : >> { %v1254_v6 = vsel %vm333_vm1, %v1233_v58, -inf  ;;  %v1252_v27 = vsel %vm333_vm1, %v1232_v0, -inf  ;;  %v1911_v0 = vsel %vm1895_vm2, 1, %v4967_v9  ;;  %vm1751_vm2 = vcmp.eq.f32.partialorder %v4980_v45, %v4972_v21 }
 0x433   : >> { %v1255_v12 = vmax.f32 %v1247_v2, %v1254_v6  ;;  %v1253_v52 = vmax.f32 %v1245_v30, %v1252_v27  ;;  %v1195_v13 = vpop.permute.xlu1 %1194  ;;  %v1192_v43 = vpop.permute.xlu0 %1191  ;;  %v4975_v6 = vld [vmem:[#allocation39_spill] sm:$0xff]  ;;  %v4976_v27 = vld [vmem:[#allocation38_spill] sm:$0xff] }
 0x434   : >> { %vm1219_vm0 = vcmp.eq.s32.totalorder %v1195_v13, 1  ;;  %vm1218_vm4 = vcmp.eq.s32.totalorder %v1192_v43, 1  ;;  %1927 = vperm.xlu1 %3044, %v1906_v33   ;;  %1924 = vperm.xlu0 %3043, %v1905_v14   ;;  %v1761_v33 = vsel %vm1745_vm15, 1, %v4967_v9  ;;  %vm1747_vm6 = vcmp.eq.f32.partialorder %v4975_v6, %v4972_v21 }
 0x435   : >> { %v1235_v51 = vsel %vm1219_vm0, %v3800_v1, -3e+38  ;;  %v1234_v44 = vsel %vm1218_vm4, %v3795_v63, -3e+38  ;;  %vm1746_vm7 = vcmp.eq.f32.partialorder %v4976_v27, %v4972_v21  ;;  %v1121_v43 = vrot.slane %v1120_v11, 2 }
 0x436   : >> { %v1258_v2 = vsel %vm333_vm1, %v1235_v51, -inf  ;;  %v1256_v30 = vsel %vm333_vm1, %v1234_v44, -inf  ;;  %v1762_v51 = vsel %vm1746_vm7, 1, %v4967_v9  ;;  %v4977_v44 = vld [vmem:[#allocation36_spill] sm:$0xff]  ;;  %vm1899_vm0 = vcmp.eq.f32.partialorder %v4975_v6, %v4155_v56 }
 0x437   : >> { %v1259_v26 = vmax.f32 %v1251_v47, %v1258_v2  ;;  %v1257_v15 = vmax.f32 %v1249_v32, %v1256_v30  ;;  %v1201_v16 = vpop.permute.xlu1 %1200  ;;  %v1198_v41 = vpop.permute.xlu0 %1197  ;;  %v968_v47 = vmax.f32 %v966_v40, %v967_v19  ;;  %vm1896_vm9 = vcmp.eq.f32.partialorder %v4977_v44, %v4155_v56  ;;  %v4979_v19 = vld [vmem:[#allocation40_spill] sm:$0xff] }
 0x438   : >> { %vm1221_vm13 = vcmp.eq.s32.totalorder %v1201_v16, 1  ;;  %vm1220_vm14 = vcmp.eq.s32.totalorder %v1198_v41, 1  ;;  %1933 = vperm.xlu1 %3044, %v1908_v8   ;;  %1930 = vperm.xlu0 %3043, %v1907_v48   ;;  %v1763_v8 = vsel %vm1747_vm6, 1, %v4967_v9  ;;  %vm1898_vm4 = vcmp.eq.f32.partialorder %v4976_v27, %v4155_v56  ;;  %v4978_v48 = vld [vmem:[#allocation41_spill] sm:$0xff] }
 0x439   : >> { %v1237_v49 = vsel %vm1221_vm13, %v3810_v28, -3e+38  ;;  %v1236_v10 = vsel %vm1220_vm14, %v3805_v39, -3e+38  ;;  %v969_v18 = vrot.slane %v968_v47, 2  ;;  %vm1749_vm11 = vcmp.eq.f32.partialorder %v4978_v48, %v4972_v21 }
 0x43a   : >> { %v1262_v24 = vsel %vm333_vm1, %v1237_v49, -inf  ;;  %v1260_v4 = vsel %vm333_vm1, %v1236_v10, -inf  ;;  %vm1748_vm13 = vcmp.eq.f32.partialorder %v4979_v19, %v4972_v21  ;;  %v1912_v41 = vsel %vm1896_vm9, 1, %v4967_v9 }
 0x43b   : >> { %v1263_v32 = vmax.f32 %v1255_v12, %v1262_v24  ;;  %v1261_v20 = vmax.f32 %v1253_v52, %v1260_v4  ;;  %v1207_v38 = vpop.permute.xlu1 %1206  ;;  %v1204_v55 = vpop.permute.xlu0 %1203  ;;  %v970_v7 = vmax.f32 %v968_v47, %v969_v18  ;;  %v1915_v61 = vsel %vm1899_vm0, 1, %v4967_v9 }
 0x43c   : >> { %vm1223_vm3 = vcmp.eq.s32.totalorder %v1207_v38, 1  ;;  %vm1222_vm5 = vcmp.eq.s32.totalorder %v1204_v55, 1  ;;  %1939 = vperm.xlu1 %3044, %v1910_v57   ;;  %1936 = vperm.xlu0 %3043, %v1909_v22   ;;  %v1914_v57 = vsel %vm1898_vm4, 1, %v4967_v9  ;;  %vm2038_vm15 = vcmask 1041408  }
 0x43d   : >> { %v1268_v14 = vmax.f32 %v1261_v20, %v1263_v32  ;;  %v1239_v37 = vsel %vm1223_vm3, %v3820_v34, -3e+38  ;;  %v1238_v58 = vsel %vm1222_vm5, %v3815_v29, -3e+38  ;;  %v1765_v10 = vsel %vm1749_vm11, 1, %v4967_v9 }
 0x43e   : >> { %v1266_v3 = vsel %vm333_vm1, %v1239_v37, -inf  ;;  %v1264_v5 = vsel %vm333_vm1, %v1238_v58, -inf  ;;  %v1764_v22 = vsel %vm1748_vm13, 1, %v4967_v9  ;;  %v971_v24 = vrot.slane %v970_v7, 1 }
 0x43f   : >> { %v1267_v40 = vmax.f32 %v1259_v26, %v1266_v3  ;;  %v1265_v12 = vmax.f32 %v1257_v15, %v1264_v5  ;;  %v1317_v52 = vpop.permute.xlu1 %1316  ;;  %v1314_v13 = vpop.permute.xlu0 %1313  ;;  %v1122_v26 = vmax.f32 %v1120_v11, %v1121_v43  ;;  %v1913_v15 = vsel %vm1897_vm8, 1, %v4967_v9 }
 0x440   : >> { %1796 = vperm.xlu1 %3044, %v1761_v33   ;;  %1942 = vperm.xlu0 %3043, %v1911_v0   ;;  %vm1361_vm12 = vcmp.eq.s32.totalorder %v1317_v52, 1  ;;  %vm1360_vm14 = vcmp.eq.s32.totalorder %v1314_v13, 1  ;;  %v4981_v52 = vld [vmem:[#allocation42_spill] sm:$0xff]  ;;  %v972_v13 = vmax.f32 %v970_v7, %v971_v24  ;;  %vm1900_vm13 = vcmp.eq.f32.partialorder %v4979_v19, %v4155_v56 }
 0x441   : >> { %v1269_v53 = vmax.f32 %v1265_v12, %v1267_v40  ;;  %v1377_v49 = vsel %vm1361_vm12, %v3750_v25, -3e+38  ;;  %v1376_v60 = vsel %vm1360_vm14, %v3745_v23, -3e+38  ;;  %v1123_v20 = vrot.slane %v1122_v26, 1 }
 0x442   : >> { %v1393_v55 = vsel %vm333_vm1, %v1377_v49, -inf  ;;  %vm1750_vm0 = vcmp.eq.f32.partialorder %v4981_v52, %v4972_v21  ;;  %vm1901_vm12 = vcmp.eq.f32.partialorder %v4978_v48, %v4155_v56 }
 0x443   : >> { %v1270_v2 = vmax.f32 %v1268_v14, %v1269_v53  ;;  %v1323_v30 = vpop.permute.xlu1 %1322  ;;  %v1320_v59 = vpop.permute.xlu0 %1319  ;;  %v1392_v14 = vsel %vm333_vm1, %v1376_v60, -inf  ;;  %v1124_v12 = vmax.f32 %v1122_v26, %v1123_v20 }
 0x444   : >> { %1802 = vperm.xlu1 %3044, %v1763_v8   ;;  %1799 = vperm.xlu0 %3043, %v1762_v51   ;;  %vm1363_vm3 = vcmp.eq.s32.totalorder %v1323_v30, 1  ;;  %vm1362_vm5 = vcmp.eq.s32.totalorder %v1320_v59, 1 }
 0x445   : >> { %v1271_v16 = vrot.slane %v1270_v2, 4  ;;  %v1379_v37 = vsel %vm1363_vm3, %v3760_v50, -3e+38  ;;  %v1378_v5 = vsel %vm1362_vm5, %v3755_v17, -3e+38  ;;  %v2037_v7 = vsel %vm440_vm10, %v972_v13, %v1124_v12 }
 0x446   : >> { %v1395_v51 = vsel %vm333_vm1, %v1379_v37, -inf  ;;  %v1394_v44 = vsel %vm333_vm1, %v1378_v5, -inf  ;;  %vm1902_vm3 = vcmp.eq.f32.partialorder %v4981_v52, %v4155_v56 }
 0x447   : >> { %v1272_v4 = vmax.f32 %v1270_v2, %v1271_v16  ;;  %v1329_v47 = vpop.permute.xlu1 %1328  ;;  %v1326_v32 = vpop.permute.xlu0 %1325 }
 0x448   : >> { %vm1365_vm6 = vcmp.eq.s32.totalorder %v1329_v47, 1  ;;  %vm1364_vm7 = vcmp.eq.s32.totalorder %v1326_v32, 1  ;;  %1948 = vperm.xlu1 %3044, %v1913_v15   ;;  %1945 = vperm.xlu0 %3043, %v1912_v41  }
 0x449   : >> { %v1273_v38 = vrot.slane %v1272_v4, 2  ;;  %v1381_v11 = vsel %vm1365_vm6, %v3770_v54, -3e+38  ;;  %v1380_v33 = vsel %vm1364_vm7, %v3765_v42, -3e+38 }
 0x44a   : >> { %v1398_v58 = vsel %vm333_vm1, %v1381_v11, -inf  ;;  %v1396_v0 = vsel %vm333_vm1, %v1380_v33, -inf  ;;  %v1916_v11 = vsel %vm1900_vm13, 1, %v4967_v9 }
 0x44b   : >> { %v1274_v3 = vmax.f32 %v1272_v4, %v1273_v38  ;;  %v1399_v6 = vmax.f32 %v1393_v55, %v1398_v58  ;;  %v1397_v27 = vmax.f32 %v1392_v14, %v1396_v0  ;;  %v1335_v18 = vpop.permute.xlu1 %1334  ;;  %v1332_v40 = vpop.permute.xlu0 %1331  ;;  %v1766_v4 = vsel %vm1750_vm0, 1, %v4967_v9 }
 0x44c   : >> { %vm1367_vm8 = vcmp.eq.s32.totalorder %v1335_v18, 1  ;;  %vm1366_vm9 = vcmp.eq.s32.totalorder %v1332_v40, 1  ;;  %1954 = vperm.xlu1 %3044, %v1915_v61   ;;  %1951 = vperm.xlu0 %3043, %v1914_v57   ;;  %v1767_v61 = vsel %vm1751_vm2, 1, %v4967_v9  ;;  %v1917_v55 = vsel %vm1901_vm12, 1, %v4967_v9 }
 0x44d   : >> { %v1275_v43 = vrot.slane %v1274_v3, 1  ;;  %v1383_v53 = vsel %vm1367_vm8, %v3780_v31, -3e+38  ;;  %v1382_v8 = vsel %vm1366_vm9, %v3775_v35, -3e+38  ;;  %vm1903_vm2 = vcmp.eq.f32.partialorder %v4980_v45, %v4155_v56 }
 0x44e   : >> { %v1402_v2 = vsel %vm333_vm1, %v1383_v53, -inf  ;;  %v1400_v30 = vsel %vm333_vm1, %v1382_v8, -inf  ;;  %v1919_v5 = vsel %vm1903_vm2, 1, %v4967_v9  ;;  %vm2040_vm2 = vcmask 1042432  }
 0x44f   : >> { %v1276_v59 = vmax.f32 %v1274_v3, %v1275_v43  ;;  %v1403_v26 = vmax.f32 %v1395_v51, %v1402_v2  ;;  %v1401_v15 = vmax.f32 %v1394_v44, %v1400_v30  ;;  %v1341_v16 = vpop.permute.xlu1 %1340  ;;  %v1338_v41 = vpop.permute.xlu0 %1337 }
 0x450   : >> { %vm1369_vm4 = vcmp.eq.s32.totalorder %v1341_v16, 1  ;;  %vm1368_vm11 = vcmp.eq.s32.totalorder %v1338_v41, 1  ;;  %1808 = vperm.xlu1 %3044, %v1765_v10   ;;  %1805 = vperm.xlu0 %3043, %v1764_v22  }
 0x451   : >> { %v4507_v57 = vsel %vm2038_vm15, %v2037_v7, %v1276_v59  ;;  %v1385_v49 = vsel %vm1369_vm4, %v3790_v62, -3e+38  ;;  %v1384_v24 = vsel %vm1368_vm11, %v3785_v46, -3e+38 }
 0x452   : >> { %v1406_v10 = vsel %vm333_vm1, %v1385_v49, -inf  ;;  %v1404_v22 = vsel %vm333_vm1, %v1384_v24, -inf }
 0x453   : >> { %v1407_v60 = vmax.f32 %v1399_v6, %v1406_v10  ;;  %v1405_v47 = vmax.f32 %v1397_v27, %v1404_v22  ;;  %v1347_v32 = vpop.permute.xlu1 %1346  ;;  %v1344_v20 = vpop.permute.xlu0 %1343  ;;  %v1918_v6 = vsel %vm1902_vm3, 1, %v4967_v9 }
 0x454   : >> { %vm1371_vm14 = vcmp.eq.s32.totalorder %v1347_v32, 1  ;;  %vm1370_vm15 = vcmp.eq.s32.totalorder %v1344_v20, 1  ;;  %1814 = vperm.xlu1 %3044, %v1767_v61   ;;  %1811 = vperm.xlu0 %3043, %v1766_v4  }
 0x455   : >> { %v1387_v21 = vsel %vm1371_vm14, %v3800_v1, -3e+38  ;;  %v1386_v38 = vsel %vm1370_vm15, %v3795_v63, -3e+38 }
 0x456   : >> { %v1410_v48 = vsel %vm333_vm1, %v1387_v21, -inf  ;;  %v1408_v19 = vsel %vm333_vm1, %v1386_v38, -inf }
 0x457   : >> { %v1411_v33 = vmax.f32 %v1403_v26, %v1410_v48  ;;  %v1409_v14 = vmax.f32 %v1401_v15, %v1408_v19  ;;  %v1353_v37 = vpop.permute.xlu1 %1352  ;;  %v1350_v58 = vpop.permute.xlu0 %1349 }
 0x458   : >> { %vm1373_vm5 = vcmp.eq.s32.totalorder %v1353_v37, 1  ;;  %vm1372_vm6 = vcmp.eq.s32.totalorder %v1350_v58, 1  ;;  %1960 = vperm.xlu1 %3044, %v1917_v55   ;;  %1957 = vperm.xlu0 %3043, %v1916_v11  }
 0x459   : >> { %v1389_v0 = vsel %vm1373_vm5, %v3810_v28, -3e+38  ;;  %v1388_v3 = vsel %vm1372_vm6, %v3805_v39, -3e+38 }
 0x45a   : >> { %v1414_v45 = vsel %vm333_vm1, %v1389_v0, -inf  ;;  %v1412_v56 = vsel %vm333_vm1, %v1388_v3, -inf }
 0x45b   : >> { %v1415_v27 = vmax.f32 %v1407_v60, %v1414_v45  ;;  %v1413_v18 = vmax.f32 %v1405_v47, %v1412_v56  ;;  %v1359_v40 = vpop.permute.xlu1 %1358  ;;  %v1356_v12 = vpop.permute.xlu0 %1355 }
 0x45c   : >> { %vm1375_vm7 = vcmp.eq.s32.totalorder %v1359_v40, 1  ;;  %vm1374_vm8 = vcmp.eq.s32.totalorder %v1356_v12, 1  ;;  %1966 = vperm.xlu1 %3044, %v1919_v5   ;;  %1963 = vperm.xlu0 %3043, %v1918_v6  }
 0x45d   : >> { %v1420_v52 = vmax.f32 %v1413_v18, %v1415_v27  ;;  %v1391_v13 = vsel %vm1375_vm7, %v3820_v34, -3e+38  ;;  %v1390_v43 = vsel %vm1374_vm8, %v3815_v29, -3e+38 }
 0x45e   : >> { %v1418_v53 = vsel %vm333_vm1, %v1391_v13, -inf  ;;  %v1416_v9 = vsel %vm333_vm1, %v1390_v43, -inf }
 0x45f   : >> { %v1419_v8 = vmax.f32 %v1411_v33, %v1418_v53  ;;  %v1417_v51 = vmax.f32 %v1409_v14, %v1416_v9  ;;  %v1469_v44 = vpop.permute.xlu1 %1468  ;;  %v1466_v2 = vpop.permute.xlu0 %1465 }
 0x460   : >> { %vm1513_vm9 = vcmp.eq.s32.totalorder %v1469_v44, 1  ;;  %vm1512_vm0 = vcmp.eq.s32.totalorder %v1466_v2, 1 }
 0x461   : >> { %v1421_v30 = vmax.f32 %v1417_v51, %v1419_v8  ;;  %v1529_v41 = vsel %vm1513_vm9, %v3750_v25, -3e+38  ;;  %v1528_v61 = vsel %vm1512_vm0, %v3745_v23, -3e+38 }
 0x462   : >> { %v1545_v10 = vsel %vm333_vm1, %v1529_v41, -inf  ;;  %v1544_v47 = vsel %vm333_vm1, %v1528_v61, -inf }
 0x463   : >> { %v1422_v59 = vmax.f32 %v1420_v52, %v1421_v30  ;;  %v1475_v26 = vpop.permute.xlu1 %1474  ;;  %v1472_v15 = vpop.permute.xlu0 %1471 }
 0x464   : >> { %vm1515_vm4 = vcmp.eq.s32.totalorder %v1475_v26, 1  ;;  %vm1514_vm11 = vcmp.eq.s32.totalorder %v1472_v15, 1 }
 0x465   : >> { %v1423_v16 = vrot.slane %v1422_v59, 4  ;;  %v1531_v32 = vsel %vm1515_vm4, %v3760_v50, -3e+38  ;;  %v1530_v55 = vsel %vm1514_vm11, %v3755_v17, -3e+38 }
 0x466   : >> { %v1547_v0 = vsel %vm333_vm1, %v1531_v32, -inf  ;;  %v1546_v3 = vsel %vm333_vm1, %v1530_v55, -inf }
 0x467   : >> { %v1424_v7 = vmax.f32 %v1422_v59, %v1423_v16  ;;  %v1481_v49 = vpop.permute.xlu1 %1480  ;;  %v1478_v24 = vpop.permute.xlu0 %1477 }
 0x468   : >> { %vm1517_vm12 = vcmp.eq.s32.totalorder %v1481_v49, 1  ;;  %vm1516_vm13 = vcmp.eq.s32.totalorder %v1478_v24, 1 }
 0x469   : >> { %v1425_v4 = vrot.slane %v1424_v7, 2  ;;  %v1533_v22 = vsel %vm1517_vm12, %v3770_v54, -3e+38  ;;  %v1532_v60 = vsel %vm1516_vm13, %v3765_v42, -3e+38 }
 0x46a   : >> { %v1550_v20 = vsel %vm333_vm1, %v1533_v22, -inf  ;;  %v1548_v21 = vsel %vm333_vm1, %v1532_v60, -inf }
 0x46b   : >> { %v1426_v38 = vmax.f32 %v1424_v7, %v1425_v4  ;;  %v1551_v11 = vmax.f32 %v1545_v10, %v1550_v20  ;;  %v1549_v48 = vmax.f32 %v1544_v47, %v1548_v21  ;;  %v1487_v19 = vpop.permute.xlu1 %1486  ;;  %v1484_v33 = vpop.permute.xlu0 %1483 }
 0x46c   : >> { %vm1519_vm14 = vcmp.eq.s32.totalorder %v1487_v19, 1  ;;  %vm1518_vm15 = vcmp.eq.s32.totalorder %v1484_v33, 1 }
 0x46d   : >> { %v1427_v14 = vrot.slane %v1426_v38, 1  ;;  %v1535_v37 = vsel %vm1519_vm14, %v3780_v31, -3e+38  ;;  %v1534_v58 = vsel %vm1518_vm15, %v3775_v35, -3e+38 }
 0x46e   : >> { %v1554_v5 = vsel %vm333_vm1, %v1535_v37, -inf  ;;  %v1552_v6 = vsel %vm333_vm1, %v1534_v58, -inf }
 0x46f   : >> { %v1428_v45 = vmax.f32 %v1426_v38, %v1427_v14  ;;  %v1555_v56 = vmax.f32 %v1547_v0, %v1554_v5  ;;  %v1553_v27 = vmax.f32 %v1546_v3, %v1552_v6  ;;  %v1493_v18 = vpop.permute.xlu1 %1492  ;;  %v1490_v40 = vpop.permute.xlu0 %1489 }
 0x470   : >> { %vm1521_vm3 = vcmp.eq.s32.totalorder %v1493_v18, 1  ;;  %vm1520_vm5 = vcmp.eq.s32.totalorder %v1490_v40, 1 }
 0x471   : >> { %v4558_v12 = vsel %vm2040_vm2, %v4507_v57, %v1428_v45  ;;  %v1537_v52 = vsel %vm1521_vm3, %v3790_v62, -3e+38  ;;  %v1536_v13 = vsel %vm1520_vm5, %v3785_v46, -3e+38 }
 0x472   : >> { %v1558_v43 = vsel %vm333_vm1, %v1537_v52, -inf  ;;  %v1556_v53 = vsel %vm333_vm1, %v1536_v13, -inf }
 0x473   : >> { %v1559_v9 = vmax.f32 %v1551_v11, %v1558_v43  ;;  %v1557_v8 = vmax.f32 %v1549_v48, %v1556_v53  ;;  %v1499_v51 = vpop.permute.xlu1 %1498  ;;  %v1496_v44 = vpop.permute.xlu0 %1495 }
 0x474   : >> { %vm1523_vm6 = vcmp.eq.s32.totalorder %v1499_v51, 1  ;;  %vm1522_vm7 = vcmp.eq.s32.totalorder %v1496_v44, 1 }
 0x475   : >> { %v1539_v2 = vsel %vm1523_vm6, %v3800_v1, -3e+38  ;;  %v1538_v30 = vsel %vm1522_vm7, %v3795_v63, -3e+38  ;;  %vm2042_vm6 = vcmask 1043456  }
 0x476   : >> { %v1562_v57 = vsel %vm333_vm1, %v1539_v2, -inf  ;;  %v1560_v59 = vsel %vm333_vm1, %v1538_v30, -inf }
 0x477   : >> { %v1563_v26 = vmax.f32 %v1555_v56, %v1562_v57  ;;  %v1561_v15 = vmax.f32 %v1553_v27, %v1560_v59  ;;  %v1505_v16 = vpop.permute.xlu1 %1504  ;;  %v1502_v41 = vpop.permute.xlu0 %1501 }
 0x478   : >> { %vm1525_vm8 = vcmp.eq.s32.totalorder %v1505_v16, 1  ;;  %vm1524_vm9 = vcmp.eq.s32.totalorder %v1502_v41, 1 }
 0x479   : >> { %v1541_v7 = vsel %vm1525_vm8, %v3810_v28, -3e+38  ;;  %v1540_v61 = vsel %vm1524_vm9, %v3805_v39, -3e+38 }
 0x47a   : >> { %v1566_v49 = vsel %vm333_vm1, %v1541_v7, -inf  ;;  %v1564_v24 = vsel %vm333_vm1, %v1540_v61, -inf }
 0x47b   : >> { %v1567_v4 = vmax.f32 %v1559_v9, %v1566_v49  ;;  %v1565_v10 = vmax.f32 %v1557_v8, %v1564_v24  ;;  %v1511_v22 = vpop.permute.xlu1 %1510  ;;  %v1508_v60 = vpop.permute.xlu0 %1507 }
 0x47c   : >> { %vm1527_vm0 = vcmp.eq.s32.totalorder %v1511_v22, 1  ;;  %vm1526_vm4 = vcmp.eq.s32.totalorder %v1508_v60, 1 }
 0x47d   : >> { %v1572_v47 = vmax.f32 %v1565_v10, %v1567_v4  ;;  %v1543_v32 = vsel %vm1527_vm0, %v3820_v34, -3e+38  ;;  %v1542_v20 = vsel %vm1526_vm4, %v3815_v29, -3e+38 }
 0x47e   : >> { %v1570_v21 = vsel %vm333_vm1, %v1543_v32, -inf  ;;  %v1568_v38 = vsel %vm333_vm1, %v1542_v20, -inf }
 0x47f   : >> { %v1571_v55 = vmax.f32 %v1563_v26, %v1570_v21  ;;  %v1569_v11 = vmax.f32 %v1561_v15, %v1568_v38  ;;  %v1621_v48 = vpop.permute.xlu1 %1620  ;;  %v1618_v19 = vpop.permute.xlu0 %1617 }
 0x480   : >> { %vm1665_vm11 = vcmp.eq.s32.totalorder %v1621_v48, 1  ;;  %vm1664_vm12 = vcmp.eq.s32.totalorder %v1618_v19, 1 }
 0x481   : >> { %v1573_v33 = vmax.f32 %v1569_v11, %v1571_v55  ;;  %v1681_v3 = vsel %vm1665_vm11, %v3750_v25, -3e+38  ;;  %v1680_v6 = vsel %vm1664_vm12, %v3745_v23, -3e+38 }
 0x482   : >> { %v1697_v18 = vsel %vm333_vm1, %v1681_v3, -inf  ;;  %v1696_v13 = vsel %vm333_vm1, %v1680_v6, -inf }
 0x483   : >> { %v1574_v14 = vmax.f32 %v1572_v47, %v1573_v33  ;;  %v1627_v37 = vpop.permute.xlu1 %1626  ;;  %v1624_v58 = vpop.permute.xlu0 %1623 }
 0x484   : >> { %vm1667_vm13 = vcmp.eq.s32.totalorder %v1627_v37, 1  ;;  %vm1666_vm14 = vcmp.eq.s32.totalorder %v1624_v58, 1 }
 0x485   : >> { %v1575_v0 = vrot.slane %v1574_v14, 4  ;;  %v1683_v43 = vsel %vm1667_vm13, %v3760_v50, -3e+38  ;;  %v1682_v51 = vsel %vm1666_vm14, %v3755_v17, -3e+38  ;;  %vm2044_vm14 = vcmask 1044480  }
 0x486   : >> { %v1699_v16 = vsel %vm333_vm1, %v1683_v43, -inf  ;;  %v1698_v41 = vsel %vm333_vm1, %v1682_v51, -inf }
 0x487   : >> { %v1576_v5 = vmax.f32 %v1574_v14, %v1575_v0  ;;  %v1633_v45 = vpop.permute.xlu1 %1632  ;;  %v1630_v56 = vpop.permute.xlu0 %1629 }
 0x488   : >> { %vm1669_vm15 = vcmp.eq.s32.totalorder %v1633_v45, 1  ;;  %vm1668_vm2 = vcmp.eq.s32.totalorder %v1630_v56, 1 }
 0x489   : >> { %v1577_v27 = vrot.slane %v1576_v5, 2  ;;  %v1685_v40 = vsel %vm1669_vm15, %v3770_v54, -3e+38  ;;  %v1684_v52 = vsel %vm1668_vm2, %v3765_v42, -3e+38 }
 0x48a   : >> { %v1702_v53 = vsel %vm333_vm1, %v1685_v40, -inf  ;;  %v1700_v9 = vsel %vm333_vm1, %v1684_v52, -inf }
 0x48b   : >> { %v1578_v8 = vmax.f32 %v1576_v5, %v1577_v27  ;;  %v1703_v44 = vmax.f32 %v1697_v18, %v1702_v53  ;;  %v1701_v2 = vmax.f32 %v1696_v13, %v1700_v9  ;;  %v1639_v30 = vpop.permute.xlu1 %1638  ;;  %v1636_v57 = vpop.permute.xlu0 %1635 }
 0x48c   : >> { %vm1671_vm3 = vcmp.eq.s32.totalorder %v1639_v30, 1  ;;  %vm1670_vm5 = vcmp.eq.s32.totalorder %v1636_v57, 1 }
 0x48d   : >> { %v1579_v59 = vrot.slane %v1578_v8, 1  ;;  %v1687_v26 = vsel %vm1671_vm3, %v3780_v31, -3e+38  ;;  %v1686_v15 = vsel %vm1670_vm5, %v3775_v35, -3e+38 }
 0x48e   : >> { %v1706_v7 = vsel %vm333_vm1, %v1687_v26, -inf  ;;  %v1704_v61 = vsel %vm333_vm1, %v1686_v15, -inf }
 0x48f   : >> { %v1580_v49 = vmax.f32 %v1578_v8, %v1579_v59  ;;  %v1707_v24 = vmax.f32 %v1699_v16, %v1706_v7  ;;  %v1705_v4 = vmax.f32 %v1698_v41, %v1704_v61  ;;  %v1645_v10 = vpop.permute.xlu1 %1644  ;;  %v1642_v22 = vpop.permute.xlu0 %1641 }
 0x490   : >> { %vm1673_vm7 = vcmp.eq.s32.totalorder %v1645_v10, 1  ;;  %vm1672_vm8 = vcmp.eq.s32.totalorder %v1642_v22, 1 }
 0x491   : >> { %v2043_v60 = vsel %vm2042_vm6, %v4558_v12, %v1580_v49  ;;  %v1689_v47 = vsel %vm1673_vm7, %v3790_v62, -3e+38  ;;  %v1688_v32 = vsel %vm1672_vm8, %v3785_v46, -3e+38 }
 0x492   : >> { %v1710_v20 = vsel %vm333_vm1, %v1689_v47, -inf  ;;  %v1708_v21 = vsel %vm333_vm1, %v1688_v32, -inf }
 0x493   : >> { %v1711_v38 = vmax.f32 %v1703_v44, %v1710_v20  ;;  %v1709_v55 = vmax.f32 %v1701_v2, %v1708_v21  ;;  %v1651_v11 = vpop.permute.xlu1 %1650  ;;  %v1648_v48 = vpop.permute.xlu0 %1647 }
 0x494   : >> { %vm1675_vm9 = vcmp.eq.s32.totalorder %v1651_v11, 1  ;;  %vm1674_vm0 = vcmp.eq.s32.totalorder %v1648_v48, 1 }
 0x495   : >> { %v1691_v19 = vsel %vm1675_vm9, %v3800_v1, -3e+38  ;;  %v1690_v33 = vsel %vm1674_vm0, %v3795_v63, -3e+38 }
 0x496   : >> { %v1714_v12 = vsel %vm333_vm1, %v1691_v19, -inf  ;;  %v1712_v14 = vsel %vm333_vm1, %v1690_v33, -inf }
 0x497   : >> { %v1715_v37 = vmax.f32 %v1707_v24, %v1714_v12  ;;  %v1713_v58 = vmax.f32 %v1705_v4, %v1712_v14  ;;  %v1657_v0 = vpop.permute.xlu1 %1656  ;;  %v1654_v3 = vpop.permute.xlu0 %1653 }
 0x498   : >> { %vm1677_vm4 = vcmp.eq.s32.totalorder %v1657_v0, 1  ;;  %vm1676_vm11 = vcmp.eq.s32.totalorder %v1654_v3, 1 }
 0x499   : >> { %v1693_v5 = vsel %vm1677_vm4, %v3810_v28, -3e+38  ;;  %v1692_v6 = vsel %vm1676_vm11, %v3805_v39, -3e+38 }
 0x49a   : >> { %v1718_v45 = vsel %vm333_vm1, %v1693_v5, -inf  ;;  %v1716_v56 = vsel %vm333_vm1, %v1692_v6, -inf }
 0x49b   : >> { %v1719_v27 = vmax.f32 %v1711_v38, %v1718_v45  ;;  %v1717_v18 = vmax.f32 %v1709_v55, %v1716_v56  ;;  %v1663_v40 = vpop.permute.xlu1 %1662  ;;  %v1660_v52 = vpop.permute.xlu0 %1659 }
 0x49c   : >> { %vm1679_vm12 = vcmp.eq.s32.totalorder %v1663_v40, 1  ;;  %vm1678_vm13 = vcmp.eq.s32.totalorder %v1660_v52, 1 }
 0x49d   : >> { %v1724_v13 = vmax.f32 %v1717_v18, %v1719_v27  ;;  %v1695_v43 = vsel %vm1679_vm12, %v3820_v34, -3e+38  ;;  %v1694_v53 = vsel %vm1678_vm13, %v3815_v29, -3e+38 }
 0x49e   : >> { %v1722_v9 = vsel %vm333_vm1, %v1695_v43, -inf  ;;  %v1720_v8 = vsel %vm333_vm1, %v1694_v53, -inf }
 0x49f   : >> { %v1723_v51 = vmax.f32 %v1715_v37, %v1722_v9  ;;  %v1721_v44 = vmax.f32 %v1713_v58, %v1720_v8  ;;  %v1773_v2 = vpop.permute.xlu1 %1772  ;;  %v1770_v30 = vpop.permute.xlu0 %1769 }
 0x4a0   : >> { %vm1817_vm3 = vcmp.eq.s32.totalorder %v1773_v2, 1  ;;  %vm1816_vm5 = vcmp.eq.s32.totalorder %v1770_v30, 1 }
 0x4a1   : >> { %v1725_v57 = vmax.f32 %v1721_v44, %v1723_v51  ;;  %v1833_v58 = vsel %vm1817_vm3, %v3750_v25, -3e+38  ;;  %v1832_v0 = vsel %vm1816_vm5, %v3745_v23, -3e+38 }
 0x4a2   : >> { %v1849_v40 = vsel %vm333_vm1, %v1833_v58, -inf  ;;  %v1848_v52 = vsel %vm333_vm1, %v1832_v0, -inf }
 0x4a3   : >> { %v1726_v59 = vmax.f32 %v1724_v13, %v1725_v57  ;;  %v1779_v26 = vpop.permute.xlu1 %1778  ;;  %v1776_v15 = vpop.permute.xlu0 %1775 }
 0x4a4   : >> { %vm1819_vm6 = vcmp.eq.s32.totalorder %v1779_v26, 1  ;;  %vm1818_vm7 = vcmp.eq.s32.totalorder %v1776_v15, 1 }
 0x4a5   : >> { %v1727_v16 = vrot.slane %v1726_v59, 4  ;;  %v1835_v3 = vsel %vm1819_vm6, %v3760_v50, -3e+38  ;;  %v1834_v5 = vsel %vm1818_vm7, %v3755_v17, -3e+38 }
 0x4a6   : >> { %v4628_v43 = vsel %vm333_vm1, %v1835_v3, -inf  ;;  %v4631_v53 = vsel %vm333_vm1, %v1834_v5, -inf }
 0x4a7   : >> { %v1728_v41 = vmax.f32 %v1726_v59, %v1727_v16  ;;  %v1785_v7 = vpop.permute.xlu1 %1784  ;;  %v1782_v61 = vpop.permute.xlu0 %1781 }
 0x4a8   : >> { %vm1821_vm15 = vcmp.eq.s32.totalorder %v1785_v7, 1  ;;  %vm1820_vm2 = vcmp.eq.s32.totalorder %v1782_v61, 1 }
 0x4a9   : >> { %v1729_v49 = vrot.slane %v1728_v41, 2  ;;  %v1837_v37 = vsel %vm1821_vm15, %v3770_v54, -3e+38 }
 0x4aa   : >> { %v4620_v6 = vsel %vm333_vm1, %v1837_v37, -inf }
 0x4ab   : >> { %v1730_v24 = vmax.f32 %v1728_v41, %v1729_v49  ;;  %v1791_v4 = vpop.permute.xlu1 %1790  ;;  %v1788_v10 = vpop.permute.xlu0 %1787  ;;  %v1855_v9 = vmax.f32 %v1849_v40, %v4620_v6 }
 0x4ac   : >> { %vm1823_vm8 = vcmp.eq.s32.totalorder %v1791_v4, 1  ;;  %vm1822_vm9 = vcmp.eq.s32.totalorder %v1788_v10, 1 }
 0x4ad   : >> { %v1731_v22 = vrot.slane %v1730_v24, 1  ;;  %v1839_v56 = vsel %vm1823_vm8, %v3780_v31, -3e+38  ;;  %v1838_v13 = vsel %vm1822_vm9, %v3775_v35, -3e+38 }
 0x4ae   : >> { %v1858_v51 = vsel %vm333_vm1, %v1839_v56, -inf  ;;  %v1856_v2 = vsel %vm333_vm1, %v1838_v13, -inf }
 0x4af   : >> { %v1732_v47 = vmax.f32 %v1730_v24, %v1731_v22  ;;  %v1922_v32 = vpop.permute.xlu1 %1921  ;;  %v1794_v20 = vpop.permute.xlu0 %1793  ;;  %v1859_v16 = vmax.f32 %v4628_v43, %v1858_v51 }
 0x4b0   : >> { %vm1824_vm0 = vcmp.eq.s32.totalorder %v1794_v20, 1  ;;  %vm1968_vm4 = vcmp.eq.s32.totalorder %v1922_v32, 1 }
 0x4b1   : >> { %v4609_v21 = vsel %vm2044_vm14, %v2043_v60, %v1732_v47  ;;  %v1836_v60 = vsel %vm1820_vm2, %v3765_v42, -3e+38  ;;  %v1840_v44 = vsel %vm1824_vm0, %v3785_v46, -3e+38  ;;  %v1984_v59 = vsel %vm1968_vm4, %v3745_v23, -3e+38 }
 0x4b2   : >> { %v1852_v45 = vsel %vm333_vm1, %v1836_v60, -inf  ;;  %v1860_v15 = vsel %vm333_vm1, %v1840_v44, -inf  ;;  %v1857_v47 = vmax.f32 %v4631_v53, %v1856_v2 }
 0x4b3   : >> { %v1928_v38 = vpop.permute.xlu1 %1927  ;;  %v1925_v55 = vpop.permute.xlu0 %1924  ;;  %v1853_v8 = vmax.f32 %v1848_v52, %v1852_v45 }
 0x4b4   : >> { %vm1970_vm12 = vcmp.eq.s32.totalorder %v1928_v38, 1  ;;  %vm1969_vm13 = vcmp.eq.s32.totalorder %v1925_v55, 1  ;;  %v4655_v55 = vsel %vm333_vm1, %v1984_v59, -inf }
 0x4b5   : >> { %v1986_v41 = vsel %vm1970_vm12, %v3755_v17, -3e+38  ;;  %v1985_v7 = vsel %vm1969_vm13, %v3750_v25, -3e+38 }
 0x4b7   : >> { %v1934_v11 = vpop.permute.xlu1 %1933  ;;  %v1931_v48 = vpop.permute.xlu0 %1930 }
 0x4b8   : >> { %vm1972_vm11 = vcmp.eq.s32.totalorder %v1934_v11, 1  ;;  %vm1971_vm14 = vcmp.eq.s32.totalorder %v1931_v48, 1  ;;  %v1861_v11 = vmax.f32 %v1853_v8, %v1860_v15  ;;  %v4658_v48 = vsel %vm333_vm1, %v1986_v41, -inf }
 0x4b9   : >> { %v1988_v26 = vsel %vm1972_vm11, %v3765_v42, -3e+38  ;;  %v1987_v61 = vsel %vm1971_vm14, %v3760_v50, -3e+38 }
 0x4ba   : >> { %v4645_v49 = vsel %vm333_vm1, %v1988_v26, -inf }
 0x4bb   : >> { %v1940_v19 = vpop.permute.xlu1 %1939  ;;  %v1937_v33 = vpop.permute.xlu0 %1936 }
 0x4bc   : >> { %vm1974_vm15 = vcmp.eq.s32.totalorder %v1940_v19, 1  ;;  %vm1973_vm2 = vcmp.eq.s32.totalorder %v1937_v33, 1  ;;  %v2001_v19 = vsel %vm333_vm1, %v1985_v7, -inf  ;;  %v2005_v33 = vmax.f32 %v4655_v55, %v4645_v49 }
 0x4bd   : >> { %v1990_v24 = vsel %vm1974_vm15, %v3775_v35, -3e+38  ;;  %v1989_v4 = vsel %vm1973_vm2, %v3770_v54, -3e+38 }
 0x4be   : >> { %v2008_v37 = vsel %vm333_vm1, %v1990_v24, -inf  ;;  %v2006_v60 = vsel %vm333_vm1, %v1989_v4, -inf }
 0x4bf   : >> { %v1797_v12 = vpop.permute.xlu1 %1796  ;;  %v4611_v14 = vpop.permute.xlu0 %1942  ;;  %v2007_v15 = vmax.f32 %v2001_v19, %v2006_v60  ;;  %v2009_v19 = vmax.f32 %v4658_v48, %v2008_v37 }
 0x4c0   : >> { %vm1825_vm3 = vcmp.eq.s32.totalorder %v1797_v12, 1  ;;  %vm1975_vm7 = vcmp.eq.s32.totalorder %v4611_v14, 1  ;;  %v2003_v12 = vsel %vm333_vm1, %v1987_v61, -inf }
 0x4c1   : >> { %v1841_v32 = vsel %vm1825_vm3, %v3790_v62, -3e+38  ;;  %v1991_v0 = vsel %vm1975_vm7, %v3780_v31, -3e+38  ;;  %vm2048_vm7 = vcmask 1046528  }
 0x4c2   : >> { %v1862_v58 = vsel %vm333_vm1, %v1841_v32, -inf  ;;  %v2010_v14 = vsel %vm333_vm1, %v1991_v0, -inf }
 0x4c3   : >> { %v1803_v27 = vpop.permute.xlu1 %1802  ;;  %v1800_v18 = vpop.permute.xlu0 %1799 }
 0x4c4   : >> { %vm1827_vm5 = vcmp.eq.s32.totalorder %v1803_v27, 1  ;;  %vm1826_vm6 = vcmp.eq.s32.totalorder %v1800_v18, 1  ;;  %v1863_v18 = vmax.f32 %v1855_v9, %v1862_v58 }
 0x4c5   : >> { %v1843_v20 = vsel %vm1827_vm5, %v3800_v1, -3e+38  ;;  %v1842_v38 = vsel %vm1826_vm6, %v3795_v63, -3e+38  ;;  %vm2046_vm6 = vcmask 1045504  }
 0x4c6   : >> { %v1866_v3 = vsel %vm333_vm1, %v1843_v20, -inf  ;;  %v1864_v5 = vsel %vm333_vm1, %v1842_v38, -inf }
 0x4c7   : >> { %v1949_v30 = vpop.permute.xlu1 %1948  ;;  %v1946_v57 = vpop.permute.xlu0 %1945  ;;  %v1867_v13 = vmax.f32 %v1859_v16, %v1866_v3  ;;  %v1865_v43 = vmax.f32 %v1857_v47, %v1864_v5  ;;  %v2011_v16 = vmax.f32 %v2003_v12, %v2010_v14 }
 0x4c8   : >> { %vm1977_vm8 = vcmp.eq.s32.totalorder %v1949_v30, 1  ;;  %vm1976_vm9 = vcmp.eq.s32.totalorder %v1946_v57, 1 }
 0x4c9   : >> { %v1993_v53 = vsel %vm1977_vm8, %v3790_v62, -3e+38  ;;  %v1992_v8 = vsel %vm1976_vm9, %v3785_v46, -3e+38 }
 0x4ca   : >> { %v2014_v61 = vsel %vm333_vm1, %v1993_v53, -inf  ;;  %v2012_v49 = vsel %vm333_vm1, %v1992_v8, -inf }
 0x4cb   : >> { %v1955_v10 = vpop.permute.xlu1 %1954  ;;  %v1952_v22 = vpop.permute.xlu0 %1951  ;;  %v2015_v12 = vmax.f32 %v2007_v15, %v2014_v61  ;;  %v2013_v0 = vmax.f32 %v2005_v33, %v2012_v49 }
 0x4cc   : >> { %vm1979_vm11 = vcmp.eq.s32.totalorder %v1955_v10, 1  ;;  %vm1978_vm12 = vcmp.eq.s32.totalorder %v1952_v22, 1 }
 0x4cd   : >> { %v1995_v2 = vsel %vm1979_vm11, %v3800_v1, -3e+38  ;;  %v1994_v30 = vsel %vm1978_vm12, %v3795_v63, -3e+38 }
 0x4ce   : >> { %v2018_v47 = vsel %vm333_vm1, %v1995_v2, -inf  ;;  %v2016_v32 = vsel %vm333_vm1, %v1994_v30, -inf }
 0x4cf   : >> { %v1809_v6 = vpop.permute.xlu1 %1808  ;;  %v1806_v45 = vpop.permute.xlu0 %1805  ;;  %v2019_v3 = vmax.f32 %v2011_v16, %v2018_v47 }
 0x4d0   : >> { %vm1829_vm0 = vcmp.eq.s32.totalorder %v1809_v6, 1  ;;  %vm1828_vm4 = vcmp.eq.s32.totalorder %v1806_v45, 1 }
 0x4d1   : >> { %v1845_v56 = vsel %vm1829_vm0, %v3810_v28, -3e+38  ;;  %v1844_v27 = vsel %vm1828_vm4, %v3805_v39, -3e+38 }
 0x4d2   : >> { %v1870_v40 = vsel %vm333_vm1, %v1845_v56, -inf  ;;  %v1868_v52 = vsel %vm333_vm1, %v1844_v27, -inf  ;;  %v2017_v56 = vmax.f32 %v2009_v19, %v2016_v32 }
 0x4d3   : >> { %v1815_v51 = vpop.permute.xlu1 %1814  ;;  %v1812_v44 = vpop.permute.xlu0 %1811  ;;  %v1871_v9 = vmax.f32 %v1863_v18, %v1870_v40  ;;  %v1869_v57 = vmax.f32 %v1861_v11, %v1868_v52 }
 0x4d4   : >> { %vm1831_vm13 = vcmp.eq.s32.totalorder %v1815_v51, 1  ;;  %vm1830_vm14 = vcmp.eq.s32.totalorder %v1812_v44, 1 }
 0x4d5   : >> { %v1847_v59 = vsel %vm1831_vm13, %v3820_v34, -3e+38  ;;  %v1846_v26 = vsel %vm1830_vm14, %v3815_v29, -3e+38  ;;  %v1876_v20 = vmax.f32 %v1869_v57, %v1871_v9 }
 0x4d6   : >> { %v1874_v41 = vsel %vm333_vm1, %v1847_v59, -inf  ;;  %v1872_v7 = vsel %vm333_vm1, %v1846_v26, -inf }
 0x4d7   : >> { %v1875_v24 = vmax.f32 %v1867_v13, %v1874_v41  ;;  %v1873_v4 = vmax.f32 %v1865_v43, %v1872_v7  ;;  %v1961_v10 = vpop.permute.xlu1 %1960  ;;  %v1958_v22 = vpop.permute.xlu0 %1957  ;;  %v2051_v41 = vld [vmem:[%s2050_s22] sm:$0xff] }
 0x4d8   : >> { %vm1981_vm15 = vcmp.eq.s32.totalorder %v1961_v10, 1  ;;  %vm1980_vm2 = vcmp.eq.s32.totalorder %v1958_v22, 1 }
 0x4d9   : >> { %v1877_v38 = vmax.f32 %v1873_v4, %v1875_v24  ;;  %v1997_v55 = vsel %vm1981_vm15, %v3810_v28, -3e+38  ;;  %v1996_v11 = vsel %vm1980_vm2, %v3805_v39, -3e+38 }
 0x4da   : >> { %v2022_v60 = vsel %vm333_vm1, %v1997_v55, -inf  ;;  %v2020_v58 = vsel %vm333_vm1, %v1996_v11, -inf }
 0x4db   : >> { %v1878_v5 = vmax.f32 %v1876_v20, %v1877_v38  ;;  %v1967_v6 = vpop.permute.xlu1 %1966  ;;  %v1964_v45 = vpop.permute.xlu0 %1963  ;;  %v2023_v27 = vmax.f32 %v2015_v12, %v2022_v60  ;;  %v2021_v14 = vmax.f32 %v2013_v0, %v2020_v58 }
 0x4dc   : >> { %vm1983_vm3 = vcmp.eq.s32.totalorder %v1967_v6, 1  ;;  %vm1982_vm5 = vcmp.eq.s32.totalorder %v1964_v45, 1 }
 0x4dd   : >> { %v1879_v18 = vrot.slane %v1878_v5, 4  ;;  %v1999_v40 = vsel %vm1983_vm3, %v3820_v34, -3e+38  ;;  %v1998_v48 = vsel %vm1982_vm5, %v3815_v29, -3e+38  ;;  %v2028_v8 = vmax.f32 %v2021_v14, %v2023_v27 }
 0x4de   : >> { %v2026_v37 = vsel %vm333_vm1, %v1999_v40, -inf  ;;  %v2024_v52 = vsel %vm333_vm1, %v1998_v48, -inf }
 0x4df   : >> { %v1880_v13 = vmax.f32 %v1878_v5, %v1879_v18  ;;  %v2027_v33 = vmax.f32 %v2019_v3, %v2026_v37  ;;  %v2025_v43 = vmax.f32 %v2017_v56, %v2024_v52 }
 0x4e1   : >> { %v1881_v53 = vrot.slane %v1880_v13, 2  ;;  %v2029_v51 = vmax.f32 %v2025_v43, %v2027_v33 }
 0x4e3   : >> { %v2030_v44 = vmax.f32 %v2028_v8, %v2029_v51  ;;  %v1882_v2 = vmax.f32 %v1880_v13, %v1881_v53 }
 0x4e5   : >> { %v2031_v30 = vrot.slane %v2030_v44, 4  ;;  %v1883_v57 = vrot.slane %v1882_v2, 1 }
 0x4e7   : >> { %v2032_v9 = vmax.f32 %v2030_v44, %v2031_v30  ;;  %v1884_v15 = vmax.f32 %v1882_v2, %v1883_v57 }
 0x4e9   : >> { %v2033_v59 = vrot.slane %v2032_v9, 2  ;;  %v2047_v61 = vsel %vm2046_vm6, %v4609_v21, %v1884_v15 }
 0x4eb   : >> { %v2034_v26 = vmax.f32 %v2032_v9, %v2033_v59 }
 0x4ed   : >> { %v2035_v16 = vrot.slane %v2034_v26, 1 }
 0x4ee   : > { %818 = sbr.rel (!%p816_p8) target bundleno = 858 (0x35a), region = 125 }
 0x4ef   : >> { %v2036_v7 = vmax.f32 %v2034_v26, %v2035_v16 }
 0x4f1   : >> { %v2049_v49 = vsel %vm2048_vm7, %v2047_v61, %v2036_v7 }
 0x4f2   : >> { %v2052_v24 = vmax.f32 %v2051_v41, %v2049_v49 }
 0x4f4   : >> { %2053 = vst.msk [vmem:[%s2050_s22] sm:$0xff] %vm333_vm1, %v2052_v24 }
 0x4f5 PF: > { %v2057_v4 = vld [vmem:[#allocation3] sm:$0xff]  ;;  %v2058_v10 = vld [vmem:[#allocation3 + $0x8] sm:$0xff]  ;;  %v4984_v20 = vmov 0   ;;  %v3229_v21 = vmov 0.0|0.0   ;;  %v4985_v38 = vmov 0.0   ;;  %v2059_v11 = vld [vmem:[#allocation3 + $0x10] sm:$0xff]  ;;  %v2169_v14 = vlaneseq }
 0x4f6   : > { %v4982_v22 = vld [vmem:[#allocation21_spill] sm:$0xff]  ;;  %v4983_v47 = vld [vmem:[#allocation22_spill] sm:$0xff]  ;;  %3045 = vset.pattern.permute.xlu1 %v4984_v20  ;;  %vm2065_vm8 = vcmp.gt.f32.partialorder %v2057_v4, 0.0  ;;  %vm2066_vm9 = vcmp.gt.f32.partialorder %v2058_v10, 0.0  ;;  %2865 = vmatprep.subr.bf16.mxu0 %v3229_v21  ;;  %v4986_v19 = vld [vmem:[#allocation23_spill] sm:$0xff]  ;;  %vm2067_vm10 = vcmp.gt.f32.partialorder %v2059_v11, 0.0 }
 0x4f7   : > { %v2866_v32 = vpack.c.bf16 %v4983_v47, %v4982_v22  ;;  %v2665_v55 = vsel %vm2065_vm8, 1.0, %v4985_v38  ;;  %v4987_v12 = vld [vmem:[#allocation24_spill] sm:$0xff]  ;;  %v2666_v23 = vsel %vm2066_vm9, 1.0, %v4985_v38  ;;  %v4988_v17 = vld [vmem:[#allocation25_spill] sm:$0xff]  ;;  %v4989_v50 = vld [vmem:[#allocation26_spill] sm:$0xff]  ;;  %vm3230_vm0 = vmmov 0  }
 0x4f8   : > { %v2869_v60 = vpack.c.bf16 %v4987_v12, %v4986_v19  ;;  %2137 = vxpose.xlu0.b32.start [1/8] (short) (narrow) %v2665_v55, 8  ;;  %v2060_v25 = vld [vmem:[#allocation3 + $0x18] sm:$0xff]  ;;  %v2872_v42 = vpack.c.bf16 %v4989_v50, %v4988_v17  ;;  %2811 = vmatprep.mubr.msk.f32.mxu0 %vm3230_vm0, %v4985_v38  ;;  %v2081_v54 = vsel %vm2065_vm8, 1, %v4984_v20  ;;  %v2667_v35 = vsel %vm2067_vm10, 1.0, %v4985_v38  ;;  %v2061_v46 = vld [vmem:[#allocation3 + $0x20] sm:$0xff]  ;;  %v2062_v29 = vld [vmem:[#allocation3 + $0x28] sm:$0xff] }
 0x4f9   : > { %2867 = vmatpush3.bf16.msra.mxu0 %v2866_v32  ;;  %2090 = vperm.xlu1 %3045, %v2081_v54   ;;  %vm2068_vm4 = vcmp.gt.f32.partialorder %v2060_v25, 0.0  ;;  %v2082_v31 = vsel %vm2066_vm9, 1, %v4984_v20  ;;  %v4990_v62 = vld [vmem:[#allocation27_spill] sm:$0xff]  ;;  %v4991_v63 = vld [vmem:[#allocation28_spill] sm:$0xff]  ;;  %vm2069_vm11 = vcmp.gt.f32.partialorder %v2061_v46, 0.0  ;;  %v2083_v28 = vsel %vm2067_vm10, 1, %v4984_v20 }
 0x4fa   : > { %2868 = vmatprep.subr.bf16.mxu0 %v3229_v21  ;;  %v2875_v1 = vpack.c.bf16 %v4991_v63, %v4990_v62  ;;  %v2668_v39 = vsel %vm2068_vm4, 1.0, %v4985_v38  ;;  %v2669_v34 = vsel %vm2069_vm11, 1.0, %v4985_v38  ;;  %vm2070_vm12 = vcmp.gt.f32.partialorder %v2062_v29, 0.0  ;;  %v2063_v58 = vld [vmem:[#allocation3 + $0x30] sm:$0xff]  ;;  %v2064_v5 = vld [vmem:[#allocation3 + $0x38] sm:$0xff]  ;;  %s2707_s23 = sshll.u32 %s3204_s24, 8 }
 0x4fb   : > { %v2084_v36 = vsel %vm2068_vm4, 1, %v4984_v20  ;;  %v2670_v0 = vsel %vm2070_vm12, 1.0, %v4985_v38  ;;  %vm2071_vm13 = vcmp.gt.f32.partialorder %v2063_v58, 0.0  ;;  %v2085_v3 = vsel %vm2069_vm11, 1, %v4984_v20  ;;  %v2073_v51 = vld [vmem:[#allocation2] sm:$0xff]  ;;  %v2074_v44 = vld [vmem:[#allocation2 + $0x8] sm:$0xff]  ;;  %s4756_s12 = scalar_lea.hbm %s4849_s5, %s2707_s23 }
 0x4fc   : > { %2138 = vxpose.xlu0.b32.cont [2/8] (short) (narrow) %v2666_v23, 8  ;;  %v2671_v6 = vsel %vm2071_vm13, 1.0, %v4985_v38  ;;  %vm2072_vm14 = vcmp.gt.f32.partialorder %v2064_v5, 0.0  ;;  %v2086_v45 = vsel %vm2070_vm12, 1, %v4984_v20  ;;  %v2087_v27 = vsel %vm2071_vm13, 1, %v4984_v20  ;;  %v2075_v9 = vld [vmem:[#allocation2 + $0x10] sm:$0xff] }
 0x4fd   : > { %2870 = vmatpush3.bf16.msra.mxu0 %v2869_v60  ;;  %2093 = vperm.xlu1 %3045, %v2082_v31   ;;  %v2672_v56 = vsel %vm2072_vm14, 1.0, %v4985_v38  ;;  %v2088_v18 = vsel %vm2072_vm14, 1, %v4984_v20  ;;  %v2170_v40 = vshrl.u32 %v2169_v14, 7  ;;  %vm2173_vm15 = vcmask 523264   ;;  %v2076_v57 = vld [vmem:[#allocation2 + $0x18] sm:$0xff]  ;;  %v2077_v15 = vld [vmem:[#allocation2 + $0x20] sm:$0xff] }
 0x4fe   : > { %2871 = vmatprep.subr.bf16.mxu0 %v3229_v21  ;;  %v2877_v2 = vpack.c.bf16 %v2074_v44, %v2073_v51  ;;  %v2883_v59 = vpack.c.bf16 %v2076_v57, %v2075_v9  ;;  %v2078_v16 = vld [vmem:[#allocation2 + $0x28] sm:$0xff]  ;;  %v2079_v61 = vld [vmem:[#allocation2 + $0x30] sm:$0xff]  ;;  %v2080_v49 = vld [vmem:[#allocation2 + $0x38] sm:$0xff]  ;;  %v2256_v12 = vand.u32 127, %v2169_v14  ;;  %s2469_s15 = sshll.u32 %s3595_s25, 4  ;;  %s2452_s18 = scalar_lea.sflag [#allocation6], %s3389_s16  ;;  %s4758_s15 = int_to_ptr.vmem [resolvable:$true] %s2469_s15 }
 0x4ff   : > { %v2171_v48 = vsub.s32 0, %v2170_v40  ;;  %v2889_v41 = vpack.c.bf16 %v2078_v16, %v2077_v15  ;;  %v2895_v24 = vpack.c.bf16 %v2080_v49, %v2079_v61  ;;  %v2254_v55 = vadd.s32 8, %v2170_v40  ;;  %s3090_s8 = scalar_lea.vmem %s4758_s15, 256  ;;  %p4992_p11 = scmp.ne.s32.totalorder %s4903_s7, 0 }
 0x500   : > { %2139 = vxpose.xlu0.b32.cont [3/8] (short) (narrow) %v2667_v35, 8  ;;  %p3091_p10 = scmp.ne.s32.totalorder %s4758_s15, %s3090_s8  ;;  %s3231_s0 = smov [#allocation9]  }
 0x501   : > { %2873 = vmatpush3.bf16.msra.mxu0 %v2872_v42  ;;  %2096 = vperm.xlu1 %3045, %v2083_v28   ;;  %s3094_s2 = sshll.u32 %s3231_s0, 4  ;;  %s3095_s2 = int_to_ptr.vmem [resolvable:$false] %s3094_s2 }
 0x502   : > { %2874 = vmatprep.subr.bf16.mxu0 %v3229_v21  ;;  %p3092_p13 = pnand %p3091_p10, %p4992_p11  ;;  %s3096_s28 = scalar_lea.vmem %s3095_s2, 512 }
 0x503   : > { %p3097_p2 = scmp.lt.s32.totalorder %s4758_s15, %s3095_s2  ;;  %p3098_p3 = scmp.lt.s32.totalorder %s3096_s28, %s3090_s8 }
 0x504   : > { %2140 = vxpose.xlu0.b32.cont [4/8] (short) (narrow) %v2668_v39, 8  ;;  %p3093_p1 = pneg %p3092_p13 }
 0x505   : > { %2876 = vmatpush3.bf16.msra.mxu0 %v2875_v1  ;;  %2099 = vperm.xlu1 %3045, %v2084_v36   ;;  %p3099_p5 = por %p3098_p3, %p3097_p2 }
 0x507   : > { %p3100_p6 = pnand %p3099_p5, %p3093_p1 }
 0x508   : > { %2141 = vxpose.xlu0.b32.cont [5/8] (short) (narrow) %v2669_v34, 8 }
 0x509   : > { %2102 = vperm.xlu1 %3045, %v2085_v3  }
 0x50c   : > { %2142 = vxpose.xlu0.b32.cont [6/8] (short) (narrow) %v2670_v0, 8 }
 0x50d   : > { %2105 = vperm.xlu1 %3045, %v2086_v45  }
 0x510   : > { %2143 = vxpose.xlu0.b32.cont [7/8] (short) (narrow) %v2671_v6, 8 }
 0x511   : > { %2108 = vperm.xlu1 %3045, %v2087_v27  }
 0x514   : > { %2144 = vxpose.xlu0.b32.end [8/8] (short) (narrow) %v2672_v56, 8 }
 0x515   : > { %2111 = vperm.xlu1 %3045, %v2088_v18  }
 0x53d   : > { %3046 = vset.pattern.permute.xlu0 %v4984_v20 }
 0x578   : > { %v2153_v37 = vpop.trf.xlu0  ;;  %v2091_v13 = vpop.permute.xlu1 %2090 }
 0x579   : > { %v2172_v52 = vrot.slane %v2153_v37, %v2171_v48  ;;  %vm2113_vm2 = vcmp.eq.s32.totalorder %v2091_v13, 1  ;;  %vm2249_vm13 = vcmp.gt.f32.partialorder %v2153_v37, 0.0 }
 0x57b   : > { %2812 = vmatmul.mubr.msk.f32.vlgmr.msra.gmra.mrb[0].mxu0 %vm2173_vm15, %v2172_v52 }
 0x57c   : > { %v2094_v33 = vpop.permute.xlu1 %2093 }
 0x57d   : > { %vm2114_vm3 = vcmp.eq.s32.totalorder %v2094_v33, 1 }
 0x57e   : > { %vm2878_vm7 = vmpackc.low %vm2114_vm3, %vm2113_vm2 }
 0x57f   : > { %2879 = vmatprep.subr.msk.bf16.mxu1 %vm2878_vm7, %v2877_v2 }
 0x580   : > { %v2097_v43 = vpop.permute.xlu1 %2096  ;;  %2882 = vmatpush3.bf16.msk.msra.mxu1 %vm2878_vm7, %v2877_v2 }
 0x581   : > { %vm2115_vm5 = vcmp.eq.s32.totalorder %v2097_v43, 1 }
 0x584   : > { %v2100_v53 = vpop.permute.xlu1 %2099 }
 0x585   : > { %vm2116_vm6 = vcmp.eq.s32.totalorder %v2100_v53, 1 }
 0x586   : > { %vm2884_vm8 = vmpackc.low %vm2116_vm6, %vm2115_vm5 }
 0x587   : > { %2885 = vmatprep.subr.msk.bf16.mxu1 %vm2884_vm8, %v2883_v59 }
 0x588   : > { %v2103_v8 = vpop.permute.xlu1 %2102  ;;  %2888 = vmatpush3.bf16.msk.msra.mxu1 %vm2884_vm8, %v2883_v59 }
 0x589   : > { %vm2117_vm9 = vcmp.eq.s32.totalorder %v2103_v8, 1 }
 0x58c   : > { %v2106_v30 = vpop.permute.xlu1 %2105 }
 0x58d   : > { %vm2118_vm10 = vcmp.eq.s32.totalorder %v2106_v30, 1 }
 0x58e   : > { %vm2890_vm0 = vmpackc.low %vm2118_vm10, %vm2117_vm9 }
 0x58f   : > { %2891 = vmatprep.subr.msk.bf16.mxu1 %vm2890_vm0, %v2889_v41 }
 0x590   : > { %v2109_v26 = vpop.permute.xlu1 %2108  ;;  %2894 = vmatpush3.bf16.msk.msra.mxu1 %vm2890_vm0, %v2889_v41 }
 0x591   : > { %vm2119_vm4 = vcmp.eq.s32.totalorder %v2109_v26, 1 }
 0x594   : > { %v2112_v7 = vpop.permute.xlu1 %2111 }
 0x595   : > { %vm2120_vm11 = vcmp.eq.s32.totalorder %v2112_v7, 1 }
 0x596   : > { %vm2896_vm12 = vmpackc.low %vm2120_vm11, %vm2119_vm4 }
 0x597   : > { %2897 = vmatprep.subr.msk.bf16.mxu1 %vm2896_vm12, %v2895_v24 }
 0x598   : > { %2900 = vmatpush3.bf16.msk.msra.mxu1 %vm2896_vm12, %v2895_v24 }
 0x64e   : > { %v2243_v4 = vpop.f32.mrb[0].mxu0 }
 0x64f   : > { %v2931_v10 = vtrunc.f32 %v2243_v4  ;;  %v2813_v22 = vpop.f32.mrb[1].mxu0 }
 0x651   : > { %v2932_v47 = vcvt.f32.s32 %v2931_v10 }
 0x653   : > { %v2674_v32 = vadd.s32 4294967295, %v2932_v47 }
 0x655   : > { %vm2250_vm14 = vcmp.lt.s32.totalorder %v2674_v32, 16  ;;  %v2260_v21 = vrot.slane %v2674_v32, %v2171_v48 }
 0x656   : > { %vm2251_vm2 = vmand %vm2249_vm13, %vm2250_vm14 }
 0x657   : > { %v2263_v11 = vsel %vm2251_vm2, 1, %v4984_v20  ;;  %vm2261_vm3 = vcmp.eq.s32.totalorder %v2170_v40, %v2260_v21  ;;  %vm2262_vm6 = vcmp.eq.s32.totalorder %v2254_v55, %v2260_v21 }
 0x658   : > { %v2267_v19 = vrot.slane %v2263_v11, %v2171_v48 }
 0x65a   : > { %vm2268_vm5 = vcmp.eq.s32.totalorder %v2267_v19, 1 }
 0x65b   : > { %vm2269_vm7 = vmand %vm2261_vm3, %vm2268_vm5 }
 0x65c   : > { %vm2270_vm8 = vmand %vm2262_vm6, %vm2268_vm5  ;;  %v2675_v60 = vsel %vm2269_vm7, 1.0, %v4985_v38  ;;  %v2271_v23 = vsel %vm2269_vm7, 1, %v4984_v20  ;;  %v2359_v25 = vsel %vm2269_vm7, %v2256_v12, 0 }
 0x65d   : > { %2830 = vmatprep.mubr.msk.f32.mxu1 %vm2173_vm15, %v2675_v60  ;;  %v2676_v17 = vsel %vm2270_vm8, 1.0, %v4985_v38  ;;  %v2387_v50 = vsel %vm2173_vm15, %v2271_v23, 0  ;;  %v2361_v42 = vsel %vm2173_vm15, %v2359_v25, 0  ;;  %v2360_v54 = vsel %vm2270_vm8, %v2256_v12, 0 }
 0x65e   : > { %2831 = vmatmul.mubr.msk.f32.vlgmr.msra.gmra.mrb[0].mxu1 %vm2173_vm15, %v2676_v17  ;;  %v2389_v35 = vshrl.u32 %v2387_v50, 16  ;;  %v2363_v31 = vshrl.u32 %v2361_v42, 16  ;;  %v2374_v46 = vsel %vm2173_vm15, %v2360_v54, 0  ;;  %v2272_v62 = vsel %vm2270_vm8, 1, %v4984_v20 }
 0x65f   : > { %v2376_v39 = vshrl.u32 %v2374_v46, 16  ;;  %v2388_v28 = vand.u32 65535, %v2387_v50  ;;  %v2400_v29 = vsel %vm2173_vm15, %v2272_v62, 0  ;;  %v2375_v36 = vand.u32 65535, %v2374_v46 }
 0x660   : > { %v2391_v63 = vcvt.s32.f32 %v2389_v35  ;;  %v2365_v1 = vcvt.s32.f32 %v2363_v31  ;;  %v2402_v58 = vshrl.u32 %v2400_v29, 16  ;;  %v2362_v5 = vand.u32 65535, %v2361_v42 }
 0x661   : > { %v2378_v38 = vcvt.s32.f32 %v2376_v39  ;;  %v2390_v34 = vcvt.s32.f32 %v2388_v28  ;;  %v2377_v0 = vcvt.s32.f32 %v2375_v36  ;;  %v2401_v6 = vand.u32 65535, %v2400_v29 }
 0x662   : > { %2394 = vadd.xlane.f32.xlu0 %v2391_v63  ;;  %2368 = vadd.xlane.f32.xlu1 %v2365_v1  ;;  %v2404_v3 = vcvt.s32.f32 %v2402_v58  ;;  %v2364_v20 = vcvt.s32.f32 %v2362_v5 }
 0x663   : > { %v2403_v45 = vcvt.s32.f32 %v2401_v6 }
 0x666   : > { %2381 = vadd.xlane.f32.xlu0 %v2378_v38  ;;  %2392 = vadd.xlane.f32.xlu1 %v2390_v34 }
 0x66a   : > { %2379 = vadd.xlane.f32.xlu0 %v2377_v0  ;;  %2407 = vadd.xlane.f32.xlu1 %v2404_v3 }
 0x66e   : > { %2366 = vadd.xlane.f32.xlu1 %v2364_v20 }
 0x672   : > { %2405 = vadd.xlane.f32.xlu1 %v2403_v45 }
 0x6ef   : > { %v2369_v56 = vpop.xlane.xlu1 %2368  ;;  %v2395_v27 = vpop.xlane.xlu0 %2394 }
 0x6f0   : > { %v2397_v14 = vcvt.f32.s32 %v2395_v27  ;;  %v2371_v52 = vcvt.f32.s32 %v2369_v56 }
 0x6f2   : > { %v2398_v13 = vshll.u32 %v2397_v14, 16  ;;  %v2372_v53 = vshll.u32 %v2371_v52, 16 }
 0x6f3   : > { %v2393_v18 = vpop.xlane.xlu1 %2392  ;;  %v2382_v40 = vpop.xlane.xlu0 %2381 }
 0x6f4   : > { %v2396_v48 = vcvt.f32.s32 %v2393_v18  ;;  %v2384_v2 = vcvt.f32.s32 %v2382_v40 }
 0x6f6   : > { %v2399_v33 = vadd.s32 %v2398_v13, %v2396_v48  ;;  %v2385_v16 = vshll.u32 %v2384_v2, 16 }
 0x6f7   : > { %v2408_v37 = vpop.xlane.xlu1 %2407  ;;  %v2380_v8 = vpop.xlane.xlu0 %2379 }
 0x6f8   : > { %v2410_v51 = vcvt.f32.s32 %v2408_v37  ;;  %v2383_v9 = vcvt.f32.s32 %v2380_v8  ;;  %vm2413_vm15 = vcmp.gt.s32.totalorder %v2399_v33, 0 }
 0x6fa   : > { %v2411_v59 = vshll.u32 %v2410_v51, 16  ;;  %v2386_v7 = vadd.s32 %v2385_v16, %v2383_v9 }
 0x6fb   : > { %v2367_v43 = vpop.xlane.xlu1 %2366 }
 0x6fc   : > { %v2370_v44 = vcvt.f32.s32 %v2367_v43 }
 0x6fe   : > { %v2373_v30 = vadd.s32 %v2372_v53, %v2370_v44 }
 0x6ff   : > { %v2406_v57 = vpop.xlane.xlu1 %2405 }
 0x700   : > { %v2409_v26 = vcvt.f32.s32 %v2406_v57  ;;  %v2415_v15 = vsel %vm2413_vm15, %v2373_v30, 4294967295 }
 0x701   : > { %2417 = vxpose.xlu1.b32.start [1/2] (short) (narrow) %v2415_v15, 8 }
 0x702   : > { %v2412_v41 = vadd.s32 %v2411_v59, %v2409_v26 }
 0x704   : > { %vm2414_vm9 = vcmp.gt.s32.totalorder %v2412_v41, 0 }
 0x705   : > { %v2416_v61 = vsel %vm2414_vm9, %v2386_v7, 4294967295 }
 0x706   : > { %2418 = vxpose.xlu1.b32.end [2/2] (short) (narrow) %v2416_v61, 8 }
 0x731   : > { %v2832_v49 = vpop.f32.mrb[0].mxu1 }
 0x732   : > { %2358 = vst.msk [vmem:[%s3595_s25 + $0x8] sm:$0xff] %vm333_vm1, %v2832_v49  ;;  %v2347_v24 = vpop.f32.mrb[1].mxu1 }
 0x733   : > { %2357 = vst.msk [vmem:[%s3595_s25] sm:$0xff] %vm333_vm1, %v2347_v24 }
 0x734   : > { %3103 = shalt.err (!%p3100_p6)
}
 0x735   : > { %s3104_s25 = scalar_lea.hbm %s4756_s12, 256  ;;  %s3108_s19 = scalar_lea.hbm %s4849_s5, 512 }
 0x736   : > { %p3105_p7 = scmp.ne.s32.totalorder %s4756_s12, %s3104_s25  ;;  %p3109_p0 = scmp.lt.u32.totalorder %s4756_s12, %s4849_s5 }
 0x737   : > { %p3110_p4 = scmp.lt.u32.totalorder %s3108_s19, %s3104_s25  ;;  %p3112_p10 = scmp.lt.u32.totalorder %s3104_s25, %s4756_s12 }
 0x738   : > { %p3106_p9 = pnand %p3105_p7, %p4992_p11 }
 0x739   : > { %p3111_p8 = por %p3110_p4, %p3109_p0 }
 0x73a   : > { %p3107_p12 = pneg %p3106_p9 }
 0x73b   : > { %p3113_p13 = por %p3112_p10, %p3111_p8 }
 0x73d   : > { %p3114_p1 = pnand %p3113_p13, %p3107_p12 }
 0x73f   : > { %3117 = shalt.err (!%p3114_p1)
}
 0x740   : > { %s3232_s30 = smov 128   ;;  %s3233_s29 = smov 8   ;;  %vm2449_vm1 = vcmask 122880  }
 0x741   : > { %2941 = dma.vmem_to_hbm [thread:$0]  (%p4992_p11), %s4758_s15, 256, %s4756_s12, %s2452_s18, %s3232_s30, %s3232_s30, %s3233_s29  }
 0x742   : > { %s2690_s17 = sshll.u32 %s3204_s24, 4  ;;  %s2485_s22 = sshll.u32 %s309_s10, 4  ;;  %s4796_s22 = int_to_ptr.vmem [resolvable:$true] %s2485_s22 }
 0x743   : > { %s4794_s20 = scalar_lea.hbm %s4850_s6, %s2690_s17  ;;  %s2457_s8 = scalar_lea.sflag [#allocation11], %s3389_s16 }
 0x744   : > { %s3118_s0 = scalar_lea.vmem %s4796_s22, 16  ;;  %s3234_s24 = smov [#allocation10]  }
 0x745   : > { %p3119_p2 = scmp.ne.s32.totalorder %s4796_s22, %s3118_s0  ;;  %s3122_s15 = sshll.u32 %s3234_s24, 4  ;;  %s3123_s15 = int_to_ptr.vmem [resolvable:$false] %s3122_s15 }
 0x746   : > { %s3124_s12 = scalar_lea.vmem %s3123_s15, 32  ;;  %p3125_p6 = scmp.lt.s32.totalorder %s4796_s22, %s3123_s15 }
 0x747   : > { %p3120_p3 = pnand %p3119_p2, %p4992_p11  ;;  %p3126_p7 = scmp.lt.s32.totalorder %s3124_s12, %s3118_s0 }
 0x749   : > { %p3121_p5 = pneg %p3120_p3  ;;  %p3127_p9 = por %p3126_p7, %p3125_p6 }
 0x74b   : > { %p3128_p12 = pnand %p3127_p9, %p3121_p5 }
 0x782   : > { %v2433_v4 = vpop.trf.xlu1 }
 0x783   : > { %2450 = vst.msk [vmem:[%s309_s10] sm:$0x1] %vm2449_vm1, %v2433_v4 }
 0x784   : > { %3131 = shalt.err (!%p3128_p12)
}
 0x785   : > { %s3132_s16 = scalar_lea.hbm %s4794_s20, 16  ;;  %s3136_s2 = scalar_lea.hbm %s4850_s6, 32 }
 0x786   : > { %p3133_p0 = scmp.ne.s32.totalorder %s4794_s20, %s3132_s16  ;;  %p3137_p10 = scmp.lt.u32.totalorder %s4794_s20, %s4850_s6 }
 0x787   : > { %p3138_p13 = scmp.lt.u32.totalorder %s3136_s2, %s3132_s16  ;;  %p3140_p2 = scmp.lt.u32.totalorder %s3132_s16, %s4794_s20 }
 0x788   : > { %p3134_p4 = pnand %p3133_p0, %p4992_p11 }
 0x789   : > { %p3139_p1 = por %p3138_p13, %p3137_p10 }
 0x78a   : > { %p3135_p8 = pneg %p3134_p4 }
 0x78b   : > { %p3141_p3 = por %p3140_p2, %p3139_p1 }
 0x78d   : > { %p3142_p5 = pnand %p3141_p3, %p3135_p8 }
 0x78f   : > { %3145 = shalt.err (!%p3142_p5)
}
 0x790   : > { %2942 = dma.vmem_to_hbm [thread:$0]  (%p4992_p11), %s4796_s22, 16, %s4794_s20, %s2457_s8  }
 0x791 PF: > { %p2963_p6 = scmp.ge.s32.totalorder %s3212_s26, 2  ;;  %s2497_s13 = sand.u32 1, %s3192_s21  }
 0x792   : > { %p4993_p7 = scmp.ne.s32.totalorder %s4904_s9, 0  ;;  %s2498_s14 = scalar_lea.sflag [#allocation6], %s2497_s13 }
 0x794   : > { %p2953_p9 = pnand %p2963_p6, %p4993_p7 }
 0x796   : > { %3183 = dma.done.wait (!%p2953_p9), %s2498_s14, 256  }
 0x797   : > { %3185 = vsyncadd (!%p2953_p9), %s2498_s14, 4294967040  ;;  %s2507_s19 = scalar_lea.sflag [#allocation11], %s2497_s13 }
 0x798   : > { %3187 = dma.done.wait (!%p2953_p9), %s2507_s19, 16  }
 0x799   : > { %3189 = vsyncadd (!%p2953_p9), %s2507_s19, 4294967280  ;;  %s25_s26 = sadd.s32 1, %s3212_s26   ;;  %s4994_s21 = sld [smem:[#allocation16_spill]] }
 0x79a   : > { %p22_p12 = scmp.ge.s32.totalorder %s25_s26, 4   ;;  %s4995_s22 = sld [smem:[#allocation17_spill]] }
 0x79b   : > { %s4996_s23 = sld [smem:[#allocation20_spill]]  ;;  %s4997_s24 = sld [smem:[#allocation18_spill]] }
 0x79c   : > { %s4998_s25 = sld [smem:[#allocation19_spill]]  ;;  %24 = sbr.rel (!%p22_p12) target bundleno = 12 (0xc), region = 136 }
 0x7a3   :  { %2511 = vsyncpa [#allocation5], 1 }
 0x7a4   :  { %2513 = vsyncpa [#allocation5 + $0x1], 1 }
 0x7a5   :  { %2514 = vsyncpa [#allocation6], 1 }
 0x7a6   :  { %2516 = vsyncpa [#allocation6 + $0x1], 1 }
 0x7a7   :  { %2517 = vsyncpa [#allocation11], 1 }
 0x7a8   :  { %2519 = vsyncpa [#allocation11 + $0x1], 1 }
 0x7a9   :  { %2520 = vsyncpa [#allocation7], 1 }
 0x7aa   :  { %2522 = vsyncpa [#allocation7 + $0x1], 1 }

</bundles_post_ra>
